<compile_context>
chip_gen: v7x
topology: tpu7x:2x2x1
jax: 0.10.0
libtpu: 0.0.40
codegen_flags: <defaults>
</compile_context>

<pallas_src>
import jax
import jax.numpy as jnp
from jax.experimental import pallas as pl
from jax.experimental.pallas import tpu as pltpu


def _basic_block_kernel(x_ref, w1_ref, b1_ref, w2_ref, b2_ref, o_ref):
    """Fused BasicBlock for one batch element.

    x_ref : (1, H, W, Cp)      input tile, f32 (Cp = channels padded to 128k)
    w1_ref: (9*Cp, Cp)         conv1 im2col weights, BN1 scale folded in, bf16
    b1_ref: (1, Cp)            BN1 bias, f32
    w2_ref: (9*Cp, Cp)         conv2 im2col weights, BN2 scale folded in, bf16
    b2_ref: (1, Cp)            BN2 bias, f32
    o_ref : (1, H, W, Cp)      output tile, f32
    """
    _, H, W, Cp = x_ref.shape

    x = x_ref[0]                                      # (H, W, Cp) f32

    # Reusable zero blocks for the 1-pixel spatial halo (built by concat --
    # no full-buffer zero + interior overwrite passes).
    zcol = jnp.zeros((H, 1, Cp), jnp.float32)
    zrow = jnp.zeros((1, W + 2, Cp), jnp.float32)

    def pad_hw(a):                                    # (H, W, Cp) -> (H+2, W+2, Cp)
        aw = jnp.concatenate([zcol, a, zcol], axis=1)
        return jnp.concatenate([zrow, aw, zrow], axis=0)

    def im2col(p):                                    # (H+2, W+2, Cp) -> (H*W, 9*Cp)
        cols = []
        for dh in range(3):
            for dw in range(3):
                cols.append(p[dh:dh + H, dw:dw + W, :].reshape(H * W, Cp))
        return jnp.concatenate(cols, axis=-1)

    # ---- conv1 (3x3, pad=1, stride=1) + folded BN1 scale: one MXU dot ----
    a1 = im2col(pad_hw(x)).astype(jnp.bfloat16)       # (H*W, 9*Cp) bf16
    h1 = jnp.dot(a1, w1_ref[...], preferred_element_type=jnp.float32)
    h1 = jnp.maximum(h1 + b1_ref[...], 0.0)           # bias + relu, f32, lane-dense

    # ---- conv2 (3x3, pad=1, stride=1) + folded BN2 scale: one MXU dot ----
    a2 = im2col(pad_hw(h1.reshape(H, W, Cp))).astype(jnp.bfloat16)
    h2 = jnp.dot(a2, w2_ref[...], preferred_element_type=jnp.float32)

    # ---- bias + identity residual + relu, lane-dense store ----
    out = jnp.maximum(h2 + b2_ref[...] + x.reshape(H * W, Cp), 0.0)
    o_ref[0] = out.reshape(H, W, Cp).astype(o_ref.dtype)


def basic_block_pallas(x_nchw, w1, gamma1, beta1, mean1, var1,
                       w2, gamma2, beta2, mean2, var2, eps=1e-5):
    """x_nchw: (B, C, H, W). w1/w2: (Cout, Cin, 3, 3) PyTorch OIHW layout."""
    B, Cin, H, W = x_nchw.shape
    C = w1.shape[0]
    assert Cin == C, "identity shortcut requires inplanes == planes (stride=1)"
    # TODO(synk): downsample branch (1x1 strided conv + BN) of BasicBlock is
    # not implemented; only the identity-shortcut / stride=1 configuration.

    LANE = 128
    Cp = ((C + LANE - 1) // LANE) * LANE              # lane-dense channel count

    # --- layout glue (XLA side, not the hot path) ---
    # NCHW -> NHWC, zero-pad channels to Cp so the kernel's last dim is 128-dense.
    x_nhwc = jnp.transpose(x_nchw, (0, 2, 3, 1)).astype(jnp.float32)
    x_pad = jnp.pad(x_nhwc, ((0, 0), (0, 0), (0, 0), (0, Cp - C)))

    # Fold inference-mode BatchNorm into the conv weights (scale) + a bias.
    inv1 = gamma1 / jnp.sqrt(var1 + eps)
    inv2 = gamma2 / jnp.sqrt(var2 + eps)
    b1 = (beta1 - mean1 * inv1)
    b2 = (beta2 - mean2 * inv2)

    def prep_weight(w_oihw, scale):
        # OIHW -> HWIO, fold BN scale into output channels, pad channels,
        # reshape to the im2col matrix (9*Cp, Cp), cast to bf16 for the MXU.
        w = jnp.transpose(w_oihw, (2, 3, 1, 0)).astype(jnp.float32)
        w = w * scale[None, None, None, :]
        w = jnp.pad(w, ((0, 0), (0, 0), (0, Cp - C), (0, Cp - C)))
        return w.reshape(9 * Cp, Cp).astype(jnp.bfloat16)

    w1m = prep_weight(w1, inv1)
    w2m = prep_weight(w2, inv2)
    b1p = jnp.pad(b1, (0, Cp - C)).reshape(1, Cp).astype(jnp.float32)
    b2p = jnp.pad(b2, (0, Cp - C)).reshape(1, Cp).astype(jnp.float32)

    out_nhwc = pl.pallas_call(
        _basic_block_kernel,
        out_shape=jax.ShapeDtypeStruct((B, H, W, Cp), jnp.float32),
        grid_spec=pltpu.PrefetchScalarGridSpec(
            num_scalar_prefetch=0,
            grid=(B,),
            in_specs=[
                pl.BlockSpec((1, H, W, Cp), lambda b: (b, 0, 0, 0)),   # x tile
                pl.BlockSpec((9 * Cp, Cp), lambda b: (0, 0)),          # W1 (resident)
                pl.BlockSpec((1, Cp), lambda b: (0, 0)),               # b1
                pl.BlockSpec((9 * Cp, Cp), lambda b: (0, 0)),          # W2 (resident)
                pl.BlockSpec((1, Cp), lambda b: (0, 0)),               # b2
            ],
            out_specs=pl.BlockSpec((1, H, W, Cp), lambda b: (b, 0, 0, 0)),
        ),
        compiler_params=pltpu.CompilerParams(
            dimension_semantics=("parallel",),        # 2 TCs on v7x split batch
            vmem_limit_bytes=32 * 1024 * 1024),       # v7x-safe scoped budget
    )(x_pad, w1m, b1p, w2m, b2p)

    # Drop channel padding, back to PyTorch NCHW layout.
    return jnp.transpose(out_nhwc[..., :C], (0, 3, 1, 2))


def _reference(x_nchw, w1, gamma1, beta1, mean1, var1,
               w2, gamma2, beta2, mean2, var2, eps=1e-5):
    """Pure-JAX reference (lax conv) for correctness check."""
    x = jnp.transpose(x_nchw, (0, 2, 3, 1)).astype(jnp.float32)

    def conv(v, w_oihw):
        w = jnp.transpose(w_oihw, (2, 3, 1, 0)).astype(jnp.float32)
        return jax.lax.conv_general_dilated(
            v, w, window_strides=(1, 1), padding="SAME",
            dimension_numbers=("NHWC", "HWIO", "NHWC"))

    def bn(v, g, b, m, var):
        return (v - m) / jnp.sqrt(var + eps) * g + b

    out = jax.nn.relu(bn(conv(x, w1), gamma1, beta1, mean1, var1))
    out = bn(conv(out, w2), gamma2, beta2, mean2, var2)
    out = jax.nn.relu(out + x)
    return jnp.transpose(out, (0, 3, 1, 2))


if __name__ == "__main__":
    # Small shapes consistent with the module (inplanes == planes, stride=1).
    B, C, H, W = 2, 8, 16, 16

    key = jax.random.PRNGKey(0)
    ks = jax.random.split(key, 12)

    x = jax.random.normal(ks[0], (B, C, H, W), jnp.float32)

    fan_in = C * 3 * 3
    std = (2.0 / fan_in) ** 0.5
    w1 = jax.random.normal(ks[1], (C, C, 3, 3), jnp.float32) * std
    w2 = jax.random.normal(ks[2], (C, C, 3, 3), jnp.float32) * std

    gamma1 = 1.0 + 0.1 * jax.random.normal(ks[3], (C,), jnp.float32)
    beta1 = 0.1 * jax.random.normal(ks[4], (C,), jnp.float32)
    mean1 = 0.1 * jax.random.normal(ks[5], (C,), jnp.float32)
    var1 = 1.0 + 0.1 * jnp.abs(jax.random.normal(ks[6], (C,), jnp.float32))

    gamma2 = 1.0 + 0.1 * jax.random.normal(ks[7], (C,), jnp.float32)
    beta2 = 0.1 * jax.random.normal(ks[8], (C,), jnp.float32)
    mean2 = 0.1 * jax.random.normal(ks[9], (C,), jnp.float32)
    var2 = 1.0 + 0.1 * jnp.abs(jax.random.normal(ks[10], (C,), jnp.float32))

    out = basic_block_pallas(x, w1, gamma1, beta1, mean1, var1,
                             w2, gamma2, beta2, mean2, var2)
    out = jax.block_until_ready(out)

    ref = _reference(x, w1, gamma1, beta1, mean1, var1,
                     w2, gamma2, beta2, mean2, var2)
    assert out.shape == (B, C, H, W)
    # bf16 MXU operands (f32 accumulation) => slightly looser tolerance than f32.
    max_err = float(jnp.max(jnp.abs(out - ref)))
    assert jnp.allclose(out, ref, rtol=3e-2, atol=3e-2), (
        f"mismatch vs reference, max abs err = {max_err}")

    print("KERNEL_OK")
</pallas_src>

<mosaic_0001>
module attributes {stable_mosaic.version = 11 : i64} {
  func.func @_basic_block_kernel(%arg0: i32, %arg1: memref<1x16x16x128xf32, #tpu.memory_space<vmem>>, %arg2: memref<1152x128xbf16, #tpu.memory_space<vmem>>, %arg3: memref<1x128xf32, #tpu.memory_space<vmem>>, %arg4: memref<1152x128xbf16, #tpu.memory_space<vmem>>, %arg5: memref<1x128xf32, #tpu.memory_space<vmem>>, %arg6: memref<1x16x16x128xf32, #tpu.memory_space<vmem>>) attributes {dimension_semantics = [#tpu.dimension_semantics<parallel>], iteration_bounds = array<i64: 2>, scalar_prefetch = 0 : i64, scratch_operands = 0 : i64, tpu.core_type = #tpu.core_type<tc>, window_params = [{transform_indices = @transform_0, window_bounds = array<i64: 1, 16, 16, 128>}, {pipeline_mode = #tpu.pipeline_mode<synchronous>, transform_indices = @transform_1, window_bounds = array<i64: 1152, 128>}, {pipeline_mode = #tpu.pipeline_mode<synchronous>, transform_indices = @transform_2, window_bounds = array<i64: 1, 128>}, {pipeline_mode = #tpu.pipeline_mode<synchronous>, transform_indices = @transform_3, window_bounds = array<i64: 1152, 128>}, {pipeline_mode = #tpu.pipeline_mode<synchronous>, transform_indices = @transform_4, window_bounds = array<i64: 1, 128>}, {transform_indices = @transform_5, window_bounds = array<i64: 1, 16, 16, 128>}]} {
    %c0 = arith.constant 0 : index
    %c0_0 = arith.constant 0 : index
    %c0_1 = arith.constant 0 : index
    %c0_2 = arith.constant 0 : index
    %0 = vector.load %arg1[%c0, %c0_0, %c0_1, %c0_2] : memref<1x16x16x128xf32, #tpu.memory_space<vmem>>, vector<1x16x16x128xf32>
    %1 = vector.shape_cast %0 : vector<1x16x16x128xf32> to vector<16x16x128xf32>
    %cst = arith.constant 0.000000e+00 : f32
    %2 = vector.broadcast %cst : f32 to vector<16x1x128xf32>
    %cst_3 = arith.constant 0.000000e+00 : f32
    %3 = vector.broadcast %cst_3 : f32 to vector<1x18x128xf32>
    %4 = tpu.concatenate %2, %1, %2 in 1 : vector<16x1x128xf32>, vector<16x16x128xf32>, vector<16x1x128xf32> -> vector<16x18x128xf32>
    %5 = tpu.concatenate %3, %4, %3 in 0 : vector<1x18x128xf32>, vector<16x18x128xf32>, vector<1x18x128xf32> -> vector<18x18x128xf32>
    %6 = vector.extract_strided_slice %5 {offsets = [0, 0, 0], sizes = [16, 16, 128], strides = [1, 1, 1]} : vector<18x18x128xf32> to vector<16x16x128xf32>
    %7 = vector.shape_cast %6 : vector<16x16x128xf32> to vector<256x128xf32>
    %8 = vector.extract_strided_slice %5 {offsets = [0, 1, 0], sizes = [16, 16, 128], strides = [1, 1, 1]} : vector<18x18x128xf32> to vector<16x16x128xf32>
    %9 = vector.shape_cast %8 : vector<16x16x128xf32> to vector<256x128xf32>
    %10 = vector.extract_strided_slice %5 {offsets = [0, 2, 0], sizes = [16, 16, 128], strides = [1, 1, 1]} : vector<18x18x128xf32> to vector<16x16x128xf32>
    %11 = vector.shape_cast %10 : vector<16x16x128xf32> to vector<256x128xf32>
    %12 = vector.extract_strided_slice %5 {offsets = [1, 0, 0], sizes = [16, 16, 128], strides = [1, 1, 1]} : vector<18x18x128xf32> to vector<16x16x128xf32>
    %13 = vector.shape_cast %12 : vector<16x16x128xf32> to vector<256x128xf32>
    %14 = vector.extract_strided_slice %5 {offsets = [1, 1, 0], sizes = [16, 16, 128], strides = [1, 1, 1]} : vector<18x18x128xf32> to vector<16x16x128xf32>
    %15 = vector.shape_cast %14 : vector<16x16x128xf32> to vector<256x128xf32>
    %16 = vector.extract_strided_slice %5 {offsets = [1, 2, 0], sizes = [16, 16, 128], strides = [1, 1, 1]} : vector<18x18x128xf32> to vector<16x16x128xf32>
    %17 = vector.shape_cast %16 : vector<16x16x128xf32> to vector<256x128xf32>
    %18 = vector.extract_strided_slice %5 {offsets = [2, 0, 0], sizes = [16, 16, 128], strides = [1, 1, 1]} : vector<18x18x128xf32> to vector<16x16x128xf32>
    %19 = vector.shape_cast %18 : vector<16x16x128xf32> to vector<256x128xf32>
    %20 = vector.extract_strided_slice %5 {offsets = [2, 1, 0], sizes = [16, 16, 128], strides = [1, 1, 1]} : vector<18x18x128xf32> to vector<16x16x128xf32>
    %21 = vector.shape_cast %20 : vector<16x16x128xf32> to vector<256x128xf32>
    %22 = vector.extract_strided_slice %5 {offsets = [2, 2, 0], sizes = [16, 16, 128], strides = [1, 1, 1]} : vector<18x18x128xf32> to vector<16x16x128xf32>
    %23 = vector.shape_cast %22 : vector<16x16x128xf32> to vector<256x128xf32>
    %24 = tpu.concatenate %7, %9, %11, %13, %15, %17, %19, %21, %23 in 1 : vector<256x128xf32>, vector<256x128xf32>, vector<256x128xf32>, vector<256x128xf32>, vector<256x128xf32>, vector<256x128xf32>, vector<256x128xf32>, vector<256x128xf32>, vector<256x128xf32> -> vector<256x1152xf32>
    %25 = arith.truncf %24 : vector<256x1152xf32> to vector<256x1152xbf16>
    %c0_4 = arith.constant 0 : index
    %c0_5 = arith.constant 0 : index
    %26 = vector.load %arg2[%c0_4, %c0_5] : memref<1152x128xbf16, #tpu.memory_space<vmem>>, vector<1152x128xbf16>
    %cst_6 = arith.constant dense<0.000000e+00> : vector<256x128xf32>
    %27 = tpu.matmul %25, %26, %cst_6 {dimension_numbers = #tpu.dot_dimension_numbers<[1], [0], [0], [1], [0, 0, 1, 1], [], []>} : vector<256x1152xbf16>, vector<1152x128xbf16>, vector<256x128xf32> -> vector<256x128xf32>
    %c0_7 = arith.constant 0 : index
    %c0_8 = arith.constant 0 : index
    %28 = vector.load %arg3[%c0_7, %c0_8] : memref<1x128xf32, #tpu.memory_space<vmem>>, vector<1x128xf32>
    %29 = vector.broadcast %28 : vector<1x128xf32> to vector<256x128xf32>
    %30 = arith.addf %27, %29 : vector<256x128xf32>
    %cst_9 = arith.constant 0.000000e+00 : f32
    %31 = vector.broadcast %cst_9 : f32 to vector<256x128xf32>
    %32 = arith.maximumf %30, %31 : vector<256x128xf32>
    %33 = vector.shape_cast %32 : vector<256x128xf32> to vector<16x16x128xf32>
    %34 = tpu.concatenate %2, %33, %2 in 1 : vector<16x1x128xf32>, vector<16x16x128xf32>, vector<16x1x128xf32> -> vector<16x18x128xf32>
    %35 = tpu.concatenate %3, %34, %3 in 0 : vector<1x18x128xf32>, vector<16x18x128xf32>, vector<1x18x128xf32> -> vector<18x18x128xf32>
    %36 = vector.extract_strided_slice %35 {offsets = [0, 0, 0], sizes = [16, 16, 128], strides = [1, 1, 1]} : vector<18x18x128xf32> to vector<16x16x128xf32>
    %37 = vector.shape_cast %36 : vector<16x16x128xf32> to vector<256x128xf32>
    %38 = vector.extract_strided_slice %35 {offsets = [0, 1, 0], sizes = [16, 16, 128], strides = [1, 1, 1]} : vector<18x18x128xf32> to vector<16x16x128xf32>
    %39 = vector.shape_cast %38 : vector<16x16x128xf32> to vector<256x128xf32>
    %40 = vector.extract_strided_slice %35 {offsets = [0, 2, 0], sizes = [16, 16, 128], strides = [1, 1, 1]} : vector<18x18x128xf32> to vector<16x16x128xf32>
    %41 = vector.shape_cast %40 : vector<16x16x128xf32> to vector<256x128xf32>
    %42 = vector.extract_strided_slice %35 {offsets = [1, 0, 0], sizes = [16, 16, 128], strides = [1, 1, 1]} : vector<18x18x128xf32> to vector<16x16x128xf32>
    %43 = vector.shape_cast %42 : vector<16x16x128xf32> to vector<256x128xf32>
    %44 = vector.extract_strided_slice %35 {offsets = [1, 1, 0], sizes = [16, 16, 128], strides = [1, 1, 1]} : vector<18x18x128xf32> to vector<16x16x128xf32>
    %45 = vector.shape_cast %44 : vector<16x16x128xf32> to vector<256x128xf32>
    %46 = vector.extract_strided_slice %35 {offsets = [1, 2, 0], sizes = [16, 16, 128], strides = [1, 1, 1]} : vector<18x18x128xf32> to vector<16x16x128xf32>
    %47 = vector.shape_cast %46 : vector<16x16x128xf32> to vector<256x128xf32>
    %48 = vector.extract_strided_slice %35 {offsets = [2, 0, 0], sizes = [16, 16, 128], strides = [1, 1, 1]} : vector<18x18x128xf32> to vector<16x16x128xf32>
    %49 = vector.shape_cast %48 : vector<16x16x128xf32> to vector<256x128xf32>
    %50 = vector.extract_strided_slice %35 {offsets = [2, 1, 0], sizes = [16, 16, 128], strides = [1, 1, 1]} : vector<18x18x128xf32> to vector<16x16x128xf32>
    %51 = vector.shape_cast %50 : vector<16x16x128xf32> to vector<256x128xf32>
    %52 = vector.extract_strided_slice %35 {offsets = [2, 2, 0], sizes = [16, 16, 128], strides = [1, 1, 1]} : vector<18x18x128xf32> to vector<16x16x128xf32>
    %53 = vector.shape_cast %52 : vector<16x16x128xf32> to vector<256x128xf32>
    %54 = tpu.concatenate %37, %39, %41, %43, %45, %47, %49, %51, %53 in 1 : vector<256x128xf32>, vector<256x128xf32>, vector<256x128xf32>, vector<256x128xf32>, vector<256x128xf32>, vector<256x128xf32>, vector<256x128xf32>, vector<256x128xf32>, vector<256x128xf32> -> vector<256x1152xf32>
    %55 = arith.truncf %54 : vector<256x1152xf32> to vector<256x1152xbf16>
    %c0_10 = arith.constant 0 : index
    %c0_11 = arith.constant 0 : index
    %56 = vector.load %arg4[%c0_10, %c0_11] : memref<1152x128xbf16, #tpu.memory_space<vmem>>, vector<1152x128xbf16>
    %cst_12 = arith.constant dense<0.000000e+00> : vector<256x128xf32>
    %57 = tpu.matmul %55, %56, %cst_12 {dimension_numbers = #tpu.dot_dimension_numbers<[1], [0], [0], [1], [0, 0, 1, 1], [], []>} : vector<256x1152xbf16>, vector<1152x128xbf16>, vector<256x128xf32> -> vector<256x128xf32>
    %c0_13 = arith.constant 0 : index
    %c0_14 = arith.constant 0 : index
    %58 = vector.load %arg5[%c0_13, %c0_14] : memref<1x128xf32, #tpu.memory_space<vmem>>, vector<1x128xf32>
    %59 = vector.broadcast %58 : vector<1x128xf32> to vector<256x128xf32>
    %60 = arith.addf %57, %59 : vector<256x128xf32>
    %61 = vector.shape_cast %1 : vector<16x16x128xf32> to vector<256x128xf32>
    %62 = arith.addf %60, %61 : vector<256x128xf32>
    %cst_15 = arith.constant 0.000000e+00 : f32
    %63 = vector.broadcast %cst_15 : f32 to vector<256x128xf32>
    %64 = arith.maximumf %62, %63 : vector<256x128xf32>
    %65 = vector.shape_cast %64 : vector<256x128xf32> to vector<16x16x128xf32>
    %c0_16 = arith.constant 0 : index
    %c0_17 = arith.constant 0 : index
    %c0_18 = arith.constant 0 : index
    %c0_19 = arith.constant 0 : index
    %66 = vector.load %arg6[%c0_16, %c0_17, %c0_18, %c0_19] : memref<1x16x16x128xf32, #tpu.memory_space<vmem>>, vector<1x16x16x128xf32>
    %67 = vector.shape_cast %66 : vector<1x16x16x128xf32> to vector<16x16x128xf32>
    %68 = vector.shape_cast %65 : vector<16x16x128xf32> to vector<1x16x16x128xf32>
    tpu.vector_store %arg6[%c0_16, %c0_17, %c0_18, %c0_19], %68 {strides = array<i32>} : memref<1x16x16x128xf32, #tpu.memory_space<vmem>>, vector<1x16x16x128xf32>,
    return
  }
  func.func @transform_0(%arg0: i32) -> (i32, i32, i32, i32) {
    %c0_i32 = arith.constant 0 : i32
    %c0_i32_0 = arith.constant 0 : i32
    %c0_i32_1 = arith.constant 0 : i32
    %c0_i32_2 = arith.constant 0 : i32
    return %arg0, %c0_i32, %c0_i32_0, %c0_i32_1 : i32, i32, i32, i32
  }
  func.func @transform_1(%arg0: i32) -> (i32, i32) {
    %c0_i32 = arith.constant 0 : i32
    %c0_i32_0 = arith.constant 0 : i32
    %c0_i32_1 = arith.constant 0 : i32
    return %c0_i32, %c0_i32_0 : i32, i32
  }
  func.func @transform_2(%arg0: i32) -> (i32, i32) {
    %c0_i32 = arith.constant 0 : i32
    %c0_i32_0 = arith.constant 0 : i32
    %c0_i32_1 = arith.constant 0 : i32
    return %c0_i32, %c0_i32_0 : i32, i32
  }
  func.func @transform_3(%arg0: i32) -> (i32, i32) {
    %c0_i32 = arith.constant 0 : i32
    %c0_i32_0 = arith.constant 0 : i32
    %c0_i32_1 = arith.constant 0 : i32
    return %c0_i32, %c0_i32_0 : i32, i32
  }
  func.func @transform_4(%arg0: i32) -> (i32, i32) {
    %c0_i32 = arith.constant 0 : i32
    %c0_i32_0 = arith.constant 0 : i32
    %c0_i32_1 = arith.constant 0 : i32
    return %c0_i32, %c0_i32_0 : i32, i32
  }
  func.func @transform_5(%arg0: i32) -> (i32, i32, i32, i32) {
    %c0_i32 = arith.constant 0 : i32
    %c0_i32_0 = arith.constant 0 : i32
    %c0_i32_1 = arith.constant 0 : i32
    %c0_i32_2 = arith.constant 0 : i32
    return %arg0, %c0_i32, %c0_i32_0, %c0_i32_1 : i32, i32, i32, i32
  }
}

</mosaic_0001>

<bundles_post_ra>
// kernel: tpu_custom_call.1
= control target key start
LH: loop header
LB: loop body
LE: loop exit
PB: predicated region body
PF: predicated region fallthrough
CT: control target
= control target key end

     0   :  { %10 = vsyncpa [#allocation3], 0  ;;  %s8775_s0 = inlined_call_operand.hbm [shape: f32[2,16,16,128], index: 0, kind: input, shape index: {}]   ;;  %s8776_s1 = inlined_call_operand.hbm [shape: bf16[1152,128], index: 1, kind: input, shape index: {}]   ;;  %s8777_s2 = inlined_call_operand.vmem [shape: f32[1,128], index: 2, kind: input, shape index: {}]   ;;  %s8778_s3 = inlined_call_operand.hbm [shape: bf16[1152,128], index: 3, kind: input, shape index: {}]   ;;  %s8779_s4 = inlined_call_operand.vmem [shape: f32[1,128], index: 4, kind: input, shape index: {}]   ;;  %s8780_s5 = inlined_call_operand.hbm [shape: f32[2,16,16,128], index: 5, kind: output, shape index: {}]  }
   0x1   :  { %12 = vsyncpa [#allocation3 + $0x1], 0 }
   0x2   :  { %13 = vsyncpa [#allocation6], 0 }
   0x3   :  { %14 = vsyncpa [#allocation4], 0 }
   0x4   :  { %16 = vsyncpa [#allocation4 + $0x1], 0  ;;  %s6283_s18 = smov 0   ;;  %s6285_s19 = smov 0  }
   0x5   :  { %s6287_s20 = smov 0   ;;  %s6289_s21 = smov 0  }
   0x6 LB: > { %s6304_s22 = sadd.s32 4294967295, %s6238_s21   ;;  %s4256_s23 = sadd.s32 4294967294, %s6238_s21   ;;  %s6238_s21 = sphi %s6289_s21, %s9016_s21   ;;  %s6234_s20 = sphi %s6287_s20, %s9015_s20   ;;  %s6230_s19 = sphi %s6285_s19, %s9014_s19   ;;  %s6226_s18 = sphi %s6283_s18, %s9013_s18  }
   0x7   : > { %p42_p0 = scmp.ne.s32.totalorder %s6230_s19, %s6226_s18  ;;  %p8781_p1 = scmp.eq.s32.totalorder %s6304_s22, 0 }
   0x8   : > { %p156_p3 = scmp.eq.s32.totalorder %s4256_s23, 1  ;;  %p4257_p5 = scmp.ge.s32.totalorder %s6238_s21, 1 }
   0x9   : > { %p6313_p4 = por %p8781_p1, %p42_p0  ;;  %p163_p7 = scmp.lt.s32.totalorder %s6238_s21, 3 }
   0xa   : > { %p6318_p6 = por %p156_p3, %p42_p0  ;;  %s6240_s27 = smov [#allocation5]  }
   0xb   : > { %s8815_s24 = scalar_select %p6313_p4, 1, 0 }
   0xc   : > { %s8816_s25 = scalar_select %p6318_p6, 1, 0 }
   0xd   : > { %p6323_p8 = pnand %p4257_p5, %p163_p7  ;;  %s175_s28 = sshll.u32 %s6240_s27, 4  ;;  %s6327_s28 = int_to_ptr.vmem [resolvable:$true] %s175_s28 }
   0xe   : > { %s6241_s30 = smov [#allocation7]   ;;  %s6082_s9 = scalar_lea.hbm %s8776_s1, 9216 }
   0xf   : > { %p5842_p9 = pneg %p6323_p8  ;;  %s191_s6 = sshll.u32 %s6241_s30, 4  ;;  %s6338_s6 = int_to_ptr.vmem [resolvable:$true] %s191_s6 }
  0x10   : > { %p6083_p12 = scmp.ne.s32.totalorder %s8776_s1, %s6082_s9  ;;  %p6089_p5 = scmp.lt.u32.totalorder %s6082_s9, %s8776_s1 }
  0x11   : > { %p6334_p11 = pnand %p5842_p9, %p8781_p1 }
  0x13   : > { %p6084_p13 = pneg %p6334_p11 }
  0x15   : > { %p6085_p0 = pnand %p6084_p13, %p6083_p12 }
  0x17   : > { %p6086_p3 = pneg %p6085_p0 }
  0x19   : > { %p6091_p7 = pnand %p6089_p5, %p6086_p3 }
  0x1b   : > { %6094 = shalt.err (!%p6091_p7)
}
  0x1c   : > { %s6095_s14 = scalar_lea.vmem %s6327_s28, 9216  ;;  %p6103_p2 = scmp.lt.s32.totalorder %s6327_s28, %s6327_s28 }
  0x1d   : > { %p6096_p9 = scmp.ne.s32.totalorder %s6327_s28, %s6095_s14  ;;  %p6104_p12 = scmp.lt.s32.totalorder %s6095_s14, %s6095_s14 }
  0x1f   : > { %p6098_p10 = pnand %p6096_p9, %p6084_p13  ;;  %p6105_p0 = por %p6104_p12, %p6103_p2 }
  0x21   : > { %p6099_p1 = pneg %p6098_p10 }
  0x23   : > { %p6106_p6 = pnand %p6105_p0, %p6099_p1 }
  0x25   : > { %6109 = shalt.err (!%p6106_p6)
}
  0x26   : > { %s6242_s15 = smov 64   ;;  %s6243_s16 = smov 4  }
  0x27   : > { %5845 = dma.hbm_to_vmem [thread:$0]  (!%p6334_p11), %s8776_s1, 9216, %s6327_s28, [#allocation6], %s6242_s15, %s6242_s15, %s6243_s16  }
  0x28   : > { %s6110_s7 = scalar_lea.hbm %s8778_s3, 9216 }
  0x29   : > { %p6111_p2 = scmp.ne.s32.totalorder %s8778_s3, %s6110_s7  ;;  %p6117_p10 = scmp.lt.u32.totalorder %s6110_s7, %s8778_s3 }
  0x2b   : > { %p6113_p1 = pnand %p6111_p2, %p6084_p13 }
  0x2d   : > { %p6114_p6 = pneg %p6113_p1 }
  0x2f   : > { %p6119_p3 = pnand %p6117_p10, %p6114_p6 }
  0x31   : > { %6122 = shalt.err (!%p6119_p3)
}
  0x32   : > { %s6123_s28 = scalar_lea.vmem %s6338_s6, 9216  ;;  %p6131_p12 = scmp.lt.s32.totalorder %s6338_s6, %s6338_s6 }
  0x33   : > { %p6124_p5 = scmp.ne.s32.totalorder %s6338_s6, %s6123_s28  ;;  %p6132_p0 = scmp.lt.s32.totalorder %s6123_s28, %s6123_s28 }
  0x35   : > { %p6126_p7 = pnand %p6124_p5, %p6084_p13  ;;  %p6133_p2 = por %p6132_p0, %p6131_p12 }
  0x37   : > { %p6127_p9 = pneg %p6126_p7 }
  0x39   : > { %p6134_p1 = pnand %p6133_p2, %p6127_p9 }
  0x3b   : > { %6137 = shalt.err (!%p6134_p1)
}
  0x3c   : > { %5848 = dma.hbm_to_vmem [thread:$0]  (!%p6334_p11), %s8778_s3, 9216, %s6338_s6, [#allocation6], %s6242_s15, %s6242_s15, %s6243_s16  }
  0x3d   : > { %s6393_s14 = sadd.s32 1, %s6238_s21   ;;  %s29_s29 = sadd.s32 1, %s6234_s20 }
  0x3e   : > { %s26_s17 = ssub.s32 %s6238_s21, %s6393_s14  ;;  %p36_p13 = scmp.ne.s32.totalorder %s6234_s20, %s6230_s19 }
  0x3f   : > { %p27_p6 = scmp.eq.s32.totalorder %s26_s17, 0  ;;  %p37_p10 = scmp.eq.s32.totalorder %s6238_s21, 0 }
  0x40   : > { %p8819_p3 = scmp.eq.s32.totalorder %s6304_s22, 1  ;;  %p5859_p7 = scmp.lt.s32.totalorder %s6238_s21, 2 }
  0x41   : > { %s6409_s27 = scalar_select %p27_p6, %s6234_s20, %s29_s29  }
  0x42   : > { %p6403_p5 = por %p8819_p3, %p36_p13  ;;  %p38_p9 = por %p37_p10, %p36_p13 }
  0x43   : > { %s208_s30 = sand.u32 1, %s6234_s20   ;;  %s4788_s6 = sshll.u32 %s6238_s21, 12 }
  0x44   : > { %s8820_s23 = scalar_select %p6403_p5, 1, 0 }
  0x45   : > { %s4261_s7 = sshll.u32 %s208_s30, 8  ;;  %s6416_s8 = scalar_lea.hbm %s8775_s0, %s4788_s6 }
  0x46   : > { %s212_s9 = scalar_lea.vmem [#allocation2], %s4261_s7  ;;  %p6420_p11 = pnand %p5859_p7, %p38_p9 }
  0x47   : > { %s219_s10 = sshll.u32 %s212_s9, 4  ;;  %s6424_s28 = scalar_lea.sflag [#allocation3], %s208_s30  ;;  %s6418_s10 = int_to_ptr.vmem [resolvable:$true] %s219_s10 }
  0x48   : > { %s6138_s12 = scalar_lea.hbm %s6416_s8, 4096  ;;  %p6140_p0 = pneg %p6420_p11 }
  0x49   : > { %p6139_p12 = scmp.ne.s32.totalorder %s6416_s8, %s6138_s12  ;;  %s6143_s17 = scalar_lea.hbm %s8775_s0, 8192 }
  0x4a   : > { %p6144_p13 = scmp.lt.u32.totalorder %s6416_s8, %s8775_s0  ;;  %p6145_p6 = scmp.lt.u32.totalorder %s6143_s17, %s6138_s12 }
  0x4b   : > { %p6141_p2 = pnand %p6140_p0, %p6139_p12  ;;  %p6147_p3 = scmp.lt.u32.totalorder %s6138_s12, %s6416_s8 }
  0x4c   : > { %p6146_p10 = por %p6145_p6, %p6144_p13 }
  0x4d   : > { %p6142_p1 = pneg %p6141_p2 }
  0x4e   : > { %p6148_p7 = por %p6147_p3, %p6146_p10 }
  0x50   : > { %p6149_p9 = pnand %p6148_p7, %p6142_p1 }
  0x52   : > { %6152 = shalt.err (!%p6149_p9)
}
  0x53   : > { %s6153_s30 = scalar_lea.vmem %s6418_s10, 4096  ;;  %s6244_s15 = smov [#allocation2]  }
  0x54   : > { %p6154_p12 = scmp.ne.s32.totalorder %s6418_s10, %s6153_s30  ;;  %s6158_s16 = sshll.u32 %s6244_s15, 4  ;;  %s6159_s16 = int_to_ptr.vmem [resolvable:$false] %s6158_s16 }
  0x55   : > { %s6160_s9 = scalar_lea.vmem %s6159_s16, 8192  ;;  %p6161_p4 = scmp.lt.s32.totalorder %s6418_s10, %s6159_s16 }
  0x56   : > { %p6156_p2 = pnand %p6154_p12, %p6140_p0  ;;  %p6162_p13 = scmp.lt.s32.totalorder %s6160_s9, %s6153_s30 }
  0x58   : > { %p6157_p5 = pneg %p6156_p2  ;;  %p6163_p6 = por %p6162_p13, %p6161_p4 }
  0x5a   : > { %p6164_p10 = pnand %p6163_p6, %p6157_p5 }
  0x5c   : > { %6167 = shalt.err (!%p6164_p10)
}
  0x5d   : > { %s6245_s12 = smov 128   ;;  %s6246_s13 = smov 8  }
  0x5e   : > { %5852 = dma.hbm_to_vmem [thread:$0]  (!%p6420_p11), %s6416_s8, 4096, %s6418_s10, %s6424_s28, %s6245_s12, %s6245_s12, %s6246_s13  }
  0x5f   : > { %231 = sbr.rel (%p6323_p8) target bundleno = 1169 (0x491), region = 40 }
  0x66   : > { %s6455_s29 = sand.u32 1, %s6230_s19   ;;  %p8822_p4 = scmp.ne.s32.totalorder %s8815_s24, 0 }
  0x67   : > { %s4265_s17 = sshll.u32 %s6455_s29, 8  ;;  %s234_s7 = scalar_lea.sflag [#allocation3], %s6455_s29 }
  0x68   : > { %s6461_s6 = scalar_lea.vmem [#allocation2], %s4265_s17 }
  0x69   : > { %6213 = dma.done.wait (%p8822_p4), %s234_s7, 4096  }
  0x6a   : > { %6215 = vsyncadd (%p8822_p4), %s234_s7, 4294963200  ;;  %p8823_p5 = scmp.eq.s32.totalorder %s6304_s22, 0 }
  0x6c   : > { %6217 = dma.done.wait (%p8823_p5), [#allocation6], 18432   ;;  %p8824_p8 = pmov %p8823_p5 }
  0x6d   : > { %v6247_v0 = vmov 0.0   ;;  %v5906_v3 = vld [vmem:[#allocation5 + $0x40] sm:$0xff]   ;;  %v5910_v7 = vld [vmem:[#allocation5 + $0x48] sm:$0xff]   ;;  %v5914_v11 = vld [vmem:[#allocation5 + $0x50] sm:$0xff]   ;;  %vm337_vm0 = vcmask 1040384   ;;  %vm497_vm2 = vcmask 1046528  }
  0x6e   : > { %6219 = vsyncadd (%p8824_p8), [#allocation6], 4294948864  ;;  %v498_v1 = vrot.slane %v6247_v0, 1  ;;  %v5907_v4 = vld [vmem:[#allocation5] sm:$0xff]   ;;  %4790 = vmatprep.subr.bf16.mxu0 %v5906_v3  ;;  %v5911_v8 = vld [vmem:[#allocation5 + $0x8] sm:$0xff]   ;;  %v607_v36 = vrot.slane %v6247_v0, 2 }
  0x6f   : > { %v5908_v5 = vld [vmem:[#allocation5 + $0xc0] sm:$0xff]   ;;  %4791 = vmatpush3.bf16.msra.mxu0 %v5907_v4  ;;  %v5912_v9 = vld [vmem:[#allocation5 + $0xc8] sm:$0xff]   ;;  %v5915_v12 = vld [vmem:[#allocation5 + $0x10] sm:$0xff]   ;;  %vm606_vm3 = vcmask 1045504   ;;  %v8784_v40 = vmov 0.0|0.0   ;;  %vm6249_vm4 = vmmov 1  }
  0x70   : > { %v6472_v2 = vpack.c.bf16 %v498_v1, %v498_v1  ;;  %v5909_v6 = vld [vmem:[#allocation5 + $0x80] sm:$0xff]   ;;  %4902 = vmatprep.subr.bf16.mxu1 %v5908_v5  ;;  %4792 = vmatprep.subr.bf16.mxu0 %v5910_v7  ;;  %v5913_v10 = vld [vmem:[#allocation5 + $0x88] sm:$0xff]   ;;  %v5916_v13 = vld [vmem:[#allocation5 + $0xd0] sm:$0xff]   ;;  %v6485_v45 = vpack.c.bf16 %v607_v36, %v607_v36  ;;  %s8632_s11 = scalar_lea.vmem [#allocation8], %s4265_s17  ;;  %s4789_s28 = sshll.u32 %s6304_s22, 12 }
  0x71   : > { %4903 = vmatpush3.bf16.msra.mxu1 %v5909_v6  ;;  %v5917_v14 = vld [vmem:[#allocation5 + $0x90] sm:$0xff]   ;;  %v5918_v15 = vld [vmem:[#allocation5 + $0x58] sm:$0xff]   ;;  %v5922_v19 = vld [vmem:[#allocation5 + $0x60] sm:$0xff]   ;;  %s4164_s30 = sshll.u32 %s8632_s11, 4  ;;  %s8726_s9 = scalar_lea.hbm %s8780_s5, %s4789_s28  ;;  %s8728_s30 = int_to_ptr.vmem [resolvable:$true] %s4164_s30 }
  0x72   : > { %8825 = vst [vmem:[#allocation12_spill] sm:$0xff] %v6472_v2  ;;  %1397 = vmatprep.mubr.bf16.mxu0 %v6472_v2  ;;  %4904 = vmatprep.subr.bf16.mxu1 %v5912_v9  ;;  %v5919_v16 = vld [vmem:[#allocation5 + $0x18] sm:$0xff]   ;;  %v5923_v20 = vld [vmem:[#allocation5 + $0x20] sm:$0xff]   ;;  %v5926_v23 = vld [vmem:[#allocation5 + $0x68] sm:$0xff]   ;;  %s4151_s22 = scalar_lea.sflag [#allocation4], %s6455_s29  ;;  %s6168_s12 = scalar_lea.vmem %s8728_s30, 4096 }
  0x73   : > { %4793 = vmatpush3.bf16.msra.mxu0 %v5911_v8  ;;  %v5920_v17 = vld [vmem:[#allocation5 + $0xd8] sm:$0xff]   ;;  %v5924_v21 = vld [vmem:[#allocation5 + $0xe0] sm:$0xff]   ;;  %v5927_v24 = vld [vmem:[#allocation5 + $0x28] sm:$0xff]   ;;  %8828 = vst [vmem:[#allocation13_spill] sm:$0xff] %v6485_v45  ;;  %p6169_p11 = scmp.ne.s32.totalorder %s8728_s30, %s6168_s12  ;;  %p9010_p0 = scmp.ne.s32.totalorder %s8820_s23, 0 }
  0x74   : > { %4794 = vmatprep.subr.bf16.mxu0 %v5914_v11  ;;  %v5921_v18 = vld [vmem:[#allocation5 + $0x98] sm:$0xff]   ;;  %v5925_v22 = vld [vmem:[#allocation5 + $0xa0] sm:$0xff]   ;;  %v5928_v25 = vld [vmem:[#allocation5 + $0xe8] sm:$0xff]   ;;  %s6250_s13 = smov [#allocation8]  }
  0x75   : > { %4905 = vmatpush3.bf16.msra.mxu1 %v5913_v10  ;;  %v5929_v26 = vld [vmem:[#allocation5 + $0xa8] sm:$0xff]   ;;  %v5930_v27 = vld [vmem:[#allocation5 + $0x70] sm:$0xff]   ;;  %vm6476_vm1 = vmneg %vm337_vm0  ;;  %p6170_p1 = pnand %p6169_p11, %p9010_p0  ;;  %s6172_s17 = sshll.u32 %s6250_s13, 4  ;;  %s6173_s17 = int_to_ptr.vmem [resolvable:$false] %s6172_s17 }
  0x76   : > { %4906 = vmatprep.subr.bf16.mxu1 %v5916_v13  ;;  %v5931_v28 = vld [vmem:[#allocation5 + $0x30] sm:$0xff]   ;;  %v5934_v32 = vld [vmem:[#allocation5 + $0x78] sm:$0xff]   ;;  %v5938_v37 = vld [vmem:[#allocation5 + $0x140] sm:$0xff]   ;;  %s6174_s7 = scalar_lea.vmem %s6173_s17, 8192  ;;  %p6175_p7 = scmp.lt.s32.totalorder %s8728_s30, %s6173_s17 }
  0x77   : > { %4795 = vmatpush3.bf16.msra.mxu0 %v5915_v12  ;;  %v5932_v30 = vld [vmem:[#allocation5 + $0xf0] sm:$0xff]   ;;  %v5935_v33 = vld [vmem:[#allocation5 + $0x38] sm:$0xff]   ;;  %v273_v38 = vld [vmem:[%s6461_s6] sm:$0xff]  ;;  %p6171_p3 = pneg %p6170_p1  ;;  %p6176_p9 = scmp.lt.s32.totalorder %s6174_s7, %s6168_s12 }
  0x78   : > { %4796 = vmatprep.subr.bf16.mxu0 %v5918_v15  ;;  %v5933_v31 = vld [vmem:[#allocation5 + $0xb0] sm:$0xff]   ;;  %v5936_v34 = vld [vmem:[#allocation5 + $0xf8] sm:$0xff]   ;;  %v274_v39 = vld [vmem:[%s6461_s6 + $0x8] sm:$0xff]  ;;  %v338_v41 = vrot.slane %v273_v38, 7 }
  0x79   : > { %4907 = vmatpush3.bf16.msra.mxu1 %v5917_v14  ;;  %v5937_v35 = vld [vmem:[#allocation5 + $0xb8] sm:$0xff]   ;;  %v339_v42 = vrot.slane %v274_v39, 7  ;;  %v5939_v43 = vld [vmem:[#allocation5 + $0x100] sm:$0xff]   ;;  %v275_v44 = vld [vmem:[%s6461_s6 + $0x10] sm:$0xff]  ;;  %p6177_p12 = por %p6176_p9, %p6175_p7 }
  0x7a   : > { %4908 = vmatprep.subr.bf16.mxu1 %v5920_v17  ;;  %v276_v46 = vld [vmem:[%s6461_s6 + $0x18] sm:$0xff]  ;;  %v341_v47 = vrot.slane %v275_v44, 7  ;;  %vm6492_vm5 = vmpackc.low %vm6249_vm4, %vm6476_vm1  ;;  %v434_v51 = vsel %vm337_vm0, 0.0, %v338_v41  ;;  %v5940_v53 = vld [vmem:[#allocation5 + $0x148] sm:$0xff]  }
  0x7b   : > { %4797 = vmatpush3.bf16.msra.mxu0 %v5919_v16  ;;  %v340_v48 = vsel %vm337_vm0, %v338_v41, %v339_v42  ;;  %v450_v49 = vsel %vm337_vm0, %v339_v42, 0.0  ;;  %v342_v52 = vrot.slane %v276_v46, 7  ;;  %v500_v57 = vrot.slane %v434_v51, 1  ;;  %v5941_v58 = vld [vmem:[#allocation5 + $0x108] sm:$0xff]   ;;  %v277_v63 = vld [vmem:[%s6461_s6 + $0x20] sm:$0xff]  ;;  %v5942_v6 = vld [vmem:[#allocation5 + $0x150] sm:$0xff]   ;;  %p6178_p2 = pnand %p6177_p12, %p6171_p3 }
  0x7c   : > { %4798 = vmatprep.subr.bf16.mxu0 %v5922_v19  ;;  %v501_v54 = vrot.slane %v340_v48, 1  ;;  %v610_v55 = vrot.slane %v340_v48, 2  ;;  %v4344_v56 = vpack.c.bf16 %v340_v48, %v338_v41  ;;  %v503_v59 = vrot.slane %v450_v49, 1  ;;  %v278_v5 = vld [vmem:[%s6461_s6 + $0x28] sm:$0xff]  ;;  %v279_v11 = vld [vmem:[%s6461_s6 + $0x30] sm:$0xff]  ;;  %v5945_v36 = vld [vmem:[#allocation5 + $0x118] sm:$0xff]  }
  0x7d   : > { %4909 = vmatpush3.bf16.msra.mxu1 %v5921_v18  ;;  %v343_v60 = vsel %vm337_vm0, %v341_v47, %v342_v52  ;;  %v609_v61 = vrot.slane %v434_v51, 2  ;;  %v612_v62 = vrot.slane %v450_v49, 2  ;;  %v435_v3 = vsel %vm337_vm0, 0.0, %v341_v47  ;;  %v5943_v19 = vld [vmem:[#allocation5 + $0x110] sm:$0xff]   ;;  %v281_v42 = vld [vmem:[%s6461_s6 + $0x40] sm:$0xff]  ;;  %v282_v49 = vld [vmem:[%s6461_s6 + $0x48] sm:$0xff] }
  0x7e   : > { %4910 = vmatprep.subr.bf16.mxu1 %v5924_v21  ;;  %4405 = vmatprep.mubr.msk.bf16.mxu1 %vm6492_vm5, %v4344_v56  ;;  %v502_v0 = vsel %vm497_vm2, %v500_v57, %v501_v54  ;;  %v6502_v1 = vpack.c.bf16 %v343_v60, %v341_v47  ;;  %v451_v4 = vsel %vm337_vm0, %v342_v52, 0.0  ;;  %v504_v7 = vsel %vm497_vm2, %v501_v54, %v503_v59  ;;  %v5947_v54 = vld [vmem:[#allocation5 + $0x120] sm:$0xff]  }
  0x7f   : > { %4799 = vmatpush3.bf16.msra.mxu0 %v5923_v20  ;;  %v611_v8 = vsel %vm606_vm3, %v609_v61, %v610_v55  ;;  %v613_v9 = vsel %vm606_vm3, %v610_v55, %v612_v62  ;;  %v505_v10 = vrot.slane %v435_v3, 1  ;;  %v6512_v12 = vpack.c.bf16 %v504_v7, %v502_v0  ;;  %v5948_v61 = vld [vmem:[#allocation5 + $0x168] sm:$0xff]  }
  0x80   : > { %4800 = vmatprep.subr.bf16.mxu0 %v5926_v23  ;;  %v506_v13 = vrot.slane %v343_v60, 1  ;;  %v508_v14 = vrot.slane %v451_v4, 1  ;;  %v6517_v15 = vpack.c.bf16 %v613_v9, %v611_v8  ;;  %v344_v16 = vrot.slane %v277_v63, 7 }
  0x81   : > { %4911 = vmatpush3.bf16.msra.mxu1 %v5925_v22  ;;  %v345_v17 = vrot.slane %v278_v5, 7  ;;  %v614_v18 = vrot.slane %v435_v3, 2  ;;  %v615_v22 = vrot.slane %v343_v60, 2  ;;  %v617_v23 = vrot.slane %v451_v4, 2  ;;  %v5949_v5 = vld [vmem:[#allocation5 + $0x128] sm:$0xff]  }
  0x82   : > { %4912 = vmatprep.subr.bf16.mxu1 %v5928_v25  ;;  %v507_v20 = vsel %vm497_vm2, %v505_v10, %v506_v13  ;;  %v509_v21 = vsel %vm497_vm2, %v506_v13, %v508_v14  ;;  %v5944_v25 = vld [vmem:[#allocation5 + $0x158] sm:$0xff]   ;;  %v347_v29 = vrot.slane %v279_v11, 7  ;;  %v350_v59 = vrot.slane %v281_v42, 7  ;;  %v283_v10 = vld [vmem:[%s6461_s6 + $0x50] sm:$0xff] }
  0x83   : > { %4801 = vmatpush3.bf16.msra.mxu0 %v5927_v24  ;;  %v280_v24 = vld [vmem:[%s6461_s6 + $0x38] sm:$0xff]  ;;  %v616_v44 = vsel %vm606_vm3, %v614_v18, %v615_v22  ;;  %v618_v46 = vsel %vm606_vm3, %v615_v22, %v617_v23  ;;  %v351_v60 = vrot.slane %v282_v49, 7  ;;  %v5951_v18 = vld [vmem:[#allocation5 + $0x130] sm:$0xff]  }
  0x84   : > { %4802 = vmatprep.subr.bf16.mxu0 %v5930_v27  ;;  %v346_v27 = vsel %vm337_vm0, %v344_v16, %v345_v17  ;;  %v6560_v57 = vpack.c.bf16 %v618_v46, %v616_v44  ;;  %v6569_v3 = vsel %vm337_vm0, 0.0, %v350_v59  ;;  %v5956_v44 = vld [vmem:[#allocation5 + $0x1d0] sm:$0xff]  }
  0x85   : > { %4913 = vmatpush3.bf16.msra.mxu1 %v5929_v26  ;;  %v6525_v26 = vpack.c.bf16 %v509_v21, %v507_v20  ;;  %v6572_v4 = vsel %vm337_vm0, %v351_v60, 0.0  ;;  %v6578_v9 = vsel %vm337_vm0, %v350_v59, %v351_v60  ;;  %v520_v13 = vrot.slane %v6569_v3, 1  ;;  %v5952_v21 = vld [vmem:[#allocation5 + $0x1c0] sm:$0xff]   ;;  %v5958_v60 = vld [vmem:[#allocation5 + $0x1d8] sm:$0xff]  }
  0x86   : > { %4914 = vmatprep.subr.bf16.mxu1 %v5932_v30  ;;  %v6529_v30 = vpack.c.bf16 %v346_v27, %v344_v16  ;;  %v521_v14 = vrot.slane %v6578_v9, 1 }
  0x87   : > { %4803 = vmatpush3.bf16.msra.mxu0 %v5931_v28  ;;  %v436_v28 = vsel %vm337_vm0, 0.0, %v344_v16  ;;  %v523_v16 = vrot.slane %v6572_v4, 1 }
  0x88   : > { %4804 = vmatprep.subr.bf16.mxu0 %v5934_v32  ;;  %v510_v32 = vrot.slane %v436_v28, 1  ;;  %v619_v55 = vrot.slane %v436_v28, 2  ;;  %v6601_v28 = vpack.c.bf16 %v6578_v9, %v350_v59 }
  0x89   : > { %4915 = vmatpush3.bf16.msra.mxu1 %v5933_v31  ;;  %v452_v31 = vsel %vm337_vm0, %v345_v17, 0.0  ;;  %v284_v17 = vld [vmem:[%s6461_s6 + $0x58] sm:$0xff] }
  0x8a   : > { %4916 = vmatprep.subr.bf16.mxu1 %v5936_v34  ;;  %v513_v34 = vrot.slane %v452_v31, 1 }
  0x8b   : > { %4805 = vmatpush3.bf16.msra.mxu0 %v5935_v33  ;;  %v511_v33 = vrot.slane %v346_v27, 1 }
  0x8c   : > { %5014 = vmatprep.subr.bf16.mxu0 %v5938_v37  ;;  %v6534_v37 = vsel %vm337_vm0, 0.0, %v347_v29 }
  0x8d   : > { %4917 = vmatpush3.bf16.msra.mxu1 %v5937_v35  ;;  %v348_v35 = vrot.slane %v280_v24, 7  ;;  %v512_v38 = vsel %vm497_vm2, %v510_v32, %v511_v33  ;;  %v514_v39 = vsel %vm497_vm2, %v511_v33, %v513_v34  ;;  %v515_v51 = vrot.slane %v6534_v37, 1  ;;  %v286_v32 = vld [vmem:[%s6461_s6 + $0x68] sm:$0xff]  ;;  %v5953_v33 = vld [vmem:[#allocation5 + $0x180] sm:$0xff]  }
  0x8e   : > { %1398 = vmatmul.mubr.bf16.vlgmr.msra.gmra.mrb[0].mxu0 %v8784_v40  ;;  %v6548_v47 = vpack.c.bf16 %v514_v39, %v512_v38  ;;  %v353_v24 = vrot.slane %v283_v10, 7  ;;  %5126 = vmatprep.subr.bf16.mxu1 %v5952_v21  ;;  %v5954_v34 = vld [vmem:[#allocation5 + $0x1c8] sm:$0xff]  }
  0x8f   : > { %5015 = vmatpush3.bf16.msra.mxu0 %v5939_v43  ;;  %1405 = vmatprep.mubr.bf16.mxu0 %v6512_v12  ;;  %v6540_v41 = vsel %vm337_vm0, %v348_v35, 0.0  ;;  %v5946_v43 = vld [vmem:[#allocation5 + $0x160] sm:$0xff]   ;;  %v6551_v48 = vsel %vm337_vm0, %v347_v29, %v348_v35  ;;  %v5955_v38 = vld [vmem:[#allocation5 + $0x188] sm:$0xff]  }
  0x90   : > { %5016 = vmatprep.subr.bf16.mxu0 %v5940_v53  ;;  %1559 = vmatmul.mubr.bf16.vlgmr.msra.gmra.mrb[0].mxu1 %v6485_v45  ;;  %v516_v52 = vrot.slane %v6551_v48, 1  ;;  %v518_v53 = vrot.slane %v6540_v41, 1  ;;  %v6564_v62 = vpack.c.bf16 %v6551_v48, %v347_v29  ;;  %v625_v20 = vrot.slane %v6551_v48, 2  ;;  %v298_v40 = vld [vmem:[%s6461_s6 + $0xc8] sm:$0xff] }
  0x91   : > { %4409 = vmatprep.mubr.msk.bf16.mxu1 %vm6492_vm5, %v6502_v1  ;;  %v627_v23 = vrot.slane %v6540_v41, 2  ;;  %v522_v29 = vsel %vm497_vm2, %v520_v13, %v521_v14  ;;  %v6607_v35 = vsel %vm337_vm0, 0.0, %v353_v24  ;;  %5127 = vmatpush3.bf16.msra.mxu1 %v5953_v33 }
  0x92   : > { %v517_v63 = vsel %vm497_vm2, %v515_v51, %v516_v52  ;;  %v519_v0 = vsel %vm497_vm2, %v516_v52, %v518_v53  ;;  %5128 = vmatprep.subr.bf16.mxu1 %v5954_v34  ;;  %v525_v46 = vrot.slane %v6607_v35, 1  ;;  %v357_v52 = vrot.slane %v286_v32, 7  ;;  %v287_v53 = vld [vmem:[%s6461_s6 + $0x70] sm:$0xff] }
  0x93   : > { %5017 = vmatpush3.bf16.msra.mxu0 %v5941_v58  ;;  %v622_v58 = vrot.slane %v452_v31, 2  ;;  %v6584_v11 = vpack.c.bf16 %v519_v0, %v517_v63  ;;  %v524_v31 = vsel %vm497_vm2, %v521_v14, %v523_v16  ;;  %v628_v39 = vsel %vm606_vm3, %v625_v20, %v627_v23  ;;  %v288_v0 = vld [vmem:[%s6461_s6 + $0x78] sm:$0xff] }
  0x94   : > { %5018 = vmatprep.subr.bf16.mxu0 %v5942_v6  ;;  %v5950_v6 = vld [vmem:[#allocation5 + $0x170] sm:$0xff]   ;;  %v6615_v41 = vpack.c.bf16 %v524_v31, %v522_v29  ;;  %v634_v63 = vrot.slane %v6607_v35, 2  ;;  %v6657_v16 = vrot.slane %v287_v53, 7  ;;  %v360_v21 = vrot.slane %v288_v0, 7  ;;  %v5961_v29 = vld [vmem:[#allocation5 + $0x138] sm:$0xff]  }
  0x95   : > { %5129 = vmatpush3.bf16.msra.mxu1 %v5955_v38  ;;  %v5962_v38 = vld [vmem:[#allocation5 + $0x1e0] sm:$0xff]   ;;  %v292_v53 = vld [vmem:[%s6461_s6 + $0x98] sm:$0xff] }
  0x96   : > { %4345 = vmatmul.mubr.msk.bf16.gmra.mrb[4].mxu0 %vm6492_vm5, %v4344_v56  ;;  %v620_v56 = vrot.slane %v346_v27, 2  ;;  %v285_v27 = vld [vmem:[%s6461_s6 + $0x60] sm:$0xff]  ;;  %5130 = vmatprep.subr.bf16.mxu1 %v5956_v44  ;;  %v6674_v32 = vsel %vm337_vm0, 0.0, %v6657_v16  ;;  %v6677_v33 = vsel %vm337_vm0, %v360_v21, 0.0 }
  0x97   : > { %5019 = vmatpush3.bf16.msra.mxu0 %v5943_v19  ;;  %1413 = vmatprep.mubr.bf16.mxu0 %v6525_v26  ;;  %v624_v19 = vrot.slane %v6534_v37, 2  ;;  %v356_v51 = vrot.slane %v285_v27, 7  ;;  %v647_v0 = vrot.slane %v6677_v33, 2 }
  0x98   : > { %5020 = vmatprep.subr.bf16.mxu0 %v5944_v25  ;;  %1567 = vmatmul.mubr.bf16.gmra.mrb[4].mxu1 %v6517_v15  ;;  %v621_v7 = vsel %vm606_vm3, %v619_v55, %v620_v56  ;;  %v623_v8 = vsel %vm606_vm3, %v620_v56, %v622_v58  ;;  %v354_v25 = vrot.slane %v284_v17, 7  ;;  %v630_v56 = vrot.slane %v6578_v9, 2  ;;  %v5960_v9 = vld [vmem:[#allocation5 + $0x178] sm:$0xff]  }
  0x99   : > { %4413 = vmatprep.mubr.msk.bf16.mxu1 %vm6492_vm5, %v6529_v30  ;;  %v6595_v22 = vpack.c.bf16 %v623_v8, %v621_v7  ;;  %v626_v37 = vsel %vm606_vm3, %v624_v19, %v625_v20  ;;  %v632_v58 = vrot.slane %v6572_v4, 2  ;;  %v6636_v59 = vsel %vm337_vm0, 0.0, %v356_v51  ;;  %v290_v8 = vld [vmem:[%s6461_s6 + $0x88] sm:$0xff]  ;;  %v5959_v17 = vld [vmem:[#allocation5 + $0x198] sm:$0xff]  }
  0x9a   : > { %v6618_v42 = vsel %vm337_vm0, %v353_v24, %v354_v25  ;;  %v6631_v55 = vpack.c.bf16 %v628_v39, %v626_v37  ;;  %v6649_v7 = vsel %vm337_vm0, %v357_v52, 0.0  ;;  %v6653_v10 = vsel %vm337_vm0, %v356_v51, %v357_v52 }
  0x9b   : > { %5021 = vmatpush3.bf16.msra.mxu0 %v5945_v36  ;;  %v6610_v36 = vsel %vm337_vm0, %v354_v25, 0.0  ;;  %v526_v48 = vrot.slane %v6618_v42, 1  ;;  %v635_v4 = vrot.slane %v6618_v42, 2  ;;  %v530_v14 = vrot.slane %v6636_v59, 1 }
  0x9c   : > { %5022 = vmatprep.subr.bf16.mxu0 %v5946_v43  ;;  %v629_v43 = vrot.slane %v6569_v3, 2  ;;  %v528_v49 = vrot.slane %v6610_v36, 1  ;;  %v289_v3 = vld [vmem:[%s6461_s6 + $0x80] sm:$0xff]  ;;  %v637_v13 = vrot.slane %v6610_v36, 2  ;;  %v633_v19 = vsel %vm606_vm3, %v630_v56, %v632_v58  ;;  %v291_v36 = vld [vmem:[%s6461_s6 + $0x90] sm:$0xff] }
  0x9d   : > { %v531_v20 = vrot.slane %v6653_v10, 1  ;;  %v639_v25 = vrot.slane %v6636_v59, 2  ;;  %v640_v27 = vrot.slane %v6653_v10, 2  ;;  %v642_v31 = vrot.slane %v6649_v7, 2 }
  0x9e   : > { %4349 = vmatmul.mubr.msk.bf16.gmra.mrb[8].mxu0 %vm6492_vm5, %v6502_v1  ;;  %v6679_v34 = vrot.slane %v289_v3, 7  ;;  %v363_v37 = vrot.slane %v290_v8, 7  ;;  %v644_v58 = vrot.slane %v6674_v32, 2  ;;  %v293_v8 = vld [vmem:[%s6461_s6 + $0xa0] sm:$0xff] }
  0x9f   : > { %1421 = vmatprep.mubr.bf16.mxu0 %v6548_v47  ;;  %5023 = vmatpush3.bf16.msra.mxu0 %v5947_v54  ;;  %v5957_v54 = vld [vmem:[#allocation5 + $0x190] sm:$0xff]  }
  0xa0   : > { %5024 = vmatprep.subr.bf16.mxu0 %v5948_v61  ;;  %1575 = vmatmul.mubr.bf16.gmra.mrb[8].mxu1 %v6560_v57  ;;  %v6640_v61 = vpack.c.bf16 %v6618_v42, %v353_v24  ;;  %v533_v24 = vrot.slane %v6649_v7, 1  ;;  %v6688_v42 = vpack.c.bf16 %v6653_v10, %v356_v51  ;;  %v6696_v44 = vsel %vm337_vm0, 0.0, %v6679_v34 }
  0xa1   : > { %4417 = vmatprep.mubr.msk.bf16.mxu1 %vm6492_vm5, %v6564_v62  ;;  %5131 = vmatpush3.bf16.msra.mxu1 %v5957_v54  ;;  %v535_v51 = vrot.slane %v6674_v32, 1  ;;  %v5964_v54 = vld [vmem:[#allocation5 + $0x1e8] sm:$0xff]   ;;  %v6710_v3 = vsel %vm337_vm0, %v6679_v34, %v363_v37  ;;  %v6716_v7 = vrot.slane %v291_v36, 7  ;;  %v295_v36 = vld [vmem:[%s6461_s6 + $0xb0] sm:$0xff] }
  0xa2   : > { %5132 = vmatprep.subr.bf16.mxu1 %v5958_v60  ;;  %8831 = vst [vmem:[#allocation14_spill] sm:$0xff] %v6688_v42 }
  0xa3   : > { %5025 = vmatpush3.bf16.msra.mxu0 %v5949_v5  ;;  %v527_v5 = vsel %vm497_vm2, %v525_v46, %v526_v48  ;;  %v5963_v46 = vld [vmem:[#allocation5 + $0x1a0] sm:$0xff]  }
  0xa4   : > { %5026 = vmatprep.subr.bf16.mxu0 %v5950_v6  ;;  %v529_v6 = vsel %vm497_vm2, %v526_v48, %v528_v49  ;;  %v532_v48 = vsel %vm497_vm2, %v530_v14, %v531_v20  ;;  %v534_v49 = vsel %vm497_vm2, %v531_v20, %v533_v24  ;;  %v5965_v14 = vld [vmem:[#allocation5 + $0x1a8] sm:$0xff]   ;;  %v5966_v20 = vld [vmem:[#allocation5 + $0x1f0] sm:$0xff]   ;;  %v366_v24 = vrot.slane %v292_v53, 7 }
  0xa5   : > { %v6666_v23 = vpack.c.bf16 %v529_v6, %v527_v5  ;;  %5133 = vmatpush3.bf16.msra.mxu1 %v5959_v17  ;;  %v6713_v5 = vsel %vm337_vm0, %v363_v37, 0.0  ;;  %v540_v6 = vrot.slane %v6696_v44, 1  ;;  %v636_v17 = vsel %vm606_vm3, %v634_v63, %v635_v4  ;;  %v296_v37 = vld [vmem:[%s6461_s6 + $0xb8] sm:$0xff]  ;;  %v5967_v53 = vld [vmem:[#allocation5 + $0x1b0] sm:$0xff]  }
  0xa6   : > { %4353 = vmatmul.mubr.msk.bf16.gmra.mrb[12].mxu0 %vm6492_vm5, %v6529_v30  ;;  %5134 = vmatprep.subr.bf16.mxu1 %v5962_v38  ;;  %v543_v35 = vrot.slane %v6713_v5, 1 }
  0xa7   : > { %1429 = vmatprep.mubr.bf16.mxu0 %v6584_v11  ;;  %5027 = vmatpush3.bf16.msra.mxu0 %v5951_v18  ;;  %v631_v18 = vsel %vm606_vm3, %v629_v43, %v630_v56  ;;  %v6692_v43 = vsel %vm337_vm0, %v6657_v16, %v360_v21  ;;  %v538_v56 = vrot.slane %v6677_v33, 1  ;;  %v6729_v21 = vpack.c.bf16 %v534_v49, %v532_v48 }
  0xa8   : > { %1583 = vmatmul.mubr.bf16.gmra.mrb[12].mxu1 %v6595_v22  ;;  %5028 = vmatprep.subr.bf16.mxu0 %v5960_v9  ;;  %v6685_v39 = vpack.c.bf16 %v633_v19, %v631_v18  ;;  %v536_v52 = vrot.slane %v6692_v43, 1  ;;  %v645_v60 = vrot.slane %v6692_v43, 2  ;;  %v294_v9 = vld [vmem:[%s6461_s6 + $0xa8] sm:$0xff]  ;;  %v638_v18 = vsel %vm606_vm3, %v635_v4, %v637_v13  ;;  %v6783_v13 = vld [vmem:[#allocation5 + $0x200] sm:$0xff]  }
  0xa9   : > { %4421 = vmatprep.mubr.msk.bf16.mxu1 %vm6492_vm5, %v6601_v28  ;;  %5135 = vmatpush3.bf16.msra.mxu1 %v5963_v46  ;;  %v541_v19 = vrot.slane %v6710_v3, 1  ;;  %v6741_v38 = vpack.c.bf16 %v638_v18, %v636_v17  ;;  %v6744_v46 = vsel %vm337_vm0, %v366_v24, 0.0  ;;  %v6746_v48 = vrot.slane %v293_v8, 7  ;;  %v5968_v17 = vld [vmem:[#allocation5 + $0x1f8] sm:$0xff]  }
  0xaa   : > { %5136 = vmatprep.subr.bf16.mxu1 %v5964_v54  ;;  %v369_v49 = vrot.slane %v294_v9, 7  ;;  %v6753_v54 = vpack.c.bf16 %v6692_v43, %v6657_v16  ;;  %v641_v8 = vsel %vm606_vm3, %v639_v25, %v640_v27  ;;  %v643_v9 = vsel %vm606_vm3, %v640_v27, %v642_v31  ;;  %v300_v27 = vld [vmem:[%s6461_s6 + $0xd8] sm:$0xff] }
  0xab   : > { %5029 = vmatpush3.bf16.msra.mxu0 %v5961_v29  ;;  %v6733_v29 = vsel %vm337_vm0, 0.0, %v6716_v7  ;;  %v537_v16 = vsel %vm497_vm2, %v535_v51, %v536_v52  ;;  %v6768_v18 = vsel %vm337_vm0, %v6716_v7, %v366_v24  ;;  %v6772_v59 = vsel %vm337_vm0, 0.0, %v6746_v48  ;;  %v297_v51 = vld [vmem:[%s6461_s6 + $0xc0] sm:$0xff] }
  0xac   : > { %8832 = vst [vmem:[#allocation15_spill] sm:$0xff] %v6753_v54  ;;  %v6775_v10 = vsel %vm337_vm0, %v369_v49, 0.0  ;;  %v539_v25 = vsel %vm497_vm2, %v536_v52, %v538_v56  ;;  %v6787_v24 = vsel %vm337_vm0, %v6746_v48, %v369_v49  ;;  %v6790_v4 = vrot.slane %v295_v36, 7  ;;  %v299_v52 = vld [vmem:[%s6461_s6 + $0xd0] sm:$0xff]  ;;  %v5969_v56 = vld [vmem:[#allocation5 + $0x1b8] sm:$0xff]   ;;  %5734 = vmatprep.subr.bf16.mxu0 %v6783_v13 }
  0xad   : > { %5137 = vmatpush3.bf16.msra.mxu1 %v5965_v14  ;;  %v372_v14 = vrot.slane %v296_v37, 7  ;;  %v6801_v36 = vpack.c.bf16 %v539_v25, %v537_v16  ;;  %v6820_v25 = vrot.slane %v297_v51, 7  ;;  %v375_v31 = vrot.slane %v298_v40, 7 }
  0xae   : > { %4357 = vmatmul.mubr.msk.bf16.gmra.mrb[16].mxu0 %vm6492_vm5, %v6564_v62  ;;  %5138 = vmatprep.subr.bf16.mxu1 %v5966_v20  ;;  %v6805_v37 = vsel %vm337_vm0, 0.0, %v6790_v4  ;;  %v6811_v20 = vpack.c.bf16 %v643_v9, %v641_v8  ;;  %v6829_v63 = vrot.slane %v299_v52, 7  ;;  %v6834_v40 = vpack.c.bf16 %v6710_v3, %v6679_v34 }
  0xaf   : > { %1437 = vmatprep.mubr.bf16.mxu0 %v6615_v41  ;;  %8833 = vst [vmem:[#allocation16_spill] sm:$0xff] %v6801_v36  ;;  %v6817_v49 = vsel %vm337_vm0, %v6790_v4, %v372_v14  ;;  %v6838_v51 = vsel %vm337_vm0, 0.0, %v6820_v25  ;;  %v646_v52 = vsel %vm606_vm3, %v644_v58, %v645_v60  ;;  %v648_v34 = vsel %vm606_vm3, %v645_v60, %v647_v0  ;;  %v301_v0 = vld [vmem:[%s6461_s6 + $0xe0] sm:$0xff] }
  0xb0   : > { %1591 = vmatmul.mubr.bf16.gmra.mrb[16].mxu1 %v6631_v55  ;;  %v542_v16 = vsel %vm497_vm2, %v540_v6, %v541_v19  ;;  %v544_v32 = vsel %vm497_vm2, %v541_v19, %v543_v35  ;;  %v6865_v58 = vsel %vm337_vm0, %v6820_v25, %v375_v31  ;;  %v378_v60 = vrot.slane %v300_v27, 7  ;;  %v303_v35 = vld [vmem:[%s6461_s6 + $0xf0] sm:$0xff] }
  0xb1   : > { %4425 = vmatprep.mubr.msk.bf16.mxu1 %vm6492_vm5, %v6640_v61  ;;  %5139 = vmatpush3.bf16.msra.mxu1 %v5967_v53  ;;  %v6808_v53 = vsel %vm337_vm0, %v372_v14, 0.0  ;;  %v6877_v19 = vsel %vm337_vm0, 0.0, %v6829_v63  ;;  %v6883_v27 = vpack.c.bf16 %v544_v32, %v542_v16  ;;  %v6889_v6 = vpack.c.bf16 %v648_v34, %v646_v52 }
  0xb2   : > { %5140 = vmatprep.subr.bf16.mxu1 %v5968_v17  ;;  %v302_v17 = vld [vmem:[%s6461_s6 + $0xe8] sm:$0xff]  ;;  %v6887_v33 = vsel %vm337_vm0, %v378_v60, 0.0  ;;  %v6895_v8 = vpack.c.bf16 %v6768_v18, %v6716_v7  ;;  %v6899_v9 = vsel %vm337_vm0, %v6829_v63, %v378_v60  ;;  %v565_v32 = vrot.slane %v6877_v19, 1 }
  0xb3   : > { %8834 = vst [vmem:[#allocation17_spill] sm:$0xff] %v6883_v27  ;;  %v566_v52 = vrot.slane %v6899_v9, 1  ;;  %v568_v34 = vrot.slane %v6887_v33, 1  ;;  %v6908_v43 = vrot.slane %v301_v0, 7  ;;  %v381_v7 = vrot.slane %v302_v17, 7 }
  0xb4   : > { %v6914_v45 = vrot.slane %v303_v35, 7  ;;  %v8835_v2 = vrot.slane %v6768_v18, 1  ;;  %v8837_v0 = vrot.slane %v6744_v46, 1  ;;  %v8839_v35 = vrot.slane %v6710_v3, 2 }
  0xb5   : > { %5141 = vmatpush3.bf16.msra.mxu1 %v5969_v56  ;;  %v6841_v56 = vsel %vm337_vm0, %v375_v31, 0.0  ;;  %v8840_v16 = vrot.slane %v6696_v44, 2  ;;  %v6950_v44 = vpack.c.bf16 %v6787_v24, %v6746_v48  ;;  %v8844_v3 = vrot.slane %v6772_v59, 1 }
  0xb6   : > { %4361 = vmatmul.mubr.msk.bf16.gmra.mrb[20].mxu0 %vm6492_vm5, %v6601_v28  ;;  %v563_v31 = vrot.slane %v6841_v56, 1  ;;  %v8838_v17 = vmov %v8835_v2  ;;  %v8847_v48 = vrot.slane %v6768_v18, 2  ;;  %v8852_v18 = vrot.slane %v6817_v49, 1 }
  0xb7   : > { %1445 = vmatprep.mubr.bf16.mxu0 %v6666_v23  ;;  %v651_v60 = vsel %vm606_vm3, %v8840_v16, %v8839_v35 }
  0xb8   : > { %1599 = vmatmul.mubr.bf16.gmra.mrb[20].mxu1 %v6685_v39 }
  0xb9   : > { %4429 = vmatprep.mubr.msk.bf16.mxu1 %vm6492_vm5, %v6688_v42 }
  0xbe   : > { %4365 = vmatmul.mubr.msk.bf16.gmra.mrb[24].mxu0 %vm6492_vm5, %v6640_v61 }
  0xbf   : > { %1453 = vmatprep.mubr.bf16.mxu0 %v6729_v21 }
  0xc0   : > { %1607 = vmatmul.mubr.bf16.gmra.mrb[24].mxu1 %v6741_v38 }
  0xc1   : > { %4433 = vmatprep.mubr.msk.bf16.mxu1 %vm6492_vm5, %v6753_v54 }
  0xc6   : > { %4369 = vmatmul.mubr.msk.bf16.gmra.mrb[28].mxu0 %vm6492_vm5, %v6688_v42 }
  0xc7   : > { %1461 = vmatprep.mubr.bf16.mxu0 %v6801_v36 }
  0xc8   : > { %1615 = vmatmul.mubr.bf16.gmra.mrb[28].mxu1 %v6811_v20 }
  0xc9   : > { %4437 = vmatprep.mubr.msk.bf16.mxu1 %vm6492_vm5, %v6834_v40 }
  0xce   : > { %4373 = vmatmul.mubr.msk.bf16.gmra.mrb[32].mxu0 %vm6492_vm5, %v6753_v54  ;;  %v8836_v54 = vrot.slane %v6733_v29, 1 }
  0xcf   : > { %1469 = vmatprep.mubr.bf16.mxu0 %v6883_v27  ;;  %v549_v27 = vsel %vm497_vm2, %v8838_v17, %v8837_v0 }
  0xd0   : > { %v547_v36 = vsel %vm497_vm2, %v8836_v54, %v8835_v2  ;;  %1623 = vmatmul.mubr.bf16.gmra.mrb[32].mxu1 %v6889_v6  ;;  %v8841_v2 = vrot.slane %v6713_v5, 2  ;;  %v8842_v54 = vmov %v8839_v35  ;;  %v8843_v5 = vrot.slane %v6787_v24, 1 }
  0xd1   : > { %4441 = vmatprep.mubr.msk.bf16.mxu1 %vm6492_vm5, %v6895_v8  ;;  %v6940_v42 = vpack.c.bf16 %v549_v27, %v547_v36  ;;  %v8845_v36 = vrot.slane %v6775_v10, 1  ;;  %v8849_v35 = vrot.slane %v6744_v46, 2  ;;  %v6993_v46 = vpack.c.bf16 %v6817_v49, %v6790_v4 }
  0xd2   : > { %v653_v14 = vsel %vm606_vm3, %v8842_v54, %v8841_v2  ;;  %v552_v16 = vsel %vm497_vm2, %v8844_v3, %v8843_v5  ;;  %v8846_v27 = vmov %v8843_v5  ;;  %v8850_v2 = vmov %v8847_v48 }
  0xd3   : > { %v6945_v0 = vpack.c.bf16 %v653_v14, %v651_v60  ;;  %v554_v17 = vsel %vm497_vm2, %v8846_v27, %v8845_v36  ;;  %v8848_v14 = vrot.slane %v6733_v29, 2  ;;  %v658_v54 = vsel %vm606_vm3, %v8850_v2, %v8849_v35 }
  0xd4   : > { %v6976_v5 = vpack.c.bf16 %v554_v17, %v552_v16  ;;  %v6985_v36 = vsel %vm337_vm0, 0.0, %v6908_v43  ;;  %v6988_v29 = vsel %vm337_vm0, %v381_v7, 0.0  ;;  %v8853_v16 = vrot.slane %v6805_v37, 1 }
  0xd5   : > { %v656_v60 = vsel %vm606_vm3, %v8848_v14, %v8847_v48  ;;  %v8854_v17 = vrot.slane %v6808_v53, 1  ;;  %v8855_v48 = vmov %v8852_v18  ;;  %v570_v4 = vrot.slane %v6985_v36, 1 }
  0xd6   : > { %4377 = vmatmul.mubr.msk.bf16.gmra.mrb[36].mxu0 %vm6492_vm5, %v6834_v40  ;;  %8851 = vst [vmem:[#allocation18_spill] sm:$0xff] %v6976_v5  ;;  %v6981_v3 = vpack.c.bf16 %v658_v54, %v656_v60  ;;  %v557_v27 = vsel %vm497_vm2, %v8853_v16, %v8852_v18  ;;  %v7007_v60 = vsel %vm337_vm0, %v6908_v43, %v381_v7  ;;  %v8856_v2 = vrot.slane %v6787_v24, 2 }
  0xd7   : > { %1477 = vmatprep.mubr.bf16.mxu0 %v6940_v42  ;;  %v559_v14 = vsel %vm497_vm2, %v8855_v48, %v8854_v17  ;;  %v571_v35 = vrot.slane %v7007_v60, 1  ;;  %v8857_v54 = vrot.slane %v6772_v59, 2  ;;  %v8858_v7 = vrot.slane %v6775_v10, 2 }
  0xd8   : > { %1631 = vmatmul.mubr.bf16.gmra.mrb[36].mxu1 %v6945_v0  ;;  %v8859_v16 = vmov %v8856_v2  ;;  %v7025_v48 = vpack.c.bf16 %v559_v14, %v557_v27  ;;  %v7035_v59 = vpack.c.bf16 %v6865_v58, %v6820_v25  ;;  %v8860_v10 = vrot.slane %v6865_v58, 1 }
  0xd9   : > { %4445 = vmatprep.mubr.msk.bf16.mxu1 %vm6492_vm5, %v6950_v44  ;;  %v661_v18 = vsel %vm606_vm3, %v8857_v54, %v8856_v2  ;;  %v663_v17 = vsel %vm606_vm3, %v8859_v16, %v8858_v7  ;;  %v8861_v24 = vrot.slane %v6838_v51, 1  ;;  %v8863_v54 = vrot.slane %v6817_v49, 2 }
  0xda   : > { %v8862_v27 = vmov %v8860_v10  ;;  %v8864_v25 = vrot.slane %v6805_v37, 2  ;;  %v8865_v7 = vrot.slane %v6808_v53, 2  ;;  %v7070_v37 = vpack.c.bf16 %v6899_v9, %v6829_v63 }
  0xdb   : > { %v562_v2 = vsel %vm497_vm2, %v8861_v24, %v8860_v10  ;;  %v564_v14 = vsel %vm497_vm2, %v8862_v27, %v563_v31  ;;  %v8866_v16 = vmov %v8863_v54  ;;  %v304_v31 = vld [vmem:[%s6461_s6 + $0xf8] sm:$0xff]  ;;  %v567_v53 = vsel %vm497_vm2, %v565_v32, %v566_v52 }
  0xdc   : > { %v7059_v10 = vpack.c.bf16 %v564_v14, %v562_v2  ;;  %v569_v49 = vsel %vm497_vm2, %v566_v52, %v568_v34  ;;  %v573_v2 = vrot.slane %v6988_v29, 1  ;;  %v384_v27 = vrot.slane %v304_v31, 7 }
  0xdd   : > { %v8867_v14 = vrot.slane %v6865_v58, 2  ;;  %v7089_v34 = vpack.c.bf16 %v569_v49, %v567_v53  ;;  %v8873_v31 = vrot.slane %v6887_v33, 2 }
  0xde   : > { %4381 = vmatmul.mubr.msk.bf16.gmra.mrb[40].mxu0 %vm6492_vm5, %v6895_v8  ;;  %v574_v58 = vsel %vm497_vm2, %v571_v35, %v573_v2 }
  0xdf   : > { %1485 = vmatprep.mubr.bf16.mxu0 %v6976_v5  ;;  %v7030_v5 = vpack.c.bf16 %v663_v17, %v661_v18  ;;  %v666_v18 = vsel %vm606_vm3, %v8864_v25, %v8863_v54  ;;  %v668_v17 = vsel %vm606_vm3, %v8866_v16, %v8865_v7  ;;  %v8868_v54 = vrot.slane %v6838_v51, 2 }
  0xe0   : > { %1639 = vmatmul.mubr.bf16.gmra.mrb[40].mxu1 %v6981_v3  ;;  %v7065_v24 = vpack.c.bf16 %v668_v17, %v666_v18  ;;  %v8869_v25 = vrot.slane %v6841_v56, 2  ;;  %v8870_v32 = vmov %v8867_v14  ;;  %v7099_v51 = vpack.c.bf16 %v7007_v60, %v6908_v43 }
  0xe1   : > { %4449 = vmatprep.mubr.msk.bf16.mxu1 %vm6492_vm5, %v6993_v46  ;;  %v671_v63 = vsel %vm606_vm3, %v8868_v54, %v8867_v14  ;;  %v572_v56 = vsel %vm497_vm2, %v570_v4, %v571_v35  ;;  %v8871_v7 = vrot.slane %v6899_v9, 2  ;;  %v8872_v16 = vrot.slane %v6877_v19, 2 }
  0xe2   : > { %v673_v52 = vsel %vm606_vm3, %v8870_v32, %v8869_v25  ;;  %v7117_v43 = vpack.c.bf16 %v574_v58, %v572_v56  ;;  %v385_v4 = vsel %vm337_vm0, %v6914_v45, %v384_v27  ;;  %v449_v19 = vsel %vm337_vm0, 0.0, %v6914_v45 }
  0xe3   : > { %v7094_v18 = vpack.c.bf16 %v673_v52, %v671_v63  ;;  %v676_v17 = vsel %vm606_vm3, %v8872_v16, %v8871_v7  ;;  %v8874_v53 = vmov %v8871_v7  ;;  %v465_v35 = vsel %vm337_vm0, %v384_v27, 0.0 }
  0xe4   : > { %v678_v49 = vsel %vm606_vm3, %v8874_v53, %v8873_v31  ;;  %v717_v2 = vrot.slane %v449_v19, 1  ;;  %v718_v33 = vrot.slane %v385_v4, 1  ;;  %v720_v14 = vrot.slane %v465_v35, 1  ;;  %v5971_v53 = vld [vmem:[#allocation5 + $0x208] sm:$0xff]  }
  0xe5   : > { %v7127_v9 = vpack.c.bf16 %v678_v49, %v676_v17  ;;  %v679_v54 = vrot.slane %v6985_v36, 2  ;;  %v7134_v32 = vpack.c.bf16 %v385_v4, %v6914_v45  ;;  %v680_v27 = vrot.slane %v7007_v60, 2  ;;  %v5972_v49 = vld [vmem:[#allocation5 + $0x210] sm:$0xff]  }
  0xe6   : > { %4385 = vmatmul.mubr.msk.bf16.gmra.mrb[44].mxu0 %vm6492_vm5, %v6950_v44  ;;  %v719_v63 = vsel %vm497_vm2, %v717_v2, %v718_v33  ;;  %v721_v25 = vsel %vm497_vm2, %v718_v33, %v720_v14  ;;  %v682_v52 = vrot.slane %v6988_v29, 2  ;;  %v724_v58 = vrot.slane %v449_v19, 2 }
  0xe7   : > { %1493 = vmatprep.mubr.bf16.mxu0 %v7025_v48  ;;  %v7138_v56 = vpack.c.bf16 %v721_v25, %v719_v63  ;;  %v725_v7 = vrot.slane %v385_v4, 2  ;;  %v727_v36 = vrot.slane %v465_v35, 2  ;;  %v681_v16 = vsel %vm606_vm3, %v679_v54, %v680_v27 }
  0xe8   : > { %1647 = vmatmul.mubr.bf16.gmra.mrb[44].mxu1 %v7030_v5  ;;  %v683_v45 = vsel %vm606_vm3, %v680_v27, %v682_v52 }
  0xe9   : > { %4453 = vmatprep.mubr.msk.bf16.mxu1 %vm6492_vm5, %v7035_v59  ;;  %v726_v17 = vsel %vm606_vm3, %v724_v58, %v725_v7  ;;  %v728_v60 = vsel %vm606_vm3, %v725_v7, %v727_v36  ;;  %v7153_v31 = vpack.c.bf16 %v683_v45, %v681_v16  ;;  %v5978_v45 = vld [vmem:[#allocation7 + $0x40] sm:$0xff]  }
  0xea   : > { %v7148_v29 = vpack.c.bf16 %v728_v60, %v726_v17  ;;  %v5979_v17 = vld [vmem:[#allocation7] sm:$0xff]   ;;  %5262 = vmatprep.subr.bf16.mxu1 %v5978_v45 }
  0xee   : > { %4389 = vmatmul.mubr.msk.bf16.gmra.mrb[48].mxu0 %vm6492_vm5, %v6993_v46 }
  0xef   : > { %1501 = vmatprep.mubr.bf16.mxu0 %v7059_v10 }
  0xf0   : > { %1655 = vmatmul.mubr.bf16.gmra.mrb[48].mxu1 %v7065_v24 }
  0xf1   : > { %4457 = vmatprep.mubr.msk.bf16.mxu1 %vm6492_vm5, %v7070_v37 }
  0xf6   : > { %4393 = vmatmul.mubr.msk.bf16.gmra.mrb[52].mxu0 %vm6492_vm5, %v7035_v59 }
  0xf7   : > { %1509 = vmatprep.mubr.bf16.mxu0 %v7089_v34 }
  0xf8   : > { %1663 = vmatmul.mubr.bf16.gmra.mrb[52].mxu1 %v7094_v18 }
  0xf9   : > { %4461 = vmatprep.mubr.msk.bf16.mxu1 %vm6492_vm5, %v7099_v51 }
  0xfe   : > { %4397 = vmatmul.mubr.msk.bf16.gmra.mrb[56].mxu0 %vm6492_vm5, %v7070_v37 }
  0xff   : > { %1517 = vmatprep.mubr.bf16.mxu0 %v7117_v43 }
 0x100   : > { %1671 = vmatmul.mubr.bf16.gmra.mrb[56].mxu1 %v7127_v9 }
 0x101   : > { %4465 = vmatprep.mubr.msk.bf16.mxu1 %vm6492_vm5, %v7134_v32 }
 0x106   : > { %4401 = vmatmul.mubr.msk.bf16.gmra.mrb[60].mxu0 %vm6492_vm5, %v7099_v51 }
 0x107   : > { %1719 = vmatprep.mubr.bf16.mxu0 %v6517_v15  ;;  %v5973_v15 = vld [vmem:[#allocation5 + $0x218] sm:$0xff]  }
 0x108   : > { %1679 = vmatmul.mubr.bf16.gmra.mrb[60].mxu1 %v7153_v31 }
 0x109   : > { %1880 = vmatprep.mubr.bf16.mxu1 %v6525_v26 }
 0x10e   : > { %1720 = vmatmul.mubr.bf16.vlgmr.msra.gmra.mrb[64].mxu0 %v6512_v12  ;;  %v5974_v12 = vld [vmem:[#allocation5 + $0x220] sm:$0xff]  }
 0x10f   : > { %5735 = vmatpush3.bf16.msra.mxu0 %v6783_v13  ;;  %1727 = vmatprep.mubr.bf16.mxu0 %v6560_v57 }
 0x110   : > { %5736 = vmatprep.subr.bf16.mxu0 %v5971_v53  ;;  %4469 = vmatmul.mubr.msk.bf16.vlgmr.msra.gmra.mrb[64].mxu1 %vm6492_vm5, %v6502_v1  ;;  %v5975_v1 = vld [vmem:[#allocation5 + $0x228] sm:$0xff]  }
 0x111   : > { %1888 = vmatprep.mubr.bf16.mxu1 %v6548_v47  ;;  %5263 = vmatpush3.bf16.msra.mxu1 %v5979_v17 }
 0x113   : > { %5737 = vmatpush3.bf16.msra.mxu0 %v5971_v53 }
 0x114   : > { %5738 = vmatprep.subr.bf16.mxu0 %v5972_v49 }
 0x116   : > { %1728 = vmatmul.mubr.bf16.gmra.mrb[68].mxu0 %v6525_v26  ;;  %v5976_v26 = vld [vmem:[#allocation5 + $0x230] sm:$0xff]  }
 0x117   : > { %1735 = vmatprep.mubr.bf16.mxu0 %v6595_v22  ;;  %5739 = vmatpush3.bf16.msra.mxu0 %v5972_v49 }
 0x118   : > { %5740 = vmatprep.subr.bf16.mxu0 %v5973_v15  ;;  %4473 = vmatmul.mubr.msk.bf16.gmra.mrb[68].mxu1 %vm6492_vm5, %v6529_v30  ;;  %v5977_v30 = vld [vmem:[#allocation5 + $0x238] sm:$0xff]  }
 0x119   : > { %1896 = vmatprep.mubr.bf16.mxu1 %v6584_v11 }
 0x11b   : > { %5741 = vmatpush3.bf16.msra.mxu0 %v5973_v15 }
 0x11c   : > { %5742 = vmatprep.subr.bf16.mxu0 %v5974_v12 }
 0x11e   : > { %1736 = vmatmul.mubr.bf16.gmra.mrb[72].mxu0 %v6548_v47  ;;  %v8875_v47 = vld [vmem:[#allocation14_spill] sm:$0xff] }
 0x11f   : > { %1743 = vmatprep.mubr.bf16.mxu0 %v6631_v55  ;;  %5743 = vmatpush3.bf16.msra.mxu0 %v5974_v12 }
 0x120   : > { %5744 = vmatprep.subr.bf16.mxu0 %v5975_v1  ;;  %4477 = vmatmul.mubr.msk.bf16.gmra.mrb[72].mxu1 %vm6492_vm5, %v6564_v62  ;;  %v8876_v62 = vld [vmem:[#allocation16_spill] sm:$0xff] }
 0x121   : > { %1904 = vmatprep.mubr.bf16.mxu1 %v6615_v41 }
 0x123   : > { %5745 = vmatpush3.bf16.msra.mxu0 %v5975_v1 }
 0x124   : > { %5746 = vmatprep.subr.bf16.mxu0 %v5976_v26 }
 0x126   : > { %1744 = vmatmul.mubr.bf16.gmra.mrb[76].mxu0 %v6584_v11  ;;  %v8877_v11 = vld [vmem:[#allocation15_spill] sm:$0xff] }
 0x127   : > { %1751 = vmatprep.mubr.bf16.mxu0 %v6685_v39  ;;  %5747 = vmatpush3.bf16.msra.mxu0 %v5976_v26 }
 0x128   : > { %5748 = vmatprep.subr.bf16.mxu0 %v5977_v30  ;;  %4481 = vmatmul.mubr.msk.bf16.gmra.mrb[76].mxu1 %vm6492_vm5, %v6601_v28  ;;  %v8878_v28 = vld [vmem:[#allocation17_spill] sm:$0xff] }
 0x129   : > { %1912 = vmatprep.mubr.bf16.mxu1 %v6666_v23 }
 0x12b   : > { %5749 = vmatpush3.bf16.msra.mxu0 %v5977_v30 }
 0x12e   : > { %1752 = vmatmul.mubr.bf16.gmra.mrb[80].mxu0 %v6615_v41  ;;  %v8879_v41 = vld [vmem:[#allocation18_spill] sm:$0xff] }
 0x12f   : > { %1759 = vmatprep.mubr.bf16.mxu0 %v6741_v38 }
 0x130   : > { %4485 = vmatmul.mubr.msk.bf16.gmra.mrb[80].mxu1 %vm6492_vm5, %v6640_v61 }
 0x131   : > { %1920 = vmatprep.mubr.bf16.mxu1 %v6729_v21 }
 0x136   : > { %1760 = vmatmul.mubr.bf16.gmra.mrb[84].mxu0 %v6666_v23 }
 0x137   : > { %1767 = vmatprep.mubr.bf16.mxu0 %v6811_v20 }
 0x138   : > { %4489 = vmatmul.mubr.msk.bf16.gmra.mrb[84].mxu1 %vm6492_vm5, %v8875_v47 }
 0x139   : > { %1928 = vmatprep.mubr.bf16.mxu1 %v8876_v62 }
 0x13e   : > { %1768 = vmatmul.mubr.bf16.gmra.mrb[88].mxu0 %v6729_v21 }
 0x13f   : > { %1775 = vmatprep.mubr.bf16.mxu0 %v6889_v6 }
 0x140   : > { %4493 = vmatmul.mubr.msk.bf16.gmra.mrb[88].mxu1 %vm6492_vm5, %v8877_v11 }
 0x141   : > { %1936 = vmatprep.mubr.bf16.mxu1 %v8878_v28 }
 0x146   : > { %1776 = vmatmul.mubr.bf16.gmra.mrb[92].mxu0 %v8876_v62 }
 0x147   : > { %1783 = vmatprep.mubr.bf16.mxu0 %v6945_v0 }
 0x148   : > { %4497 = vmatmul.mubr.msk.bf16.gmra.mrb[92].mxu1 %vm6492_vm5, %v6834_v40 }
 0x149   : > { %1944 = vmatprep.mubr.bf16.mxu1 %v6940_v42 }
 0x14e   : > { %1784 = vmatmul.mubr.bf16.gmra.mrb[96].mxu0 %v8878_v28 }
 0x14f   : > { %1791 = vmatprep.mubr.bf16.mxu0 %v6981_v3 }
 0x150   : > { %4501 = vmatmul.mubr.msk.bf16.gmra.mrb[96].mxu1 %vm6492_vm5, %v6895_v8 }
 0x151   : > { %1952 = vmatprep.mubr.bf16.mxu1 %v8879_v41 }
 0x156   : > { %1792 = vmatmul.mubr.bf16.gmra.mrb[100].mxu0 %v6940_v42  ;;  %v7227_v42 = vld [vmem:[%s8777_s2] ss:$0 sm:$0xff] }
 0x157   : > { %1799 = vmatprep.mubr.bf16.mxu0 %v7030_v5 }
 0x158   : > { %4505 = vmatmul.mubr.msk.bf16.gmra.mrb[100].mxu1 %vm6492_vm5, %v6950_v44 }
 0x159   : > { %1960 = vmatprep.mubr.bf16.mxu1 %v7025_v48 }
 0x15e   : > { %1800 = vmatmul.mubr.bf16.gmra.mrb[104].mxu0 %v8879_v41 }
 0x15f   : > { %1807 = vmatprep.mubr.bf16.mxu0 %v7065_v24 }
 0x160   : > { %4509 = vmatmul.mubr.msk.bf16.gmra.mrb[104].mxu1 %vm6492_vm5, %v6993_v46 }
 0x161   : > { %v4806_v61 = vpop.f32.mrb[0].mxu0  ;;  %1968 = vmatprep.mubr.bf16.mxu1 %v7059_v10 }
 0x162   : > { %v4807_v23 = vpop.f32.mrb[1].mxu0 }
 0x163   : > { %v4808_v21 = vadd.f32 %v4807_v23, %v4806_v61  ;;  %v4809_v13 = vpop.f32.mrb[2].mxu0  ;;  %v4918_v4 = vpop.f32.mrb[0].mxu1 }
 0x164   : > { %v4810_v8 = vpop.f32.mrb[3].mxu0  ;;  %v4919_v19 = vpop.f32.mrb[1].mxu1 }
 0x165   : > { %v4811_v40 = vadd.f32 %v4810_v8, %v4809_v13  ;;  %v1400_v44 = vadd.f32 %v4808_v21, %v7227_v42  ;;  %v4920_v2 = vadd.f32 %v4919_v19, %v4918_v4  ;;  %v4921_v33 = vpop.f32.mrb[2].mxu1 }
 0x166   : > { %1808 = vmatmul.mubr.bf16.gmra.mrb[108].mxu0 %v7025_v48  ;;  %v4922_v46 = vpop.f32.mrb[3].mxu1 }
 0x167   : > { %v1403_v35 = vadd.f32 %v4811_v40, %v7227_v42  ;;  %1815 = vmatprep.mubr.bf16.mxu0 %v7094_v18  ;;  %v4923_v14 = vadd.f32 %v4922_v46, %v4921_v33  ;;  %v7234_v63 = vadd.f32 %v4920_v2, %v1400_v44 }
 0x168   : > { %4513 = vmatmul.mubr.msk.bf16.gmra.mrb[108].mxu1 %vm6492_vm5, %v7035_v59 }
 0x169   : > { %v4812_v54 = vpop.f32.mrb[4].mxu0  ;;  %1976 = vmatprep.mubr.bf16.mxu1 %v7089_v34  ;;  %v7240_v48 = vadd.f32 %v4923_v14, %v1403_v35 }
 0x16a   : > { %v4813_v25 = vpop.f32.mrb[5].mxu0 }
 0x16b   : > { %v4814_v27 = vadd.f32 %v4813_v25, %v4812_v54  ;;  %v4815_v52 = vpop.f32.mrb[6].mxu0  ;;  %v4924_v36 = vpop.f32.mrb[4].mxu1  ;;  %v5980_v25 = vld [vmem:[#allocation7 + $0x48] sm:$0xff]  }
 0x16c   : > { %v4816_v58 = vpop.f32.mrb[7].mxu0  ;;  %v4925_v60 = vpop.f32.mrb[5].mxu1  ;;  %5264 = vmatprep.subr.bf16.mxu1 %v5980_v25 }
 0x16d   : > { %v1408_v7 = vadd.f32 %v4814_v27, %v7227_v42  ;;  %v4817_v16 = vadd.f32 %v4816_v58, %v4815_v52  ;;  %v4926_v59 = vadd.f32 %v4925_v60, %v4924_v36  ;;  %v4927_v49 = vpop.f32.mrb[6].mxu1  ;;  %v5981_v27 = vld [vmem:[#allocation7 + $0x8] sm:$0xff]  }
 0x16e   : > { %1816 = vmatmul.mubr.bf16.gmra.mrb[112].mxu0 %v7059_v10  ;;  %v4928_v15 = vpop.f32.mrb[7].mxu1  ;;  %5265 = vmatpush3.bf16.msra.mxu1 %v5981_v27 }
 0x16f   : > { %v1411_v53 = vadd.f32 %v4817_v16, %v7227_v42  ;;  %1823 = vmatprep.mubr.bf16.mxu0 %v7127_v9  ;;  %v4929_v12 = vadd.f32 %v4928_v15, %v4927_v49  ;;  %v7246_v26 = vadd.f32 %v4926_v59, %v1408_v7  ;;  %v8880_v59 = vld [vmem:[#allocation12_spill] sm:$0xff] }
 0x170   : > { %4517 = vmatmul.mubr.msk.bf16.gmra.mrb[112].mxu1 %vm6492_vm5, %v7070_v37 }
 0x171   : > { %v4818_v1 = vpop.f32.mrb[8].mxu0  ;;  %1984 = vmatprep.mubr.bf16.mxu1 %v7117_v43  ;;  %v7252_v62 = vadd.f32 %v4929_v12, %v1411_v53 }
 0x172   : > { %v4819_v30 = vpop.f32.mrb[9].mxu0 }
 0x173   : > { %v4820_v47 = vadd.f32 %v4819_v30, %v4818_v1  ;;  %v4821_v10 = vpop.f32.mrb[10].mxu0  ;;  %v4930_v41 = vpop.f32.mrb[8].mxu1 }
 0x174   : > { %v4822_v11 = vpop.f32.mrb[11].mxu0  ;;  %v4931_v23 = vpop.f32.mrb[9].mxu1 }
 0x175   : > { %v1416_v28 = vadd.f32 %v4820_v47, %v7227_v42  ;;  %v4823_v61 = vadd.f32 %v4822_v11, %v4821_v10  ;;  %v4932_v13 = vadd.f32 %v4931_v23, %v4930_v41  ;;  %v4933_v8 = vpop.f32.mrb[10].mxu1 }
 0x176   : > { %1824 = vmatmul.mubr.bf16.gmra.mrb[116].mxu0 %v7089_v34  ;;  %v4934_v37 = vpop.f32.mrb[11].mxu1 }
 0x177   : > { %v1419_v21 = vadd.f32 %v4823_v61, %v7227_v42  ;;  %1831 = vmatprep.mubr.bf16.mxu0 %v7153_v31  ;;  %v4935_v40 = vadd.f32 %v4934_v37, %v4933_v8  ;;  %v7258_v4 = vadd.f32 %v4932_v13, %v1416_v28 }
 0x178   : > { %4521 = vmatmul.mubr.msk.bf16.gmra.mrb[116].mxu1 %vm6492_vm5, %v7099_v51 }
 0x179   : > { %v4824_v44 = vpop.f32.mrb[12].mxu0  ;;  %1992 = vmatprep.mubr.bf16.mxu1 %v7138_v56  ;;  %v7264_v34 = vadd.f32 %v4935_v40, %v1419_v21  ;;  %v8881_v21 = vmov 0.0|0.0  }
 0x17a   : > { %v4825_v19 = vpop.f32.mrb[13].mxu0 }
 0x17b   : > { %v4826_v35 = vadd.f32 %v4825_v19, %v4824_v44  ;;  %v4827_v2 = vpop.f32.mrb[14].mxu0  ;;  %v4936_v14 = vpop.f32.mrb[12].mxu1 }
 0x17c   : > { %v4828_v33 = vpop.f32.mrb[15].mxu0  ;;  %v4937_v52 = vpop.f32.mrb[13].mxu1 }
 0x17d   : > { %v1424_v46 = vadd.f32 %v4826_v35, %v7227_v42  ;;  %v4829_v54 = vadd.f32 %v4828_v33, %v4827_v2  ;;  %v4938_v51 = vadd.f32 %v4937_v52, %v4936_v14  ;;  %v4939_v7 = vpop.f32.mrb[14].mxu1  ;;  %v5983_v2 = vld [vmem:[#allocation7 + $0x10] sm:$0xff]  }
 0x17e   : > { %1832 = vmatmul.mubr.bf16.gmra.mrb[120].mxu0 %v7117_v43  ;;  %v4940_v36 = vpop.f32.mrb[15].mxu1 }
 0x17f   : > { %v1427_v58 = vadd.f32 %v4829_v54, %v7227_v42  ;;  %1839 = vmatprep.mubr.bf16.mxu0 %v7148_v29  ;;  %v4941_v16 = vadd.f32 %v4940_v36, %v4939_v7  ;;  %v7270_v17 = vadd.f32 %v4938_v51, %v1424_v46 }
 0x180   : > { %4525 = vmatmul.mubr.msk.bf16.gmra.mrb[120].mxu1 %vm6492_vm5, %v7134_v32 }
 0x181   : > { %v4830_v45 = vpop.f32.mrb[16].mxu0  ;;  %2000 = vmatprep.mubr.bf16.mxu1 %v8880_v59  ;;  %v7276_v49 = vadd.f32 %v4941_v16, %v1427_v58 }
 0x182   : > { %v4831_v60 = vpop.f32.mrb[17].mxu0 }
 0x183   : > { %v4832_v53 = vadd.f32 %v4831_v60, %v4830_v45  ;;  %v4833_v43 = vpop.f32.mrb[18].mxu0  ;;  %v4942_v1 = vpop.f32.mrb[16].mxu1 }
 0x184   : > { %v4834_v15 = vpop.f32.mrb[19].mxu0  ;;  %v4943_v47 = vpop.f32.mrb[17].mxu1 }
 0x185   : > { %v1432_v12 = vadd.f32 %v4832_v53, %v7227_v42  ;;  %v4835_v30 = vadd.f32 %v4834_v15, %v4833_v43  ;;  %v4944_v11 = vadd.f32 %v4943_v47, %v4942_v1  ;;  %v4945_v28 = vpop.f32.mrb[18].mxu1 }
 0x186   : > { %1840 = vmatmul.mubr.bf16.gmra.mrb[124].mxu0 %v7138_v56  ;;  %v4946_v32 = vpop.f32.mrb[19].mxu1 }
 0x187   : > { %v1435_v10 = vadd.f32 %v4835_v30, %v7227_v42  ;;  %5750 = vmatprep.mubr.bf16.mxu0 %v6560_v57  ;;  %v4947_v41 = vadd.f32 %v4946_v32, %v4945_v28  ;;  %v7282_v23 = vadd.f32 %v4944_v11, %v1432_v12  ;;  %v5982_v57 = vld [vmem:[#allocation7 + $0x50] sm:$0xff]  }
 0x188   : > { %2001 = vmatmul.mubr.bf16.gmra.mrb[124].mxu1 %v8881_v21  ;;  %5266 = vmatprep.subr.bf16.mxu1 %v5982_v57 }
 0x189   : > { %v4836_v61 = vpop.f32.mrb[20].mxu0  ;;  %v7285_v40 = vadd.f32 %v4947_v41, %v1435_v10  ;;  %3281 = vmatprep.mubr.bf16.mxu1 %v8880_v59  ;;  %5267 = vmatpush3.bf16.msra.mxu1 %v5983_v2 }
 0x18a   : > { %v4837_v13 = vpop.f32.mrb[21].mxu0 }
 0x18b   : > { %v4838_v8 = vadd.f32 %v4837_v13, %v4836_v61  ;;  %v4839_v37 = vpop.f32.mrb[22].mxu0  ;;  %v4948_v19 = vpop.f32.mrb[20].mxu1 }
 0x18c   : > { %v4840_v56 = vpop.f32.mrb[23].mxu0  ;;  %v4949_v33 = vpop.f32.mrb[21].mxu1 }
 0x18d   : > { %v1440_v44 = vadd.f32 %v4838_v8, %v7227_v42  ;;  %v4841_v35 = vadd.f32 %v4840_v56, %v4839_v37  ;;  %v4950_v14 = vadd.f32 %v4949_v33, %v4948_v19  ;;  %v4951_v54 = vpop.f32.mrb[22].mxu1  ;;  %v5984_v37 = vld [vmem:[#allocation7 + $0x58] sm:$0xff]  }
 0x18e   : > { %5751 = vmatmul.mubr.bf16.vlgmr.msra.gmra.mrb[128].mxu0 %v6595_v22  ;;  %v4952_v25 = vpop.f32.mrb[23].mxu1  ;;  %v5985_v56 = vld [vmem:[#allocation7 + $0x18] sm:$0xff]   ;;  %5268 = vmatprep.subr.bf16.mxu1 %v5984_v37 }
 0x18f   : > { %v1443_v46 = vadd.f32 %v4841_v35, %v7227_v42  ;;  %5754 = vmatprep.mubr.bf16.mxu0 %v6631_v55  ;;  %v4953_v27 = vadd.f32 %v4952_v25, %v4951_v54  ;;  %v7292_v58 = vadd.f32 %v4950_v14, %v1440_v44  ;;  %5269 = vmatpush3.bf16.msra.mxu1 %v5985_v56 }
 0x191   : > { %v4842_v52 = vpop.f32.mrb[24].mxu0  ;;  %v7294_v16 = vadd.f32 %v4953_v27, %v1443_v46 }
 0x192   : > { %v4843_v51 = vpop.f32.mrb[25].mxu0 }
 0x193   : > { %v4844_v7 = vadd.f32 %v4843_v51, %v4842_v52  ;;  %v4845_v36 = vpop.f32.mrb[26].mxu0  ;;  %v4954_v60 = vpop.f32.mrb[24].mxu1 }
 0x194   : > { %v4846_v45 = vpop.f32.mrb[27].mxu0  ;;  %v4955_v43 = vpop.f32.mrb[25].mxu1 }
 0x195   : > { %v1448_v22 = vadd.f32 %v4844_v7, %v7227_v42  ;;  %v4847_v53 = vadd.f32 %v4846_v45, %v4845_v36  ;;  %v4956_v15 = vadd.f32 %v4955_v43, %v4954_v60  ;;  %v4957_v12 = vpop.f32.mrb[26].mxu1 }
 0x196   : > { %5755 = vmatmul.mubr.bf16.gmra.mrb[132].mxu0 %v6685_v39  ;;  %v4958_v1 = vpop.f32.mrb[27].mxu1 }
 0x197   : > { %v1451_v55 = vadd.f32 %v4847_v53, %v7227_v42  ;;  %5758 = vmatprep.mubr.bf16.mxu0 %v6741_v38  ;;  %v4959_v30 = vadd.f32 %v4958_v1, %v4957_v12  ;;  %v7300_v10 = vadd.f32 %v4956_v15, %v1448_v22 }
 0x199   : > { %v4848_v47 = vpop.f32.mrb[28].mxu0  ;;  %v7302_v41 = vadd.f32 %v4959_v30, %v1451_v55 }
 0x19a   : > { %v4849_v11 = vpop.f32.mrb[29].mxu0 }
 0x19b   : > { %v4850_v28 = vadd.f32 %v4849_v11, %v4848_v47  ;;  %v4851_v32 = vpop.f32.mrb[30].mxu0  ;;  %v4960_v39 = vpop.f32.mrb[28].mxu1 }
 0x19c   : > { %v4852_v61 = vpop.f32.mrb[31].mxu0  ;;  %v4961_v44 = vpop.f32.mrb[29].mxu1 }
 0x19d   : > { %v1456_v13 = vadd.f32 %v4850_v28, %v7227_v42  ;;  %v4853_v8 = vadd.f32 %v4852_v61, %v4851_v32  ;;  %v4962_v19 = vadd.f32 %v4961_v44, %v4960_v39  ;;  %v4963_v35 = vpop.f32.mrb[30].mxu1  ;;  %v5986_v32 = vld [vmem:[#allocation7 + $0x60] sm:$0xff]  }
 0x19e   : > { %5759 = vmatmul.mubr.bf16.gmra.mrb[136].mxu0 %v6811_v20  ;;  %v4964_v57 = vpop.f32.mrb[31].mxu1  ;;  %v5987_v61 = vld [vmem:[#allocation7 + $0x20] sm:$0xff]   ;;  %5270 = vmatprep.subr.bf16.mxu1 %v5986_v32 }
 0x19f   : > { %v1459_v38 = vadd.f32 %v4853_v8, %v7227_v42  ;;  %5762 = vmatprep.mubr.bf16.mxu0 %v6889_v6  ;;  %v4965_v2 = vadd.f32 %v4964_v57, %v4963_v35  ;;  %v7308_v46 = vadd.f32 %v4962_v19, %v1456_v13  ;;  %5271 = vmatpush3.bf16.msra.mxu1 %v5987_v61 }
 0x1a1   : > { %v4854_v33 = vpop.f32.mrb[32].mxu0  ;;  %v7310_v27 = vadd.f32 %v4965_v2, %v1459_v38 }
 0x1a2   : > { %v4855_v14 = vpop.f32.mrb[33].mxu0 }
 0x1a3   : > { %v4856_v54 = vadd.f32 %v4855_v14, %v4854_v33  ;;  %v4857_v25 = vpop.f32.mrb[34].mxu0  ;;  %v4966_v51 = vpop.f32.mrb[32].mxu1 }
 0x1a4   : > { %v4858_v52 = vpop.f32.mrb[35].mxu0  ;;  %v4967_v36 = vpop.f32.mrb[33].mxu1 }
 0x1a5   : > { %v1464_v20 = vadd.f32 %v4856_v54, %v7227_v42  ;;  %v4859_v7 = vadd.f32 %v4858_v52, %v4857_v25  ;;  %v4968_v45 = vadd.f32 %v4967_v36, %v4966_v51  ;;  %v4969_v22 = vpop.f32.mrb[34].mxu1 }
 0x1a6   : > { %5763 = vmatmul.mubr.bf16.gmra.mrb[140].mxu0 %v6945_v0  ;;  %v4970_v60 = vpop.f32.mrb[35].mxu1 }
 0x1a7   : > { %v1467_v6 = vadd.f32 %v4859_v7, %v7227_v42  ;;  %5766 = vmatprep.mubr.bf16.mxu0 %v6981_v3  ;;  %v7316_v53 = vadd.f32 %v4968_v45, %v1464_v20  ;;  %v4971_v43 = vadd.f32 %v4970_v60, %v4969_v22 }
 0x1a9   : > { %v4860_v55 = vpop.f32.mrb[36].mxu0  ;;  %v7318_v12 = vadd.f32 %v4971_v43, %v1467_v6 }
 0x1aa   : > { %v4861_v15 = vpop.f32.mrb[37].mxu0 }
 0x1ab   : > { %v4862_v1 = vadd.f32 %v4861_v15, %v4860_v55  ;;  %v4863_v30 = vpop.f32.mrb[38].mxu0  ;;  %v4972_v0 = vpop.f32.mrb[36].mxu1 }
 0x1ac   : > { %v4864_v47 = vpop.f32.mrb[39].mxu0  ;;  %v4973_v13 = vpop.f32.mrb[37].mxu1 }
 0x1ad   : > { %v1472_v11 = vadd.f32 %v4862_v1, %v7227_v42  ;;  %v4865_v28 = vadd.f32 %v4864_v47, %v4863_v30  ;;  %v4974_v39 = vadd.f32 %v4973_v13, %v4972_v0  ;;  %v4975_v8 = vpop.f32.mrb[38].mxu1  ;;  %v5988_v30 = vld [vmem:[#allocation7 + $0x68] sm:$0xff]  }
 0x1ae   : > { %5767 = vmatmul.mubr.bf16.gmra.mrb[144].mxu0 %v7030_v5  ;;  %v4976_v37 = vpop.f32.mrb[39].mxu1  ;;  %v5989_v47 = vld [vmem:[#allocation7 + $0x28] sm:$0xff]   ;;  %5272 = vmatprep.subr.bf16.mxu1 %v5988_v30 }
 0x1af   : > { %v1475_v3 = vadd.f32 %v4865_v28, %v7227_v42  ;;  %5770 = vmatprep.mubr.bf16.mxu0 %v7065_v24  ;;  %v7324_v56 = vadd.f32 %v4974_v39, %v1472_v11  ;;  %v4977_v44 = vadd.f32 %v4976_v37, %v4975_v8  ;;  %5273 = vmatpush3.bf16.msra.mxu1 %v5989_v47 }
 0x1b1   : > { %v4866_v38 = vpop.f32.mrb[40].mxu0  ;;  %v7326_v35 = vadd.f32 %v4977_v44, %v1475_v3 }
 0x1b2   : > { %v4867_v19 = vpop.f32.mrb[41].mxu0 }
 0x1b3   : > { %v4868_v57 = vadd.f32 %v4867_v19, %v4866_v38  ;;  %v4869_v2 = vpop.f32.mrb[42].mxu0  ;;  %v4978_v14 = vpop.f32.mrb[40].mxu1 }
 0x1b4   : > { %v4870_v33 = vpop.f32.mrb[43].mxu0  ;;  %v4979_v25 = vpop.f32.mrb[41].mxu1 }
 0x1b5   : > { %v1480_v5 = vadd.f32 %v4868_v57, %v7227_v42  ;;  %v4871_v54 = vadd.f32 %v4870_v33, %v4869_v2  ;;  %v4980_v52 = vadd.f32 %v4979_v25, %v4978_v14  ;;  %v4981_v20 = vpop.f32.mrb[42].mxu1  ;;  %v8882_v33 = vld [vmem:[#allocation13_spill] sm:$0xff] }
 0x1b6   : > { %5771 = vmatmul.mubr.bf16.gmra.mrb[148].mxu0 %v7094_v18  ;;  %v4982_v51 = vpop.f32.mrb[43].mxu1 }
 0x1b7   : > { %v1483_v24 = vadd.f32 %v4871_v54, %v7227_v42  ;;  %5774 = vmatprep.mubr.bf16.mxu0 %v7127_v9  ;;  %v7332_v7 = vadd.f32 %v4980_v52, %v1480_v5  ;;  %v4983_v36 = vadd.f32 %v4982_v51, %v4981_v20 }
 0x1b9   : > { %v4872_v6 = vpop.f32.mrb[44].mxu0  ;;  %v7334_v22 = vadd.f32 %v4983_v36, %v1483_v24 }
 0x1ba   : > { %v4873_v45 = vpop.f32.mrb[45].mxu0 }
 0x1bb   : > { %v4874_v60 = vadd.f32 %v4873_v45, %v4872_v6  ;;  %v4875_v43 = vpop.f32.mrb[46].mxu0  ;;  %v4984_v18 = vpop.f32.mrb[44].mxu1 }
 0x1bc   : > { %v4876_v55 = vpop.f32.mrb[47].mxu0  ;;  %v4985_v11 = vpop.f32.mrb[45].mxu1 }
 0x1bd   : > { %v1488_v15 = vadd.f32 %v4874_v60, %v7227_v42  ;;  %v4877_v1 = vadd.f32 %v4876_v55, %v4875_v43  ;;  %v4986_v0 = vadd.f32 %v4985_v11, %v4984_v18  ;;  %v4987_v28 = vpop.f32.mrb[46].mxu1  ;;  %v5991_v18 = vld [vmem:[#allocation7 + $0x30] sm:$0xff]  }
 0x1be   : > { %5775 = vmatmul.mubr.bf16.gmra.mrb[152].mxu0 %v7153_v31  ;;  %v4988_v32 = vpop.f32.mrb[47].mxu1 }
 0x1bf   : > { %v1491_v9 = vadd.f32 %v4877_v1, %v7227_v42  ;;  %5778 = vmatprep.mubr.bf16.mxu0 %v7148_v29  ;;  %v7340_v61 = vadd.f32 %v4986_v0, %v1488_v15  ;;  %v4989_v13 = vadd.f32 %v4988_v32, %v4987_v28  ;;  %v5990_v15 = vld [vmem:[#allocation7 + $0x70] sm:$0xff]   ;;  %v5993_v28 = vld [vmem:[#allocation7 + $0x80] sm:$0xff]  }
 0x1c0   : > { %5274 = vmatprep.subr.bf16.mxu1 %v5990_v15 }
 0x1c1   : > { %v4878_v3 = vpop.f32.mrb[48].mxu0  ;;  %v7342_v8 = vadd.f32 %v4989_v13, %v1491_v9  ;;  %v5992_v9 = vld [vmem:[#allocation7 + $0xc0] sm:$0xff]   ;;  %5275 = vmatpush3.bf16.msra.mxu1 %v5991_v18 }
 0x1c2   : > { %v4879_v39 = vpop.f32.mrb[49].mxu0  ;;  %5374 = vmatprep.subr.bf16.mxu0 %v5992_v9 }
 0x1c3   : > { %v4880_v37 = vadd.f32 %v4879_v39, %v4878_v3  ;;  %v4881_v44 = vpop.f32.mrb[50].mxu0  ;;  %v4990_v19 = vpop.f32.mrb[48].mxu1  ;;  %5375 = vmatpush3.bf16.msra.mxu0 %v5993_v28 }
 0x1c4   : > { %v4882_v38 = vpop.f32.mrb[51].mxu0  ;;  %v4991_v2 = vpop.f32.mrb[49].mxu1 }
 0x1c5   : > { %v1496_v31 = vadd.f32 %v4880_v37, %v7227_v42  ;;  %v4883_v57 = vadd.f32 %v4882_v38, %v4881_v44  ;;  %v4992_v5 = vadd.f32 %v4991_v2, %v4990_v19  ;;  %v4993_v14 = vpop.f32.mrb[50].mxu1 }
 0x1c6   : > { %5779 = vmatmul.mubr.bf16.gmra.mrb[156].mxu0 %v8882_v33  ;;  %v4994_v54 = vpop.f32.mrb[51].mxu1 }
 0x1c7   : > { %v1499_v29 = vadd.f32 %v4883_v57, %v7227_v42  ;;  %v7347_v25 = vadd.f32 %v4992_v5, %v1496_v31  ;;  %v4995_v24 = vadd.f32 %v4994_v54, %v4993_v14  ;;  %v5994_v31 = vld [vmem:[#allocation7 + $0xc8] sm:$0xff]  }
 0x1c8   : > { %v5995_v57 = vld [vmem:[#allocation7 + $0x88] sm:$0xff]   ;;  %5376 = vmatprep.subr.bf16.mxu0 %v5994_v31 }
 0x1c9   : > { %v4884_v52 = vpop.f32.mrb[52].mxu0  ;;  %v7349_v51 = vadd.f32 %v4995_v24, %v1499_v29  ;;  %5377 = vmatpush3.bf16.msra.mxu0 %v5995_v57 }
 0x1ca   : > { %v4885_v20 = vpop.f32.mrb[53].mxu0 }
 0x1cb   : > { %v4886_v36 = vadd.f32 %v4885_v20, %v4884_v52  ;;  %v4887_v6 = vpop.f32.mrb[54].mxu0  ;;  %v4996_v43 = vpop.f32.mrb[52].mxu1  ;;  %v5996_v20 = vld [vmem:[#allocation7 + $0xd0] sm:$0xff]  }
 0x1cc   : > { %v4888_v45 = vpop.f32.mrb[55].mxu0  ;;  %v4997_v1 = vpop.f32.mrb[53].mxu1  ;;  %5378 = vmatprep.subr.bf16.mxu0 %v5996_v20 }
 0x1cd   : > { %v1504_v60 = vadd.f32 %v4886_v36, %v7227_v42  ;;  %v4889_v55 = vadd.f32 %v4888_v45, %v4887_v6  ;;  %v4998_v47 = vadd.f32 %v4997_v1, %v4996_v43  ;;  %v4999_v11 = vpop.f32.mrb[54].mxu1  ;;  %v5997_v6 = vld [vmem:[#allocation7 + $0x90] sm:$0xff]  }
 0x1ce   : > { %v5000_v0 = vpop.f32.mrb[55].mxu1  ;;  %5379 = vmatpush3.bf16.msra.mxu0 %v5997_v6  ;;  %v6005_v6 = vld [vmem:[#allocation7 + $0xa8] sm:$0xff]  }
 0x1cf   : > { %v1507_v30 = vadd.f32 %v4889_v55, %v7227_v42  ;;  %v7353_v32 = vadd.f32 %v4998_v47, %v1504_v60  ;;  %v5001_v13 = vadd.f32 %v5000_v0, %v4999_v11  ;;  %v6001_v11 = vld [vmem:[#allocation7 + $0x98] sm:$0xff]  }
 0x1d1   : > { %v4890_v3 = vpop.f32.mrb[56].mxu0  ;;  %v7355_v37 = vadd.f32 %v5001_v13, %v1507_v30  ;;  %v6000_v30 = vld [vmem:[#allocation7 + $0xd8] sm:$0xff]  }
 0x1d2   : > { %v4891_v39 = vpop.f32.mrb[57].mxu0  ;;  %v5998_v13 = vld [vmem:[#allocation7 + $0x78] sm:$0xff]   ;;  %5380 = vmatprep.subr.bf16.mxu0 %v6000_v30 }
 0x1d3   : > { %v4892_v44 = vadd.f32 %v4891_v39, %v4890_v3  ;;  %v4893_v38 = vpop.f32.mrb[58].mxu0  ;;  %v5002_v29 = vpop.f32.mrb[56].mxu1  ;;  %v5999_v3 = vld [vmem:[#allocation7 + $0x38] sm:$0xff]   ;;  %5381 = vmatpush3.bf16.msra.mxu0 %v6001_v11  ;;  %5276 = vmatprep.subr.bf16.mxu1 %v5998_v13  ;;  %v6006_v11 = vld [vmem:[#allocation7 + $0xf0] sm:$0xff]  }
 0x1d4   : > { %v4894_v19 = vpop.f32.mrb[59].mxu0  ;;  %v5003_v14 = vpop.f32.mrb[57].mxu1  ;;  %5277 = vmatpush3.bf16.msra.mxu1 %v5999_v3 }
 0x1d5   : > { %v1512_v2 = vadd.f32 %v4892_v44, %v7227_v42  ;;  %v4895_v5 = vadd.f32 %v4894_v19, %v4893_v38  ;;  %v5004_v24 = vadd.f32 %v5003_v14, %v5002_v29  ;;  %v5005_v52 = vpop.f32.mrb[58].mxu1  ;;  %v6002_v19 = vld [vmem:[#allocation7 + $0xe0] sm:$0xff]  }
 0x1d6   : > { %v5006_v36 = vpop.f32.mrb[59].mxu1  ;;  %5382 = vmatprep.subr.bf16.mxu0 %v6002_v19 }
 0x1d7   : > { %v1515_v54 = vadd.f32 %v4895_v5, %v7227_v42  ;;  %v7359_v45 = vadd.f32 %v5004_v24, %v1512_v2  ;;  %v5007_v60 = vadd.f32 %v5006_v36, %v5005_v52  ;;  %v6003_v2 = vld [vmem:[#allocation7 + $0xa0] sm:$0xff]   ;;  %v6004_v36 = vld [vmem:[#allocation7 + $0xe8] sm:$0xff]   ;;  %3282 = vmatmul.mubr.bf16.vlgmr.msra.gmra.mrb[128].mxu1 %v8881_v21 }
 0x1d8   : > { %5383 = vmatpush3.bf16.msra.mxu0 %v6003_v2 }
 0x1d9   : > { %v4896_v43 = vpop.f32.mrb[60].mxu0  ;;  %v7361_v15 = vadd.f32 %v5007_v60, %v1515_v54  ;;  %5384 = vmatprep.subr.bf16.mxu0 %v6004_v36 }
 0x1da   : > { %v4897_v55 = vpop.f32.mrb[61].mxu0 }
 0x1db   : > { %v4898_v18 = vadd.f32 %v4897_v55, %v4896_v43  ;;  %v4899_v1 = vpop.f32.mrb[62].mxu0  ;;  %v5008_v0 = vpop.f32.mrb[60].mxu1 }
 0x1dc   : > { %v4900_v47 = vpop.f32.mrb[63].mxu0  ;;  %v5009_v39 = vpop.f32.mrb[61].mxu1  ;;  %5385 = vmatpush3.bf16.msra.mxu0 %v6005_v6 }
 0x1dd   : > { %v1520_v9 = vadd.f32 %v4898_v18, %v7227_v42  ;;  %v4901_v28 = vadd.f32 %v4900_v47, %v4899_v1  ;;  %v5010_v38 = vadd.f32 %v5009_v39, %v5008_v0  ;;  %v5011_v31 = vpop.f32.mrb[62].mxu1  ;;  %v6007_v0 = vld [vmem:[#allocation7 + $0xb0] sm:$0xff]   ;;  %5386 = vmatprep.subr.bf16.mxu0 %v6006_v11 }
 0x1de   : > { %v5012_v57 = vpop.f32.mrb[63].mxu1 }
 0x1df   : > { %v1523_v44 = vadd.f32 %v4901_v28, %v7227_v42  ;;  %v7365_v29 = vadd.f32 %v5010_v38, %v1520_v9  ;;  %v5013_v5 = vadd.f32 %v5012_v57, %v5011_v31  ;;  %v6009_v31 = vld [vmem:[#allocation7 + $0xf8] sm:$0xff]  }
 0x1e0   : > { %5387 = vmatpush3.bf16.msra.mxu0 %v6007_v0  ;;  %v6011_v57 = vld [vmem:[#allocation7 + $0xb8] sm:$0xff]  }
 0x1e1   : > { %v5030_v14 = vpop.f32.mrb[64].mxu0  ;;  %v7367_v24 = vadd.f32 %v5013_v5, %v1523_v44  ;;  %5388 = vmatprep.subr.bf16.mxu0 %v6009_v31 }
 0x1e2   : > { %v5031_v54 = vpop.f32.mrb[65].mxu0 }
 0x1e3   : > { %v5032_v52 = vadd.f32 %v5031_v54, %v5030_v14  ;;  %v5033_v20 = vpop.f32.mrb[66].mxu0  ;;  %v5142_v43 = vpop.f32.mrb[64].mxu1 }
 0x1e4   : > { %v5034_v42 = vpop.f32.mrb[67].mxu0  ;;  %v5143_v18 = vpop.f32.mrb[65].mxu1  ;;  %5389 = vmatpush3.bf16.msra.mxu0 %v6011_v57 }
 0x1e5   : > { %v1722_v60 = vadd.f32 %v5032_v52, %v7234_v63  ;;  %v5035_v55 = vadd.f32 %v5034_v42, %v5033_v20  ;;  %v5144_v30 = vadd.f32 %v5143_v18, %v5142_v43  ;;  %v5145_v47 = vpop.f32.mrb[66].mxu1 }
 0x1e6   : > { %v5146_v9 = vpop.f32.mrb[67].mxu1 }
 0x1e7   : > { %v1725_v1 = vadd.f32 %v5035_v55, %v7240_v48  ;;  %v5147_v28 = vadd.f32 %v5146_v9, %v5145_v47  ;;  %v7372_v3 = vadd.f32 %v5144_v30, %v1722_v60 }
 0x1e9   : > { %v5036_v13 = vpop.f32.mrb[68].mxu0  ;;  %v7374_v38 = vadd.f32 %v5147_v28, %v1725_v1 }
 0x1ea   : > { %v5037_v39 = vpop.f32.mrb[69].mxu0 }
 0x1eb   : > { %v5038_v63 = vadd.f32 %v5037_v39, %v5036_v13  ;;  %v5039_v44 = vpop.f32.mrb[70].mxu0  ;;  %v5148_v2 = vpop.f32.mrb[68].mxu1 }
 0x1ec   : > { %v5040_v19 = vpop.f32.mrb[71].mxu0  ;;  %v5149_v14 = vpop.f32.mrb[69].mxu1 }
 0x1ed   : > { %v1730_v48 = vadd.f32 %v5038_v63, %v7246_v26  ;;  %v5041_v5 = vadd.f32 %v5040_v19, %v5039_v44  ;;  %v5150_v52 = vadd.f32 %v5149_v14, %v5148_v2  ;;  %v5151_v20 = vpop.f32.mrb[70].mxu1  ;;  %v6008_v26 = vld [vmem:[#allocation7 + $0x140] sm:$0xff]  }
 0x1ee   : > { %v5152_v36 = vpop.f32.mrb[71].mxu1  ;;  %5486 = vmatprep.subr.bf16.mxu1 %v6008_v26 }
 0x1ef   : > { %v1733_v54 = vadd.f32 %v5041_v5, %v7252_v62  ;;  %v5153_v42 = vadd.f32 %v5152_v36, %v5151_v20  ;;  %v7378_v60 = vadd.f32 %v5150_v52, %v1730_v48  ;;  %v6010_v62 = vld [vmem:[#allocation7 + $0x100] sm:$0xff]  }
 0x1f0   : > { %5487 = vmatpush3.bf16.msra.mxu1 %v6010_v62 }
 0x1f1   : > { %v5042_v6 = vpop.f32.mrb[72].mxu0  ;;  %v7380_v1 = vadd.f32 %v5153_v42, %v1733_v54 }
 0x1f2   : > { %v5043_v43 = vpop.f32.mrb[73].mxu0 }
 0x1f3   : > { %v5044_v55 = vadd.f32 %v5043_v43, %v5042_v6  ;;  %v5045_v18 = vpop.f32.mrb[74].mxu0  ;;  %v5154_v11 = vpop.f32.mrb[72].mxu1 }
 0x1f4   : > { %v5046_v30 = vpop.f32.mrb[75].mxu0  ;;  %v5155_v0 = vpop.f32.mrb[73].mxu1 }
 0x1f5   : > { %v1738_v47 = vadd.f32 %v5044_v55, %v7258_v4  ;;  %v5047_v9 = vadd.f32 %v5046_v30, %v5045_v18  ;;  %v5156_v13 = vadd.f32 %v5155_v0, %v5154_v11  ;;  %v5157_v39 = vpop.f32.mrb[74].mxu1 }
 0x1f6   : > { %v5158_v63 = vpop.f32.mrb[75].mxu1 }
 0x1f7   : > { %v1741_v28 = vadd.f32 %v5047_v9, %v7264_v34  ;;  %v5159_v44 = vadd.f32 %v5158_v63, %v5157_v39  ;;  %v7384_v19 = vadd.f32 %v5156_v13, %v1738_v47 }
 0x1f9   : > { %v5048_v31 = vpop.f32.mrb[76].mxu0  ;;  %v7386_v5 = vadd.f32 %v5159_v44, %v1741_v28  ;;  %v6012_v28 = vld [vmem:[#allocation7 + $0x148] sm:$0xff]  }
 0x1fa   : > { %v5049_v57 = vpop.f32.mrb[77].mxu0  ;;  %5488 = vmatprep.subr.bf16.mxu1 %v6012_v28  ;;  %v6013_v44 = vld [vmem:[#allocation7 + $0x108] sm:$0xff]  }
 0x1fb   : > { %v5050_v48 = vadd.f32 %v5049_v57, %v5048_v31  ;;  %v5051_v2 = vpop.f32.mrb[78].mxu0  ;;  %v5160_v54 = vpop.f32.mrb[76].mxu1  ;;  %5489 = vmatpush3.bf16.msra.mxu1 %v6013_v44 }
 0x1fc   : > { %v5052_v4 = vpop.f32.mrb[79].mxu0  ;;  %v5161_v20 = vpop.f32.mrb[77].mxu1 }
 0x1fd   : > { %v1746_v14 = vadd.f32 %v5050_v48, %v7270_v17  ;;  %v5053_v52 = vadd.f32 %v5052_v4, %v5051_v2  ;;  %v5162_v36 = vadd.f32 %v5161_v20, %v5160_v54  ;;  %v5163_v42 = vpop.f32.mrb[78].mxu1 }
 0x1fe   : > { %v5164_v6 = vpop.f32.mrb[79].mxu1 }
 0x1ff   : > { %v1749_v34 = vadd.f32 %v5053_v52, %v7276_v49  ;;  %v5165_v43 = vadd.f32 %v5164_v6, %v5163_v42  ;;  %v7390_v18 = vadd.f32 %v5162_v36, %v1746_v14 }
 0x201   : > { %v5054_v55 = vpop.f32.mrb[80].mxu0  ;;  %v7392_v11 = vadd.f32 %v5165_v43, %v1749_v34 }
 0x202   : > { %v5055_v26 = vpop.f32.mrb[81].mxu0 }
 0x203   : > { %v5056_v30 = vadd.f32 %v5055_v26, %v5054_v55  ;;  %v5057_v47 = vpop.f32.mrb[82].mxu0  ;;  %v5166_v62 = vpop.f32.mrb[80].mxu1 }
 0x204   : > { %v5058_v9 = vpop.f32.mrb[83].mxu0  ;;  %v5167_v13 = vpop.f32.mrb[81].mxu1 }
 0x205   : > { %v1754_v17 = vadd.f32 %v5056_v30, %v7282_v23  ;;  %v5059_v0 = vadd.f32 %v5058_v9, %v5057_v47  ;;  %v5168_v39 = vadd.f32 %v5167_v13, %v5166_v62  ;;  %v5169_v63 = vpop.f32.mrb[82].mxu1 }
 0x206   : > { %v5170_v31 = vpop.f32.mrb[83].mxu1 }
 0x207   : > { %v1757_v49 = vadd.f32 %v5059_v0, %v7285_v40  ;;  %v5171_v57 = vadd.f32 %v5170_v31, %v5169_v63  ;;  %v7396_v2 = vadd.f32 %v5168_v39, %v1754_v17  ;;  %v6014_v31 = vld [vmem:[#allocation7 + $0x150] sm:$0xff]  }
 0x208   : > { %5490 = vmatprep.subr.bf16.mxu1 %v6014_v31 }
 0x209   : > { %v5060_v48 = vpop.f32.mrb[84].mxu0  ;;  %v7398_v23 = vadd.f32 %v5171_v57, %v1757_v49 }
 0x20a   : > { %v5061_v4 = vpop.f32.mrb[85].mxu0 }
 0x20b   : > { %v5062_v14 = vadd.f32 %v5061_v4, %v5060_v48  ;;  %v5063_v54 = vpop.f32.mrb[86].mxu0  ;;  %v5172_v34 = vpop.f32.mrb[84].mxu1 }
 0x20c   : > { %v5064_v52 = vpop.f32.mrb[87].mxu0  ;;  %v5173_v36 = vpop.f32.mrb[85].mxu1 }
 0x20d   : > { %v1762_v20 = vadd.f32 %v5062_v14, %v7292_v58  ;;  %v5065_v40 = vadd.f32 %v5064_v52, %v5063_v54  ;;  %v5174_v6 = vadd.f32 %v5173_v36, %v5172_v34  ;;  %v5175_v43 = vpop.f32.mrb[86].mxu1  ;;  %v6015_v54 = vld [vmem:[#allocation7 + $0x110] sm:$0xff]  }
 0x20e   : > { %v5176_v55 = vpop.f32.mrb[87].mxu1  ;;  %5491 = vmatpush3.bf16.msra.mxu1 %v6015_v54 }
 0x20f   : > { %v1765_v42 = vadd.f32 %v5065_v40, %v7294_v16  ;;  %v5177_v26 = vadd.f32 %v5176_v55, %v5175_v43  ;;  %v7402_v47 = vadd.f32 %v5174_v6, %v1762_v20 }
 0x211   : > { %v5066_v30 = vpop.f32.mrb[88].mxu0  ;;  %v7404_v0 = vadd.f32 %v5177_v26, %v1765_v42 }
 0x212   : > { %v5067_v9 = vpop.f32.mrb[89].mxu0 }
 0x213   : > { %v5068_v17 = vadd.f32 %v5067_v9, %v5066_v30  ;;  %v5069_v62 = vpop.f32.mrb[90].mxu0  ;;  %v5178_v13 = vpop.f32.mrb[88].mxu1 }
 0x214   : > { %v5070_v28 = vpop.f32.mrb[91].mxu0  ;;  %v5179_v39 = vpop.f32.mrb[89].mxu1 }
 0x215   : > { %v1770_v58 = vadd.f32 %v5068_v17, %v7300_v10  ;;  %v5071_v49 = vadd.f32 %v5070_v28, %v5069_v62  ;;  %v5180_v63 = vadd.f32 %v5179_v39, %v5178_v13  ;;  %v5181_v44 = vpop.f32.mrb[90].mxu1 }
 0x216   : > { %v5182_v57 = vpop.f32.mrb[91].mxu1 }
 0x217   : > { %v1773_v16 = vadd.f32 %v5071_v49, %v7302_v41  ;;  %v5183_v48 = vadd.f32 %v5182_v57, %v5181_v44  ;;  %v7408_v14 = vadd.f32 %v5180_v63, %v1770_v58 }
 0x219   : > { %v5072_v4 = vpop.f32.mrb[92].mxu0  ;;  %v7410_v40 = vadd.f32 %v5183_v48, %v1773_v16 }
 0x21a   : > { %v5073_v52 = vpop.f32.mrb[93].mxu0 }
 0x21b   : > { %v5074_v20 = vadd.f32 %v5073_v52, %v5072_v4  ;;  %v5075_v34 = vpop.f32.mrb[94].mxu0  ;;  %v5184_v41 = vpop.f32.mrb[92].mxu1 }
 0x21c   : > { %v5076_v10 = vpop.f32.mrb[95].mxu0  ;;  %v5185_v6 = vpop.f32.mrb[93].mxu1 }
 0x21d   : > { %v1778_v36 = vadd.f32 %v5074_v20, %v7308_v46  ;;  %v5077_v42 = vadd.f32 %v5076_v10, %v5075_v34  ;;  %v5186_v55 = vadd.f32 %v5185_v6, %v5184_v41  ;;  %v5187_v26 = vpop.f32.mrb[94].mxu1  ;;  %v6016_v20 = vld [vmem:[#allocation7 + $0x158] sm:$0xff]  }
 0x21e   : > { %v5188_v30 = vpop.f32.mrb[95].mxu1  ;;  %5492 = vmatprep.subr.bf16.mxu1 %v6016_v20 }
 0x21f   : > { %v1781_v43 = vadd.f32 %v5077_v42, %v7310_v27  ;;  %v5189_v9 = vadd.f32 %v5188_v30, %v5187_v26  ;;  %v7414_v62 = vadd.f32 %v5186_v55, %v1778_v36 }
 0x221   : > { %v5078_v17 = vpop.f32.mrb[96].mxu0  ;;  %v7416_v49 = vadd.f32 %v5189_v9, %v1781_v43 }
 0x222   : > { %v5079_v28 = vpop.f32.mrb[97].mxu0 }
 0x223   : > { %v5080_v58 = vadd.f32 %v5079_v28, %v5078_v17  ;;  %v5081_v13 = vpop.f32.mrb[98].mxu0  ;;  %v5190_v16 = vpop.f32.mrb[96].mxu1  ;;  %v6018_v17 = vld [vmem:[#allocation7 + $0x1c0] sm:$0xff]  }
 0x224   : > { %v5082_v39 = vpop.f32.mrb[99].mxu0  ;;  %v5191_v44 = vpop.f32.mrb[97].mxu1  ;;  %5598 = vmatprep.subr.bf16.mxu0 %v6018_v17 }
 0x225   : > { %v1786_v46 = vadd.f32 %v5080_v58, %v7316_v53  ;;  %v5083_v63 = vadd.f32 %v5082_v39, %v5081_v13  ;;  %v5192_v31 = vadd.f32 %v5191_v44, %v5190_v16  ;;  %v5193_v57 = vpop.f32.mrb[98].mxu1  ;;  %v6017_v53 = vld [vmem:[#allocation7 + $0x118] sm:$0xff]  }
 0x226   : > { %v5194_v48 = vpop.f32.mrb[99].mxu1  ;;  %5493 = vmatpush3.bf16.msra.mxu1 %v6017_v53 }
 0x227   : > { %v1789_v27 = vadd.f32 %v5083_v63, %v7318_v12  ;;  %v5195_v4 = vadd.f32 %v5194_v48, %v5193_v57  ;;  %v7420_v52 = vadd.f32 %v5192_v31, %v1786_v46  ;;  %v6021_v48 = vld [vmem:[#allocation7 + $0x120] sm:$0xff]  }
 0x229   : > { %v5084_v54 = vpop.f32.mrb[100].mxu0  ;;  %v7422_v41 = vadd.f32 %v5195_v4, %v1789_v27 }
 0x22a   : > { %v5085_v34 = vpop.f32.mrb[101].mxu0 }
 0x22b   : > { %v5086_v10 = vadd.f32 %v5085_v34, %v5084_v54  ;;  %v5087_v36 = vpop.f32.mrb[102].mxu0  ;;  %v5196_v43 = vpop.f32.mrb[100].mxu1 }
 0x22c   : > { %v5088_v42 = vpop.f32.mrb[103].mxu0  ;;  %v5197_v55 = vpop.f32.mrb[101].mxu1 }
 0x22d   : > { %v1794_v6 = vadd.f32 %v5086_v10, %v7324_v56  ;;  %v5089_v12 = vadd.f32 %v5088_v42, %v5087_v36  ;;  %v5198_v30 = vadd.f32 %v5197_v55, %v5196_v43  ;;  %v5199_v9 = vpop.f32.mrb[102].mxu1 }
 0x22e   : > { %v5200_v28 = vpop.f32.mrb[103].mxu1 }
 0x22f   : > { %v1797_v26 = vadd.f32 %v5089_v12, %v7326_v35  ;;  %v5201_v58 = vadd.f32 %v5200_v28, %v5199_v9  ;;  %v7426_v39 = vadd.f32 %v5198_v30, %v1794_v6  ;;  %v6020_v35 = vld [vmem:[#allocation7 + $0x160] sm:$0xff]  }
 0x230   : > { %5494 = vmatprep.subr.bf16.mxu1 %v6020_v35 }
 0x231   : > { %v5090_v13 = vpop.f32.mrb[104].mxu0  ;;  %v7428_v44 = vadd.f32 %v5201_v58, %v1797_v26  ;;  %5495 = vmatpush3.bf16.msra.mxu1 %v6021_v48 }
 0x232   : > { %v5091_v46 = vpop.f32.mrb[105].mxu0 }
 0x233   : > { %v5092_v16 = vadd.f32 %v5091_v46, %v5090_v13  ;;  %v5093_v63 = vpop.f32.mrb[106].mxu0  ;;  %v5202_v31 = vpop.f32.mrb[104].mxu1 }
 0x234   : > { %v5094_v56 = vpop.f32.mrb[107].mxu0  ;;  %v5203_v4 = vpop.f32.mrb[105].mxu1 }
 0x235   : > { %v1802_v27 = vadd.f32 %v5092_v16, %v7332_v7  ;;  %v5095_v57 = vadd.f32 %v5094_v56, %v5093_v63  ;;  %v5204_v20 = vadd.f32 %v5203_v4, %v5202_v31  ;;  %v5205_v34 = vpop.f32.mrb[106].mxu1 }
 0x236   : > { %v5206_v10 = vpop.f32.mrb[107].mxu1 }
 0x237   : > { %v1805_v54 = vadd.f32 %v5095_v57, %v7334_v22  ;;  %v5207_v36 = vadd.f32 %v5206_v10, %v5205_v34  ;;  %v7432_v42 = vadd.f32 %v5204_v20, %v1802_v27  ;;  %v6025_v20 = vld [vmem:[#allocation7 + $0x128] sm:$0xff]  }
 0x239   : > { %v5096_v53 = vpop.f32.mrb[108].mxu0  ;;  %v7434_v7 = vadd.f32 %v5207_v36, %v1805_v54  ;;  %v6024_v54 = vld [vmem:[#allocation7 + $0x168] sm:$0xff]  }
 0x23a   : > { %v5097_v6 = vpop.f32.mrb[109].mxu0  ;;  %5496 = vmatprep.subr.bf16.mxu1 %v6024_v54 }
 0x23b   : > { %v5098_v43 = vadd.f32 %v5097_v6, %v5096_v53  ;;  %v5099_v12 = vpop.f32.mrb[110].mxu0  ;;  %v5208_v30 = vpop.f32.mrb[108].mxu1  ;;  %5497 = vmatpush3.bf16.msra.mxu1 %v6025_v20 }
 0x23c   : > { %v5100_v55 = vpop.f32.mrb[111].mxu0  ;;  %v5209_v22 = vpop.f32.mrb[109].mxu1 }
 0x23d   : > { %v1810_v26 = vadd.f32 %v5098_v43, %v7340_v61  ;;  %v5101_v9 = vadd.f32 %v5100_v55, %v5099_v12  ;;  %v5210_v28 = vadd.f32 %v5209_v22, %v5208_v30  ;;  %v5211_v58 = vpop.f32.mrb[110].mxu1 }
 0x23e   : > { %v5212_v13 = vpop.f32.mrb[111].mxu1 }
 0x23f   : > { %v1813_v17 = vadd.f32 %v5101_v9, %v7342_v8  ;;  %v5213_v46 = vadd.f32 %v5212_v13, %v5211_v58  ;;  %v7438_v63 = vadd.f32 %v5210_v28, %v1810_v26 }
 0x241   : > { %v5102_v16 = vpop.f32.mrb[112].mxu0  ;;  %v7440_v57 = vadd.f32 %v5213_v46, %v1813_v17 }
 0x242   : > { %v5103_v56 = vpop.f32.mrb[113].mxu0 }
 0x243   : > { %v5104_v27 = vadd.f32 %v5103_v56, %v5102_v16  ;;  %v5105_v31 = vpop.f32.mrb[114].mxu0  ;;  %v5214_v48 = vpop.f32.mrb[112].mxu1 }
 0x244   : > { %v5106_v35 = vpop.f32.mrb[115].mxu0  ;;  %v5215_v8 = vpop.f32.mrb[113].mxu1 }
 0x245   : > { %v1818_v61 = vadd.f32 %v5104_v27, %v7347_v25  ;;  %v5107_v4 = vadd.f32 %v5106_v35, %v5105_v31  ;;  %v5216_v10 = vadd.f32 %v5215_v8, %v5214_v48  ;;  %v5217_v36 = vpop.f32.mrb[114].mxu1 }
 0x246   : > { %v5218_v53 = vpop.f32.mrb[115].mxu1 }
 0x247   : > { %v1821_v34 = vadd.f32 %v5107_v4, %v7349_v51  ;;  %v5219_v6 = vadd.f32 %v5218_v53, %v5217_v36  ;;  %v7444_v12 = vadd.f32 %v5216_v10, %v1818_v61  ;;  %v6029_v10 = vld [vmem:[#allocation7 + $0x130] sm:$0xff]  }
 0x249   : > { %v5108_v43 = vpop.f32.mrb[116].mxu0  ;;  %v7446_v25 = vadd.f32 %v5219_v6, %v1821_v34  ;;  %v6028_v34 = vld [vmem:[#allocation7 + $0x170] sm:$0xff]  }
 0x24a   : > { %v5109_v55 = vpop.f32.mrb[117].mxu0  ;;  %5498 = vmatprep.subr.bf16.mxu1 %v6028_v34 }
 0x24b   : > { %v5110_v26 = vadd.f32 %v5109_v55, %v5108_v43  ;;  %v5111_v30 = vpop.f32.mrb[118].mxu0  ;;  %v5220_v17 = vpop.f32.mrb[116].mxu1  ;;  %5499 = vmatpush3.bf16.msra.mxu1 %v6029_v10 }
 0x24c   : > { %v5112_v9 = vpop.f32.mrb[119].mxu0  ;;  %v5221_v51 = vpop.f32.mrb[117].mxu1 }
 0x24d   : > { %v1826_v22 = vadd.f32 %v5110_v26, %v7353_v32  ;;  %v5113_v28 = vadd.f32 %v5112_v9, %v5111_v30  ;;  %v5222_v13 = vadd.f32 %v5221_v51, %v5220_v17  ;;  %v5223_v46 = vpop.f32.mrb[118].mxu1 }
 0x24e   : > { %v5224_v16 = vpop.f32.mrb[119].mxu1 }
 0x24f   : > { %v1829_v58 = vadd.f32 %v5113_v28, %v7355_v37  ;;  %v5225_v56 = vadd.f32 %v5224_v16, %v5223_v46  ;;  %v7450_v31 = vadd.f32 %v5222_v13, %v1826_v22 }
 0x251   : > { %v5114_v27 = vpop.f32.mrb[120].mxu0  ;;  %v7452_v4 = vadd.f32 %v5225_v56, %v1829_v58 }
 0x252   : > { %v5115_v35 = vpop.f32.mrb[121].mxu0 }
 0x253   : > { %v5116_v61 = vadd.f32 %v5115_v35, %v5114_v27  ;;  %v5117_v48 = vpop.f32.mrb[122].mxu0  ;;  %v5226_v20 = vpop.f32.mrb[120].mxu1 }
 0x254   : > { %v5118_v54 = vpop.f32.mrb[123].mxu0  ;;  %v5227_v37 = vpop.f32.mrb[121].mxu1 }
 0x255   : > { %v1834_v32 = vadd.f32 %v5116_v61, %v7359_v45  ;;  %v5119_v8 = vadd.f32 %v5118_v54, %v5117_v48  ;;  %v5228_v53 = vadd.f32 %v5227_v37, %v5226_v20  ;;  %v5229_v6 = vpop.f32.mrb[122].mxu1 }
 0x256   : > { %v5230_v43 = vpop.f32.mrb[123].mxu1 }
 0x257   : > { %v1837_v36 = vadd.f32 %v5119_v8, %v7361_v15  ;;  %v5231_v55 = vadd.f32 %v5230_v43, %v5229_v6  ;;  %v7456_v30 = vadd.f32 %v5228_v53, %v1834_v32  ;;  %v6032_v53 = vld [vmem:[#allocation7 + $0x178] sm:$0xff]  }
 0x258   : > { %v6033_v6 = vld [vmem:[#allocation7 + $0x138] sm:$0xff]   ;;  %5500 = vmatprep.subr.bf16.mxu1 %v6032_v53 }
 0x259   : > { %v5120_v26 = vpop.f32.mrb[124].mxu0  ;;  %v7458_v45 = vadd.f32 %v5231_v55, %v1837_v36  ;;  %5501 = vmatpush3.bf16.msra.mxu1 %v6033_v6 }
 0x25a   : > { %v5121_v9 = vpop.f32.mrb[125].mxu0 }
 0x25b   : > { %v5122_v22 = vadd.f32 %v5121_v9, %v5120_v26  ;;  %v5123_v17 = vpop.f32.mrb[126].mxu0  ;;  %v5232_v58 = vpop.f32.mrb[124].mxu1 }
 0x25c   : > { %v5124_v28 = vpop.f32.mrb[127].mxu0  ;;  %v5233_v15 = vpop.f32.mrb[125].mxu1 }
 0x25d   : > { %v1842_v51 = vadd.f32 %v5122_v22, %v7365_v29  ;;  %v5125_v13 = vadd.f32 %v5124_v28, %v5123_v17  ;;  %v5234_v16 = vadd.f32 %v5233_v15, %v5232_v58  ;;  %v5235_v56 = vpop.f32.mrb[126].mxu1 }
 0x25e   : > { %v5236_v27 = vpop.f32.mrb[127].mxu1 }
 0x25f   : > { %v1845_v46 = vadd.f32 %v5125_v13, %v7367_v24  ;;  %v5237_v35 = vadd.f32 %v5236_v27, %v5235_v56  ;;  %v7462_v48 = vadd.f32 %v5234_v16, %v1842_v51 }
 0x261   : > { %v5752_v61 = vpop.f32.mrb[128].mxu0  ;;  %v7466_v34 = vadd.f32 %v5237_v35, %v1845_v46 }
 0x262   : > { %v2052_v54 = vadd.f32 %v5752_v61, %v7378_v60  ;;  %v2043_v32 = vpop.f32.mrb[129].mxu0 }
 0x263   : > { %v2044_v20 = vadd.f32 %v2043_v32, %v7372_v3  ;;  %v5753_v8 = vpop.f32.mrb[130].mxu0 }
 0x264   : > { %v2172_v29 = vmax.f32 %v2052_v54, 0.0  ;;  %v2055_v10 = vadd.f32 %v5753_v8, %v7380_v1  ;;  %v2046_v37 = vpop.f32.mrb[131].mxu0 }
 0x265   : > { %v2170_v24 = vmax.f32 %v2044_v20, 0.0  ;;  %v2047_v36 = vadd.f32 %v2046_v37, %v7374_v38 }
 0x266   : > { %v2237_v43 = vrot.slane %v2172_v29, 7  ;;  %v2173_v55 = vmax.f32 %v2055_v10, 0.0  ;;  %v7549_v29 = vld [vmem:[#allocation7 + $0x200] sm:$0xff]  }
 0x267   : > { %v2234_v26 = vrot.slane %v2170_v24, 7  ;;  %v2171_v9 = vmax.f32 %v2047_v36, 0.0  ;;  %5782 = vmatprep.subr.bf16.mxu1 %v7549_v29 }
 0x268   : > { %v7471_v60 = vsel %vm337_vm0, 0.0, %v2237_v43  ;;  %v2238_v3 = vrot.slane %v2173_v55, 7 }
 0x269   : > { %v2397_v22 = vrot.slane %v7471_v60, 1  ;;  %v2330_v1 = vsel %vm337_vm0, 0.0, %v2234_v26  ;;  %v2235_v17 = vrot.slane %v2171_v9, 7  ;;  %v5756_v28 = vpop.f32.mrb[132].mxu0 }
 0x26a   : > { %v2392_v51 = vrot.slane %v2330_v1, 1  ;;  %v7477_v58 = vsel %vm337_vm0, %v2237_v43, %v2238_v3  ;;  %v7480_v13 = vsel %vm337_vm0, %v2238_v3, 0.0  ;;  %v2059_v15 = vpop.f32.mrb[133].mxu0  ;;  %v2497_v46 = vrot.slane %v2330_v1, 2 }
 0x26b   : > { %v2398_v16 = vrot.slane %v7477_v58, 1  ;;  %v2400_v56 = vrot.slane %v7480_v13, 1  ;;  %v5757_v35 = vpop.f32.mrb[134].mxu0  ;;  %v7486_v61 = vsel %vm337_vm0, %v2234_v26, %v2235_v17  ;;  %v7489_v54 = vsel %vm337_vm0, %v2235_v17, 0.0 }
 0x26c   : > { %v2068_v32 = vadd.f32 %v5756_v28, %v7390_v18  ;;  %v2060_v20 = vadd.f32 %v2059_v15, %v7384_v19  ;;  %v2062_v8 = vpop.f32.mrb[135].mxu0  ;;  %v2393_v10 = vrot.slane %v7486_v61, 1  ;;  %v2395_v37 = vrot.slane %v7489_v54, 1 }
 0x26d   : > { %v2498_v24 = vrot.slane %v7486_v61, 2  ;;  %v2071_v6 = vadd.f32 %v5757_v35, %v7392_v11  ;;  %v2063_v55 = vadd.f32 %v2062_v8, %v7386_v5  ;;  %v4601_v9 = vpack.c.bf16 %v7486_v61, %v2234_v26  ;;  %v6022_v35 = vld [vmem:[#allocation7 + $0x1c8] sm:$0xff]  }
 0x26e   : > { %v2176_v36 = vmax.f32 %v2068_v32, 0.0  ;;  %v2174_v53 = vmax.f32 %v2060_v20, 0.0  ;;  %v7501_v18 = vpack.c.bf16 %v7477_v58, %v2237_v43  ;;  %v2394_v19 = vsel %vm497_vm2, %v2392_v51, %v2393_v10  ;;  %v6019_v32 = vld [vmem:[#allocation7 + $0x180] sm:$0xff]  }
 0x26f   : > { %v2396_v3 = vsel %vm497_vm2, %v2393_v10, %v2395_v37  ;;  %v2177_v28 = vmax.f32 %v2071_v6, 0.0  ;;  %v2175_v15 = vmax.f32 %v2063_v55, 0.0  ;;  %4662 = vmatprep.mubr.msk.bf16.mxu0 %vm6492_vm5, %v4601_v9  ;;  %v2399_v26 = vsel %vm497_vm2, %v2397_v22, %v2398_v16  ;;  %v6026_v22 = vld [vmem:[#allocation7 + $0x1d0] sm:$0xff]  }
 0x270   : > { %v7505_v1 = vrot.slane %v2176_v36, 7  ;;  %v2240_v17 = vrot.slane %v2174_v53, 7  ;;  %v7509_v5 = vpack.c.bf16 %v2396_v3, %v2394_v19  ;;  %v2401_v43 = vsel %vm497_vm2, %v2398_v16, %v2400_v56  ;;  %3443 = vmatmul.mubr.bf16.vlgmr.msra.gmra.mrb[160].mxu0 %v8882_v33  ;;  %v6023_v3 = vld [vmem:[#allocation7 + $0x188] sm:$0xff]  }
 0x271   : > { %v5760_v11 = vpop.f32.mrb[136].mxu0  ;;  %v2499_v51 = vsel %vm606_vm3, %v2497_v46, %v2498_v24  ;;  %v2244_v8 = vrot.slane %v2177_v28, 7  ;;  %v2241_v10 = vrot.slane %v2175_v15, 7  ;;  %v2500_v36 = vrot.slane %v7489_v54, 2  ;;  %4666 = vmatprep.mubr.msk.bf16.mxu0 %vm6492_vm5, %v7501_v18  ;;  %5599 = vmatpush3.bf16.msra.mxu0 %v6019_v32 }
 0x272   : > { %v7516_v61 = vsel %vm337_vm0, 0.0, %v7505_v1  ;;  %v7519_v20 = vsel %vm337_vm0, 0.0, %v2240_v17  ;;  %v2075_v37 = vpop.f32.mrb[137].mxu0  ;;  %3289 = vmatprep.mubr.bf16.mxu1 %v7509_v5  ;;  %5600 = vmatprep.subr.bf16.mxu0 %v6022_v35  ;;  %v2084_v28 = vadd.f32 %v5760_v11, %v7402_v47  ;;  %v7558_v27 = vpack.c.bf16 %v2401_v43, %v2399_v26  ;;  %v6027_v26 = vld [vmem:[#allocation7 + $0x190] sm:$0xff]  }
 0x273   : > { %v2402_v46 = vrot.slane %v7519_v20, 1  ;;  %v5761_v56 = vpop.f32.mrb[138].mxu0  ;;  %v7532_v53 = vsel %vm337_vm0, %v7505_v1, %v2244_v8  ;;  %v7535_v6 = vsel %vm337_vm0, %v2244_v8, 0.0  ;;  %v7538_v54 = vsel %vm337_vm0, %v2240_v17, %v2241_v10  ;;  %4602 = vmatmul.mubr.msk.bf16.gmra.mrb[132].mxu1 %vm6492_vm5, %v4601_v9 }
 0x274   : > { %v7541_v55 = vsel %vm337_vm0, %v2241_v10, 0.0  ;;  %v2078_v19 = vpop.f32.mrb[139].mxu0  ;;  %v2403_v38 = vrot.slane %v7538_v54, 1  ;;  %v2076_v15 = vadd.f32 %v2075_v37, %v7396_v2  ;;  %v2087_v16 = vadd.f32 %v5761_v56, %v7404_v0  ;;  %3297 = vmatprep.mubr.bf16.mxu1 %v7558_v27 }
 0x275   : > { %v2405_v9 = vrot.slane %v7541_v55, 1  ;;  %v2079_v35 = vadd.f32 %v2078_v19, %v7398_v23  ;;  %v2501_v10 = vsel %vm606_vm3, %v2498_v24, %v2500_v36  ;;  %v7564_v8 = vpack.c.bf16 %v7538_v54, %v2240_v17  ;;  %5601 = vmatpush3.bf16.msra.mxu0 %v6023_v3 }
 0x276   : > { %v2404_v33 = vsel %vm497_vm2, %v2402_v46, %v2403_v38  ;;  %v2180_v32 = vmax.f32 %v2084_v28, 0.0  ;;  %v2178_v47 = vmax.f32 %v2076_v15, 0.0  ;;  %v2181_v11 = vmax.f32 %v2087_v16, 0.0  ;;  %5602 = vmatprep.subr.bf16.mxu0 %v6026_v22  ;;  %v6030_v16 = vld [vmem:[#allocation7 + $0x1d8] sm:$0xff]  }
 0x277   : > { %8883 = vst [vmem:[#allocation14_spill] sm:$0xff] %v7564_v8  ;;  %v7568_v2 = vpack.c.bf16 %v2501_v10, %v2499_v51  ;;  %v2179_v43 = vmax.f32 %v2079_v35, 0.0  ;;  %v2406_v17 = vsel %vm497_vm2, %v2403_v38, %v2405_v9  ;;  %v8884_v37 = vrot.slane %v7477_v58, 2 }
 0x278   : > { %v8885_v36 = vrot.slane %v7471_v60, 2  ;;  %v7577_v56 = vrot.slane %v2180_v32, 7  ;;  %v7579_v51 = vrot.slane %v2178_v47, 7  ;;  %v2250_v19 = vrot.slane %v2181_v11, 7  ;;  %v6037_v47 = vld [vmem:[#allocation7 + $0x1a8] sm:$0xff]  }
 0x279   : > { %v5764_v0 = vpop.f32.mrb[140].mxu0  ;;  %3451 = vmatmul.mubr.bf16.gmra.mrb[164].mxu0 %v7568_v2  ;;  %v2247_v3 = vrot.slane %v2179_v43, 7  ;;  %v7590_v28 = vpack.c.bf16 %v2406_v17, %v2404_v33  ;;  %v8887_v43 = vrot.slane %v7480_v13, 2  ;;  %v6038_v13 = vld [vmem:[#allocation7 + $0x1f0] sm:$0xff]  }
 0x27a   : > { %v2100_v23 = vadd.f32 %v5764_v0, %v7414_v62  ;;  %v2091_v24 = vpop.f32.mrb[141].mxu0  ;;  %v2504_v46 = vsel %vm606_vm3, %v8885_v36, %v8884_v37  ;;  %4670 = vmatprep.mubr.msk.bf16.mxu0 %vm6492_vm5, %v7564_v8  ;;  %v7594_v10 = vsel %vm337_vm0, 0.0, %v7577_v56  ;;  %v7602_v9 = vsel %vm337_vm0, %v7577_v56, %v2250_v19  ;;  %5603 = vmatpush3.bf16.msra.mxu0 %v6027_v26  ;;  %v6034_v0 = vld [vmem:[#allocation7 + $0x1e0] sm:$0xff]  }
 0x27b   : > { %v2092_v22 = vadd.f32 %v2091_v24, %v7408_v14  ;;  %v5765_v62 = vpop.f32.mrb[142].mxu0  ;;  %4606 = vmatmul.mubr.msk.bf16.gmra.mrb[136].mxu1 %vm6492_vm5, %v7501_v18  ;;  %8886 = vst [vmem:[#allocation16_spill] sm:$0xff] %v7590_v28  ;;  %v7598_v14 = vsel %vm337_vm0, 0.0, %v7579_v51  ;;  %v7605_v32 = vsel %vm337_vm0, %v2250_v19, 0.0  ;;  %5604 = vmatprep.subr.bf16.mxu0 %v6030_v16  ;;  %v7618_v17 = vsel %vm337_vm0, %v7579_v51, %v2247_v3  ;;  %v6035_v26 = vld [vmem:[#allocation7 + $0x1a0] sm:$0xff]   ;;  %v6036_v16 = vld [vmem:[#allocation7 + $0x1e8] sm:$0xff]  }
 0x27c   : > { %v2184_v38 = vmax.f32 %v2100_v23, 0.0  ;;  %v2103_v60 = vadd.f32 %v5765_v62, %v7416_v49  ;;  %v2094_v15 = vpop.f32.mrb[143].mxu0  ;;  %v6031_v49 = vld [vmem:[#allocation7 + $0x198] sm:$0xff]   ;;  %3305 = vmatprep.mubr.bf16.mxu1 %v7590_v28  ;;  %v7621_v37 = vsel %vm337_vm0, %v2247_v3, 0.0 }
 0x27d   : > { %v2182_v19 = vmax.f32 %v2092_v22, 0.0  ;;  %v2095_v22 = vadd.f32 %v2094_v15, %v7410_v40 }
 0x27e   : > { %v7623_v36 = vrot.slane %v2184_v38, 7  ;;  %5605 = vmatpush3.bf16.msra.mxu0 %v6031_v49  ;;  %v2185_v38 = vmax.f32 %v2103_v60, 0.0  ;;  %v8888_v49 = vrot.slane %v7477_v58, 2 }
 0x27f   : > { %v7633_v3 = vrot.slane %v2182_v19, 7  ;;  %5606 = vmatprep.subr.bf16.mxu0 %v6034_v0  ;;  %v7645_v19 = vpack.c.bf16 %v7532_v53, %v7505_v1  ;;  %v2183_v0 = vmax.f32 %v2095_v22, 0.0 }
 0x280   : > { %v7631_v35 = vsel %vm337_vm0, 0.0, %v7623_v36  ;;  %v2506_v62 = vsel %vm606_vm3, %v8888_v49, %v8887_v43  ;;  %v2256_v15 = vrot.slane %v2185_v38, 7 }
 0x281   : > { %v5768_v24 = vpop.f32.mrb[144].mxu0  ;;  %8889 = vst [vmem:[#allocation15_spill] sm:$0xff] %v7645_v19  ;;  %v7649_v40 = vsel %vm337_vm0, 0.0, %v7633_v3  ;;  %v7651_v11 = vpack.c.bf16 %v2506_v62, %v2504_v46  ;;  %v2253_v62 = vrot.slane %v2183_v0, 7  ;;  %v6041_v0 = vld [vmem:[#allocation7 + $0x1f8] sm:$0xff]  }
 0x282   : > { %v2107_v23 = vpop.f32.mrb[145].mxu0  ;;  %v2116_v1 = vadd.f32 %v5768_v24, %v7426_v39  ;;  %5607 = vmatpush3.bf16.msra.mxu0 %v6035_v26  ;;  %v7662_v38 = vsel %vm337_vm0, %v7623_v36, %v2256_v15  ;;  %v7665_v46 = vsel %vm337_vm0, %v2256_v15, 0.0  ;;  %v8892_v39 = vrot.slane %v7535_v6, 1 }
 0x283   : > { %v5769_v60 = vpop.f32.mrb[146].mxu0  ;;  %4610 = vmatmul.mubr.msk.bf16.gmra.mrb[140].mxu1 %vm6492_vm5, %v7564_v8  ;;  %v2108_v49 = vadd.f32 %v2107_v23, %v7420_v52  ;;  %3459 = vmatmul.mubr.bf16.gmra.mrb[168].mxu0 %v7651_v11  ;;  %v7678_v26 = vsel %vm337_vm0, %v7633_v3, %v2253_v62  ;;  %v6039_v52 = vld [vmem:[#allocation7 + $0x1b0] sm:$0xff]   ;;  %v8896_v8 = vrot.slane %v7541_v55, 2  ;;  %v8902_v55 = vrot.slane %v7598_v14, 1 }
 0x284   : > { %v2110_v58 = vpop.f32.mrb[147].mxu0  ;;  %v2119_v22 = vadd.f32 %v5769_v60, %v7428_v44  ;;  %5608 = vmatprep.subr.bf16.mxu0 %v6036_v16  ;;  %4674 = vmatprep.mubr.msk.bf16.mxu0 %vm6492_vm5, %v7645_v19  ;;  %v7681_v44 = vsel %vm337_vm0, %v2253_v62, 0.0  ;;  %v2188_v16 = vmax.f32 %v2116_v1, 0.0  ;;  %v8890_v62 = vrot.slane %v7532_v53, 1 }
 0x285   : > { %v2186_v60 = vmax.f32 %v2108_v49, 0.0  ;;  %v8891_v1 = vrot.slane %v7516_v61, 1 }
 0x286   : > { %5609 = vmatpush3.bf16.msra.mxu0 %v6037_v47  ;;  %v7687_v43 = vrot.slane %v2188_v16, 7  ;;  %v2189_v21 = vmax.f32 %v2119_v22, 0.0  ;;  %v8893_v24 = vmov %v8890_v62  ;;  %v2111_v16 = vadd.f32 %v2110_v58, %v7422_v41 }
 0x287   : > { %v7689_v33 = vrot.slane %v2186_v60, 7  ;;  %v2409_v49 = vsel %vm497_vm2, %v8891_v1, %v8890_v62  ;;  %5610 = vmatprep.subr.bf16.mxu0 %v6038_v13  ;;  %v2411_v47 = vsel %vm497_vm2, %v8893_v24, %v8892_v39  ;;  %v8894_v60 = vrot.slane %v7538_v54, 2 }
 0x288   : > { %v8895_v22 = vrot.slane %v7519_v20, 2  ;;  %v7714_v28 = vsel %vm337_vm0, 0.0, %v7687_v43  ;;  %v2262_v58 = vrot.slane %v2189_v21, 7  ;;  %v7720_v39 = vpack.c.bf16 %v2411_v47, %v2409_v49 }
 0x289   : > { %v5772_v23 = vpop.f32.mrb[148].mxu0  ;;  %v8897_v62 = vmov %v8894_v60  ;;  %v7718_v41 = vsel %vm337_vm0, 0.0, %v7689_v33  ;;  %v2187_v21 = vmax.f32 %v2111_v16, 0.0  ;;  %v8901_v47 = vrot.slane %v7618_v17, 1 }
 0x28a   : > { %v2123_v15 = vpop.f32.mrb[149].mxu0  ;;  %v2509_v59 = vsel %vm606_vm3, %v8895_v22, %v8894_v60  ;;  %v2511_v13 = vsel %vm606_vm3, %v8897_v62, %v8896_v8  ;;  %8898 = vst [vmem:[#allocation17_spill] sm:$0xff] %v7720_v39  ;;  %5611 = vmatpush3.bf16.msra.mxu0 %v6039_v52  ;;  %v6042_v60 = vld [vmem:[#allocation7 + $0x1b8] sm:$0xff]   ;;  %v7728_v22 = vsel %vm337_vm0, %v7687_v43, %v2262_v58  ;;  %v7731_v62 = vsel %vm337_vm0, %v2262_v58, 0.0 }
 0x28b   : > { %v5773_v1 = vpop.f32.mrb[150].mxu0  ;;  %3313 = vmatprep.mubr.bf16.mxu1 %v7720_v39  ;;  %v7734_v49 = vpack.c.bf16 %v2511_v13, %v2509_v59  ;;  %5612 = vmatprep.subr.bf16.mxu0 %v6041_v0  ;;  %v2259_v58 = vrot.slane %v2187_v21, 7  ;;  %v7746_v59 = vpack.c.bf16 %v7618_v17, %v7579_v51  ;;  %v2132_v0 = vadd.f32 %v5772_v23, %v7438_v63 }
 0x28c   : > { %v2126_v20 = vpop.f32.mrb[151].mxu0  ;;  %4614 = vmatmul.mubr.msk.bf16.gmra.mrb[144].mxu1 %vm6492_vm5, %v7645_v19  ;;  %v2124_v16 = vadd.f32 %v2123_v15, %v7432_v42  ;;  %v2135_v13 = vadd.f32 %v5773_v1, %v7440_v57  ;;  %v2414_v52 = vsel %vm497_vm2, %v8902_v55, %v8901_v47  ;;  %v8903_v21 = vrot.slane %v7621_v37, 1 }
 0x28d   : > { %8899 = vst [vmem:[#allocation18_spill] sm:$0xff] %v7734_v49  ;;  %3467 = vmatmul.mubr.bf16.gmra.mrb[172].mxu0 %v7734_v49  ;;  %8900 = vst [vmem:[#allocation19_spill] sm:$0xff] %v7746_v59  ;;  %v8904_v54 = vmov %v8901_v47  ;;  %v2127_v51 = vadd.f32 %v2126_v20, %v7434_v7  ;;  %v7764_v42 = vsel %vm337_vm0, %v7689_v33, %v2259_v58  ;;  %v7767_v63 = vsel %vm337_vm0, %v2259_v58, 0.0 }
 0x28e   : > { %v2416_v8 = vsel %vm497_vm2, %v8904_v54, %v8903_v21  ;;  %5613 = vmatpush3.bf16.msra.mxu0 %v6042_v60  ;;  %4678 = vmatprep.mubr.msk.bf16.mxu0 %vm6492_vm5, %v7746_v59  ;;  %v2192_v57 = vmax.f32 %v2132_v0, 0.0  ;;  %v2190_v23 = vmax.f32 %v2124_v16, 0.0  ;;  %v2193_v58 = vmax.f32 %v2135_v13, 0.0 }
 0x28f   : > { %v7780_v21 = vpack.c.bf16 %v2416_v8, %v2414_v52  ;;  %v2191_v0 = vmax.f32 %v2127_v51, 0.0  ;;  %v8906_v16 = vrot.slane %v7532_v53, 2  ;;  %v8907_v1 = vrot.slane %v7516_v61, 2 }
 0x290   : > { %v7776_v60 = vrot.slane %v2192_v57, 7  ;;  %v7778_v47 = vrot.slane %v2190_v23, 7  ;;  %v8908_v20 = vrot.slane %v7535_v6, 2  ;;  %v7794_v23 = vpack.c.bf16 %v7602_v9, %v7577_v56 }
 0x291   : > { %v5776_v24 = vpop.f32.mrb[152].mxu0  ;;  %8905 = vst [vmem:[#allocation20_spill] sm:$0xff] %v7780_v21  ;;  %v2514_v7 = vsel %vm606_vm3, %v8907_v1, %v8906_v16  ;;  %v8909_v55 = vmov %v8906_v16  ;;  %v2268_v61 = vrot.slane %v2193_v58, 7  ;;  %3321 = vmatprep.mubr.bf16.mxu1 %v7780_v21 }
 0x292   : > { %v2139_v15 = vpop.f32.mrb[153].mxu0  ;;  %v2516_v57 = vsel %vm606_vm3, %v8909_v55, %v8908_v20  ;;  %v7798_v8 = vsel %vm337_vm0, 0.0, %v7776_v60  ;;  %v7802_v52 = vsel %vm337_vm0, 0.0, %v7778_v47  ;;  %v2148_v55 = vadd.f32 %v5776_v24, %v7450_v31 }
 0x293   : > { %v5777_v54 = vpop.f32.mrb[154].mxu0  ;;  %v7805_v6 = vpack.c.bf16 %v2516_v57, %v2514_v7  ;;  %v7816_v1 = vsel %vm337_vm0, %v7776_v60, %v2268_v61  ;;  %v7819_v20 = vsel %vm337_vm0, %v2268_v61, 0.0  ;;  %v2265_v7 = vrot.slane %v2191_v0, 7 }
 0x294   : > { %v2142_v19 = vpop.f32.mrb[155].mxu0  ;;  %4618 = vmatmul.mubr.msk.bf16.gmra.mrb[148].mxu1 %vm6492_vm5, %v7746_v59  ;;  %v2196_v31 = vmax.f32 %v2148_v55, 0.0  ;;  %v2140_v24 = vadd.f32 %v2139_v15, %v7444_v12  ;;  %v2151_v39 = vadd.f32 %v5777_v54, %v7452_v4  ;;  %v8912_v55 = vrot.slane %v7594_v10, 1 }
 0x295   : > { %8910 = vst [vmem:[#allocation21_spill] sm:$0xff] %v7805_v6  ;;  %3475 = vmatmul.mubr.bf16.gmra.mrb[176].mxu0 %v7805_v6  ;;  %v7832_v0 = vsel %vm337_vm0, %v7778_v47, %v2265_v7  ;;  %v7835_v61 = vsel %vm337_vm0, %v2265_v7, 0.0  ;;  %v8911_v7 = vrot.slane %v7602_v9, 1  ;;  %v8913_v57 = vrot.slane %v7605_v32, 1 }
 0x296   : > { %4682 = vmatprep.mubr.msk.bf16.mxu0 %vm6492_vm5, %v7794_v23  ;;  %v7842_v59 = vrot.slane %v2196_v31, 7  ;;  %v2194_v21 = vmax.f32 %v2140_v24, 0.0  ;;  %v2143_v51 = vadd.f32 %v2142_v19, %v7446_v25  ;;  %v8915_v31 = vrot.slane %v7618_v17, 2 }
 0x297   : > { %v2419_v12 = vsel %vm497_vm2, %v8912_v55, %v8911_v7  ;;  %v8914_v56 = vmov %v8911_v7  ;;  %v8916_v24 = vrot.slane %v7598_v14, 2  ;;  %v8917_v54 = vrot.slane %v7621_v37, 2 }
 0x298   : > { %v2421_v16 = vsel %vm497_vm2, %v8914_v56, %v8913_v57  ;;  %v8918_v6 = vmov %v8915_v31  ;;  %v7868_v55 = vsel %vm337_vm0, 0.0, %v7842_v59  ;;  %v7870_v49 = vrot.slane %v2194_v21, 7 }
 0x299   : > { %v5780_v13 = vpop.f32.mrb[156].mxu0  ;;  %v2519_v4 = vsel %vm606_vm3, %v8916_v24, %v8915_v31  ;;  %v2521_v7 = vsel %vm606_vm3, %v8918_v6, %v8917_v54  ;;  %v2197_v56 = vmax.f32 %v2151_v39, 0.0  ;;  %v7872_v25 = vpack.c.bf16 %v2421_v16, %v2419_v12 }
 0x29a   : > { %v2155_v58 = vpop.f32.mrb[157].mxu0  ;;  %v2195_v57 = vmax.f32 %v2143_v51, 0.0  ;;  %v7876_v31 = vpack.c.bf16 %v2521_v7, %v2519_v4  ;;  %v7880_v17 = vsel %vm337_vm0, 0.0, %v7870_v49  ;;  %v7885_v21 = vpack.c.bf16 %v7678_v26, %v7633_v3 }
 0x29b   : > { %v5781_v53 = vpop.f32.mrb[158].mxu0  ;;  %v2274_v37 = vrot.slane %v2197_v56, 7  ;;  %3329 = vmatprep.mubr.bf16.mxu1 %v7872_v25  ;;  %v2164_v39 = vadd.f32 %v5780_v13, %v7462_v48  ;;  %v2156_v12 = vadd.f32 %v2155_v58, %v7456_v30  ;;  %v8922_v58 = vrot.slane %v7681_v44, 1 }
 0x29c   : > { %v2158_v15 = vpop.f32.mrb[159].mxu0  ;;  %8919 = vst [vmem:[#allocation22_spill] sm:$0xff] %v7885_v21  ;;  %v2271_v51 = vrot.slane %v2195_v57, 7  ;;  %4622 = vmatmul.mubr.msk.bf16.gmra.mrb[152].mxu1 %vm6492_vm5, %v7794_v23  ;;  %v2167_v13 = vadd.f32 %v5781_v53, %v7466_v34  ;;  %v8932_v34 = vrot.slane %v7678_v26, 2  ;;  %v8049_v19 = vpack.c.bf16 %v7728_v22, %v7687_v43 }
 0x29d   : > { %3483 = vmatmul.mubr.bf16.gmra.mrb[180].mxu0 %v7876_v31  ;;  %v7897_v24 = vsel %vm337_vm0, %v7842_v59, %v2274_v37  ;;  %v7900_v3 = vsel %vm337_vm0, %v2274_v37, 0.0  ;;  %v2200_v48 = vmax.f32 %v2164_v39, 0.0  ;;  %v2198_v37 = vmax.f32 %v2156_v12, 0.0 }
 0x29e   : > { %4686 = vmatprep.mubr.msk.bf16.mxu0 %vm6492_vm5, %v7885_v21  ;;  %v7912_v7 = vsel %vm337_vm0, %v7870_v49, %v2271_v51  ;;  %v7915_v56 = vsel %vm337_vm0, %v2271_v51, 0.0  ;;  %v2201_v4 = vmax.f32 %v2167_v13, 0.0  ;;  %v8920_v51 = vrot.slane %v7678_v26, 1 }
 0x29f   : > { %v7917_v57 = vrot.slane %v2200_v48, 7  ;;  %v7927_v30 = vrot.slane %v2198_v37, 7  ;;  %v8921_v48 = vrot.slane %v7649_v40, 1  ;;  %v2159_v37 = vadd.f32 %v2158_v15, %v7458_v45 }
 0x2a0   : > { %v8923_v6 = vmov %v8920_v51  ;;  %v2280_v16 = vrot.slane %v2201_v4, 7  ;;  %v8926_v45 = vrot.slane %v7605_v32, 2 }
 0x2a1   : > { %v7925_v54 = vsel %vm337_vm0, 0.0, %v7917_v57  ;;  %v2424_v12 = vsel %vm497_vm2, %v8921_v48, %v8920_v51  ;;  %v2426_v39 = vsel %vm497_vm2, %v8923_v6, %v8922_v58  ;;  %v7944_v13 = vsel %vm337_vm0, 0.0, %v7927_v30 }
 0x2a2   : > { %v7946_v53 = vpack.c.bf16 %v2426_v39, %v2424_v12  ;;  %v8924_v51 = vrot.slane %v7602_v9, 2  ;;  %v8925_v48 = vrot.slane %v7594_v10, 2  ;;  %v2199_v6 = vmax.f32 %v2159_v37, 0.0 }
 0x2a3   : > { %v7962_v4 = vsel %vm337_vm0, %v7917_v57, %v2280_v16  ;;  %v7965_v39 = vsel %vm337_vm0, %v2280_v16, 0.0  ;;  %v7972_v12 = vpack.c.bf16 %v7662_v38, %v7623_v36  ;;  %v8929_v36 = vrot.slane %v7631_v35, 1 }
 0x2a4   : > { %v2524_v14 = vsel %vm606_vm3, %v8925_v48, %v8924_v51  ;;  %v8927_v15 = vmov %v8924_v51  ;;  %3337 = vmatprep.mubr.bf16.mxu1 %v7946_v53  ;;  %v2277_v16 = vrot.slane %v2199_v6, 7  ;;  %v8933_v51 = vrot.slane %v7649_v40, 2 }
 0x2a5   : > { %v2526_v58 = vsel %vm606_vm3, %v8927_v15, %v8926_v45  ;;  %4626 = vmatmul.mubr.msk.bf16.gmra.mrb[156].mxu1 %vm6492_vm5, %v7885_v21  ;;  %v8930_v45 = vrot.slane %v7665_v46, 1  ;;  %v8936_v40 = vrot.slane %v7764_v42, 1 }
 0x2a6   : > { %v7968_v10 = vpack.c.bf16 %v2526_v58, %v2524_v14  ;;  %v8928_v14 = vrot.slane %v7662_v38, 1  ;;  %v2529_v6 = vsel %vm606_vm3, %v8933_v51, %v8932_v34 }
 0x2a8   : > { %3491 = vmatmul.mubr.bf16.gmra.mrb[184].mxu0 %v7968_v10  ;;  %v2429_v48 = vsel %vm497_vm2, %v8929_v36, %v8928_v14  ;;  %v8931_v15 = vmov %v8928_v14  ;;  %v8934_v14 = vrot.slane %v7681_v44, 2  ;;  %v8935_v36 = vmov %v8932_v34 }
 0x2a9   : > { %v2431_v58 = vsel %vm497_vm2, %v8931_v15, %v8930_v45  ;;  %4690 = vmatprep.mubr.msk.bf16.mxu0 %vm6492_vm5, %v7972_v12  ;;  %v8009_v45 = vpack.c.bf16 %v7764_v42, %v7689_v33  ;;  %v8937_v34 = vrot.slane %v7718_v41, 1  ;;  %v8021_v44 = vsel %vm337_vm0, %v2277_v16, 0.0 }
 0x2aa   : > { %v8000_v37 = vpack.c.bf16 %v2431_v58, %v2429_v48  ;;  %v2531_v9 = vsel %vm606_vm3, %v8935_v36, %v8934_v14  ;;  %v8018_v48 = vsel %vm337_vm0, %v7927_v30, %v2277_v16  ;;  %v8938_v15 = vrot.slane %v7767_v63, 1 }
 0x2ab   : > { %v2434_v51 = vsel %vm497_vm2, %v8937_v34, %v8936_v40  ;;  %v8023_v26 = vpack.c.bf16 %v2531_v9, %v2529_v6  ;;  %v8939_v33 = vmov %v8936_v40  ;;  %v2463_v36 = vrot.slane %v8018_v48, 1 }
 0x2ac   : > { %v2436_v58 = vsel %vm497_vm2, %v8939_v33, %v8938_v15  ;;  %v2465_v40 = vrot.slane %v8021_v44, 1  ;;  %v2568_v34 = vrot.slane %v8018_v48, 2  ;;  %3345 = vmatprep.mubr.bf16.mxu1 %v8000_v37  ;;  %v8940_v9 = vrot.slane %v7662_v38, 2 }
 0x2ad   : > { %v8035_v16 = vpack.c.bf16 %v2436_v58, %v2434_v51  ;;  %v8941_v6 = vrot.slane %v7631_v35, 2  ;;  %v8942_v15 = vrot.slane %v7665_v46, 2  ;;  %v8944_v51 = vrot.slane %v7728_v22, 1  ;;  %4630 = vmatmul.mubr.msk.bf16.gmra.mrb[160].mxu1 %vm6492_vm5, %v7972_v12 }
 0x2ae   : > { %v8943_v33 = vmov %v8940_v9  ;;  %v8945_v58 = vrot.slane %v7714_v28, 1 }
 0x2af   : > { %v2534_v32 = vsel %vm606_vm3, %v8941_v6, %v8940_v9  ;;  %v2536_v14 = vsel %vm606_vm3, %v8943_v33, %v8942_v15  ;;  %v8946_v9 = vrot.slane %v7731_v62, 1  ;;  %v8947_v46 = vmov %v8944_v51  ;;  %3353 = vmatprep.mubr.bf16.mxu1 %v8035_v16 }
 0x2b0   : > { %v8051_v21 = vpack.c.bf16 %v2536_v14, %v2534_v32  ;;  %v2439_v35 = vsel %vm497_vm2, %v8945_v58, %v8944_v51  ;;  %v8948_v6 = vrot.slane %v7764_v42, 2  ;;  %v8949_v15 = vrot.slane %v7718_v41, 2  ;;  %3499 = vmatmul.mubr.bf16.gmra.mrb[188].mxu0 %v8023_v26 }
 0x2b1   : > { %v2441_v38 = vsel %vm497_vm2, %v8947_v46, %v8946_v9  ;;  %v8950_v14 = vrot.slane %v7767_v63, 2  ;;  %v8077_v58 = vpack.c.bf16 %v7832_v0, %v7778_v47  ;;  %v8952_v9 = vrot.slane %v7832_v0, 1  ;;  %4694 = vmatprep.mubr.msk.bf16.mxu0 %vm6492_vm5, %v8009_v45 }
 0x2b2   : > { %v2539_v43 = vsel %vm606_vm3, %v8949_v15, %v8948_v6  ;;  %v8068_v32 = vpack.c.bf16 %v2441_v38, %v2439_v35  ;;  %v8951_v33 = vmov %v8948_v6  ;;  %v8953_v46 = vrot.slane %v7802_v52, 1 }
 0x2b3   : > { %v2541_v51 = vsel %vm606_vm3, %v8951_v33, %v8950_v14  ;;  %v8954_v42 = vrot.slane %v7835_v61, 1  ;;  %v8955_v63 = vmov %v8952_v9  ;;  %v8956_v47 = vrot.slane %v7728_v22, 2 }
 0x2b4   : > { %v2444_v41 = vsel %vm497_vm2, %v8953_v46, %v8952_v9  ;;  %v8087_v35 = vpack.c.bf16 %v2541_v51, %v2539_v43  ;;  %v8957_v6 = vrot.slane %v7714_v28, 2  ;;  %v8958_v14 = vrot.slane %v7731_v62, 2 }
 0x2b5   : > { %v2446_v38 = vsel %vm497_vm2, %v8955_v63, %v8954_v42  ;;  %v8959_v33 = vmov %v8956_v47  ;;  %v2570_v43 = vrot.slane %v8021_v44, 2  ;;  %v8113_v28 = vpack.c.bf16 %v7816_v1, %v7776_v60  ;;  %4634 = vmatmul.mubr.msk.bf16.gmra.mrb[164].mxu1 %vm6492_vm5, %v8009_v45 }
 0x2b6   : > { %v2544_v15 = vsel %vm606_vm3, %v8957_v6, %v8956_v47  ;;  %v2546_v9 = vsel %vm606_vm3, %v8959_v33, %v8958_v14  ;;  %v8107_v51 = vpack.c.bf16 %v2446_v38, %v2444_v41  ;;  %v8960_v22 = vrot.slane %v7816_v1, 1  ;;  %3361 = vmatprep.mubr.bf16.mxu1 %v8068_v32 }
 0x2b7   : > { %v8109_v46 = vpack.c.bf16 %v2546_v9, %v2544_v15  ;;  %v8961_v62 = vrot.slane %v7798_v8, 1  ;;  %v8962_v42 = vrot.slane %v7819_v20, 1  ;;  %v8964_v38 = vrot.slane %v7832_v0, 2 }
 0x2b8   : > { %v8963_v41 = vmov %v8960_v22  ;;  %v8965_v60 = vrot.slane %v7802_v52, 2  ;;  %v8966_v6 = vrot.slane %v7835_v61, 2  ;;  %v8969_v52 = vrot.slane %v7880_v17, 1  ;;  %3507 = vmatmul.mubr.bf16.gmra.mrb[192].mxu0 %v8051_v21 }
 0x2b9   : > { %v2449_v44 = vsel %vm497_vm2, %v8961_v62, %v8960_v22  ;;  %v2451_v63 = vsel %vm497_vm2, %v8963_v41, %v8962_v42  ;;  %v8967_v15 = vmov %v8964_v38  ;;  %v8144_v22 = vpack.c.bf16 %v7912_v7, %v7870_v49  ;;  %4698 = vmatprep.mubr.msk.bf16.mxu0 %vm6492_vm5, %v8049_v19 }
 0x2ba   : > { %v2549_v47 = vsel %vm606_vm3, %v8965_v60, %v8964_v38  ;;  %v2551_v14 = vsel %vm606_vm3, %v8967_v15, %v8966_v6  ;;  %v8138_v33 = vpack.c.bf16 %v2451_v63, %v2449_v44  ;;  %v8968_v62 = vrot.slane %v7912_v7, 1 }
 0x2bb   : > { %v8140_v9 = vpack.c.bf16 %v2551_v14, %v2549_v47  ;;  %v8970_v61 = vrot.slane %v7915_v56, 1  ;;  %v8972_v44 = vrot.slane %v7816_v1, 2  ;;  %v8973_v63 = vrot.slane %v7798_v8, 2 }
 0x2bc   : > { %v2454_v42 = vsel %vm497_vm2, %v8969_v52, %v8968_v62  ;;  %v8971_v0 = vmov %v8968_v62  ;;  %v8974_v49 = vrot.slane %v7819_v20, 2  ;;  %v8168_v6 = vpack.c.bf16 %v7897_v24, %v7842_v59 }
 0x2bd   : > { %v2456_v41 = vsel %vm497_vm2, %v8971_v0, %v8970_v61  ;;  %v2554_v38 = vsel %vm606_vm3, %v8973_v63, %v8972_v44  ;;  %v8975_v60 = vmov %v8972_v44  ;;  %v8976_v62 = vrot.slane %v7897_v24, 1  ;;  %4638 = vmatmul.mubr.msk.bf16.gmra.mrb[168].mxu1 %vm6492_vm5, %v8049_v19 }
 0x2be   : > { %v2556_v47 = vsel %vm606_vm3, %v8975_v60, %v8974_v49  ;;  %v8170_v15 = vpack.c.bf16 %v2456_v41, %v2454_v42  ;;  %v8977_v8 = vrot.slane %v7868_v55, 1  ;;  %v8978_v20 = vrot.slane %v7900_v3, 1  ;;  %3369 = vmatprep.mubr.bf16.mxu1 %v8107_v51 }
 0x2bf   : > { %v8172_v14 = vpack.c.bf16 %v2556_v47, %v2554_v38  ;;  %v8979_v1 = vmov %v8976_v62  ;;  %v8980_v59 = vrot.slane %v7912_v7, 2  ;;  %v8981_v42 = vrot.slane %v7880_v17, 2 }
 0x2c0   : > { %v2459_v52 = vsel %vm497_vm2, %v8977_v8, %v8976_v62  ;;  %v2461_v61 = vsel %vm497_vm2, %v8979_v1, %v8978_v20  ;;  %v8982_v44 = vrot.slane %v7915_v56, 2  ;;  %v8198_v49 = vpack.c.bf16 %v8018_v48, %v7927_v30  ;;  %3515 = vmatmul.mubr.bf16.gmra.mrb[196].mxu0 %v8087_v35 }
 0x2c1   : > { %v8184_v0 = vpack.c.bf16 %v2461_v61, %v2459_v52  ;;  %v2559_v41 = vsel %vm606_vm3, %v8981_v42, %v8980_v59  ;;  %v8983_v63 = vmov %v8980_v59  ;;  %v8984_v47 = vrot.slane %v7944_v13, 1  ;;  %4702 = vmatprep.mubr.msk.bf16.mxu0 %vm6492_vm5, %v8077_v58 }
 0x2c2   : > { %v2561_v38 = vsel %vm606_vm3, %v8983_v63, %v8982_v44  ;;  %v2466_v17 = vsel %vm497_vm2, %v2463_v36, %v2465_v40  ;;  %v8985_v8 = vrot.slane %v7897_v24, 2  ;;  %v8986_v56 = vrot.slane %v7868_v55, 2 }
 0x2c3   : > { %v8200_v60 = vpack.c.bf16 %v2561_v38, %v2559_v41  ;;  %v2464_v62 = vsel %vm497_vm2, %v8984_v47, %v2463_v36  ;;  %v8987_v48 = vrot.slane %v7900_v3, 2  ;;  %v8223_v36 = vpack.c.bf16 %v7962_v4, %v7917_v57 }
 0x2c4   : > { %v2564_v7 = vsel %vm606_vm3, %v8986_v56, %v8985_v8  ;;  %v8214_v30 = vpack.c.bf16 %v2466_v17, %v2464_v62  ;;  %v8988_v52 = vmov %v8985_v8  ;;  %v8989_v55 = vrot.slane %v7944_v13, 2 }
 0x2c5   : > { %v2566_v20 = vsel %vm606_vm3, %v8988_v52, %v8987_v48  ;;  %v2571_v3 = vsel %vm606_vm3, %v2568_v34, %v2570_v43  ;;  %v8990_v24 = vrot.slane %v7962_v4, 1  ;;  %v8991_v61 = vrot.slane %v7925_v54, 1  ;;  %4642 = vmatmul.mubr.msk.bf16.gmra.mrb[172].mxu1 %vm6492_vm5, %v8077_v58  ;;  %v6043_v48 = vld [vmem:[#allocation7 + $0x208] sm:$0xff]   ;;  %v6044_v52 = vld [vmem:[#allocation7 + $0x210] sm:$0xff]  }
 0x2c6   : > { %v2569_v40 = vsel %vm606_vm3, %v8989_v55, %v2568_v34  ;;  %v8230_v1 = vpack.c.bf16 %v2566_v20, %v2564_v7  ;;  %v8992_v13 = vrot.slane %v7965_v39, 1  ;;  %v8994_v34 = vrot.slane %v7962_v4, 2  ;;  %3377 = vmatprep.mubr.bf16.mxu1 %v8138_v33  ;;  %v8999_v20 = vld [vmem:[#allocation16_spill] sm:$0xff] }
 0x2c7   : > { %v2606_v59 = vsel %vm497_vm2, %v8991_v61, %v8990_v24  ;;  %v8241_v57 = vpack.c.bf16 %v2571_v3, %v2569_v40  ;;  %v8993_v42 = vmov %v8990_v24  ;;  %v8995_v43 = vrot.slane %v7925_v54, 2  ;;  %v5278_v54 = vpop.f32.mrb[128].mxu1  ;;  %v6046_v55 = vld [vmem:[#allocation7 + $0x220] sm:$0xff]   ;;  %v9000_v40 = vld [vmem:[#allocation14_spill] sm:$0xff]  ;;  %v9002_v3 = vld [vmem:[#allocation17_spill] sm:$0xff] }
 0x2c8   : > { %v2608_v41 = vsel %vm497_vm2, %v8993_v42, %v8992_v13  ;;  %v8996_v63 = vrot.slane %v7965_v39, 2  ;;  %v8997_v38 = vmov %v8994_v34  ;;  %v5279_v4 = vpop.f32.mrb[129].mxu1  ;;  %3523 = vmatmul.mubr.bf16.gmra.mrb[200].mxu0 %v8109_v46  ;;  %v6049_v24 = vld [vmem:[#allocation7 + $0x238] sm:$0xff]   ;;  %v9006_v42 = vld [vmem:[#allocation22_spill] sm:$0xff] }
 0x2c9   : > { %v2613_v44 = vsel %vm606_vm3, %v8995_v43, %v8994_v34  ;;  %v8258_v62 = vpack.c.bf16 %v2608_v41, %v2606_v59  ;;  %v8270_v39 = vadd.f32 %v5279_v4, %v5278_v54  ;;  %v5281_v8 = vpop.f32.mrb[130].mxu1  ;;  %4706 = vmatprep.mubr.msk.bf16.mxu0 %vm6492_vm5, %v8113_v28  ;;  %v9003_v61 = vld [vmem:[#allocation15_spill] sm:$0xff]  ;;  %v9004_v59 = vld [vmem:[#allocation20_spill] sm:$0xff] }
 0x2ca   : > { %v2615_v47 = vsel %vm606_vm3, %v8997_v38, %v8996_v63  ;;  %v5282_v56 = vpop.f32.mrb[131].mxu1  ;;  %v9005_v13 = vld [vmem:[#allocation19_spill] sm:$0xff] }
 0x2cb   : > { %v8260_v17 = vpack.c.bf16 %v2615_v47, %v2613_v44  ;;  %v8272_v7 = vadd.f32 %v5282_v56, %v5281_v8 }
 0x2cd   : > { %4646 = vmatmul.mubr.msk.bf16.gmra.mrb[176].mxu1 %vm6492_vm5, %v8113_v28 }
 0x2ce   : > { %3385 = vmatprep.mubr.bf16.mxu1 %v8170_v15 }
 0x2d0   : > { %3531 = vmatmul.mubr.bf16.gmra.mrb[204].mxu0 %v8140_v9 }
 0x2d1   : > { %4710 = vmatprep.mubr.msk.bf16.mxu0 %vm6492_vm5, %v8144_v22 }
 0x2d5   : > { %4650 = vmatmul.mubr.msk.bf16.gmra.mrb[180].mxu1 %vm6492_vm5, %v8144_v22 }
 0x2d6   : > { %3393 = vmatprep.mubr.bf16.mxu1 %v8184_v0 }
 0x2d8   : > { %3539 = vmatmul.mubr.bf16.gmra.mrb[208].mxu0 %v8172_v14 }
 0x2d9   : > { %4714 = vmatprep.mubr.msk.bf16.mxu0 %vm6492_vm5, %v8168_v6 }
 0x2dd   : > { %4654 = vmatmul.mubr.msk.bf16.gmra.mrb[184].mxu1 %vm6492_vm5, %v8168_v6 }
 0x2de   : > { %3401 = vmatprep.mubr.bf16.mxu1 %v8214_v30 }
 0x2e0   : > { %3547 = vmatmul.mubr.bf16.gmra.mrb[212].mxu0 %v8200_v60 }
 0x2e1   : > { %4718 = vmatprep.mubr.msk.bf16.mxu0 %vm6492_vm5, %v8198_v49 }
 0x2e5   : > { %4658 = vmatmul.mubr.msk.bf16.gmra.mrb[188].mxu1 %vm6492_vm5, %v8198_v49 }
 0x2e6   : > { %3603 = vmatprep.mubr.bf16.mxu1 %v7568_v2  ;;  %v6045_v2 = vld [vmem:[#allocation7 + $0x218] sm:$0xff]  }
 0x2e8   : > { %3555 = vmatmul.mubr.bf16.gmra.mrb[216].mxu0 %v8230_v1 }
 0x2e9   : > { %4722 = vmatprep.mubr.msk.bf16.mxu0 %vm6492_vm5, %v8223_v36 }
 0x2ed   : > { %3604 = vmatmul.mubr.bf16.vlgmr.msra.gmra.mrb[192].mxu1 %v7509_v5  ;;  %v8998_v5 = vld [vmem:[#allocation18_spill] sm:$0xff] }
 0x2ee   : > { %3611 = vmatprep.mubr.bf16.mxu1 %v7651_v11  ;;  %5783 = vmatpush3.bf16.msra.mxu1 %v7549_v29  ;;  %v6047_v29 = vld [vmem:[#allocation7 + $0x228] sm:$0xff]  }
 0x2ef   : > { %5784 = vmatprep.subr.bf16.mxu1 %v6043_v48 }
 0x2f0   : > { %3563 = vmatmul.mubr.bf16.gmra.mrb[220].mxu0 %v8241_v57 }
 0x2f1   : > { %3764 = vmatprep.mubr.bf16.mxu0 %v7558_v27 }
 0x2f2   : > { %5785 = vmatpush3.bf16.msra.mxu1 %v6043_v48 }
 0x2f3   : > { %5786 = vmatprep.subr.bf16.mxu1 %v6044_v52 }
 0x2f5   : > { %3612 = vmatmul.mubr.bf16.gmra.mrb[196].mxu1 %v7558_v27  ;;  %v9001_v27 = vld [vmem:[#allocation21_spill] sm:$0xff] }
 0x2f6   : > { %3619 = vmatprep.mubr.bf16.mxu1 %v8998_v5  ;;  %5787 = vmatpush3.bf16.msra.mxu1 %v6044_v52 }
 0x2f7   : > { %5788 = vmatprep.subr.bf16.mxu1 %v6045_v2 }
 0x2f8   : > { %4726 = vmatmul.mubr.msk.bf16.vlgmr.msra.gmra.mrb[224].mxu0 %vm6492_vm5, %v7501_v18  ;;  %v6048_v18 = vld [vmem:[#allocation7 + $0x230] sm:$0xff]  }
 0x2f9   : > { %3772 = vmatprep.mubr.bf16.mxu0 %v8999_v20 }
 0x2fa   : > { %5789 = vmatpush3.bf16.msra.mxu1 %v6045_v2 }
 0x2fb   : > { %5790 = vmatprep.subr.bf16.mxu1 %v6046_v55 }
 0x2fd   : > { %3620 = vmatmul.mubr.bf16.gmra.mrb[200].mxu1 %v8999_v20 }
 0x2fe   : > { %3627 = vmatprep.mubr.bf16.mxu1 %v9001_v27  ;;  %5791 = vmatpush3.bf16.msra.mxu1 %v6046_v55 }
 0x2ff   : > { %5792 = vmatprep.subr.bf16.mxu1 %v6047_v29 }
 0x300   : > { %4730 = vmatmul.mubr.msk.bf16.gmra.mrb[228].mxu0 %vm6492_vm5, %v9000_v40 }
 0x301   : > { %3780 = vmatprep.mubr.bf16.mxu0 %v9002_v3 }
 0x302   : > { %5793 = vmatpush3.bf16.msra.mxu1 %v6047_v29 }
 0x303   : > { %5794 = vmatprep.subr.bf16.mxu1 %v6048_v18 }
 0x305   : > { %3628 = vmatmul.mubr.bf16.gmra.mrb[204].mxu1 %v9002_v3 }
 0x306   : > { %3635 = vmatprep.mubr.bf16.mxu1 %v7876_v31  ;;  %5795 = vmatpush3.bf16.msra.mxu1 %v6048_v18 }
 0x307   : > { %5796 = vmatprep.subr.bf16.mxu1 %v6049_v24 }
 0x308   : > { %4734 = vmatmul.mubr.msk.bf16.gmra.mrb[232].mxu0 %vm6492_vm5, %v9003_v61 }
 0x309   : > { %3788 = vmatprep.mubr.bf16.mxu0 %v9004_v59 }
 0x30a   : > { %5797 = vmatpush3.bf16.msra.mxu1 %v6049_v24 }
 0x30d   : > { %3636 = vmatmul.mubr.bf16.gmra.mrb[208].mxu1 %v9004_v59 }
 0x30e   : > { %3643 = vmatprep.mubr.bf16.mxu1 %v7968_v10 }
 0x310   : > { %4738 = vmatmul.mubr.msk.bf16.gmra.mrb[236].mxu0 %vm6492_vm5, %v9005_v13 }
 0x311   : > { %3796 = vmatprep.mubr.bf16.mxu0 %v7872_v25 }
 0x315   : > { %3644 = vmatmul.mubr.bf16.gmra.mrb[212].mxu1 %v7872_v25 }
 0x316   : > { %3651 = vmatprep.mubr.bf16.mxu1 %v8023_v26 }
 0x318   : > { %4742 = vmatmul.mubr.msk.bf16.gmra.mrb[240].mxu0 %vm6492_vm5, %v7794_v23  ;;  %v8381_v23 = vld [vmem:[%s8779_s4] ss:$0 sm:$0xff] }
 0x319   : > { %3804 = vmatprep.mubr.bf16.mxu0 %v7946_v53 }
 0x31d   : > { %3652 = vmatmul.mubr.bf16.gmra.mrb[216].mxu1 %v7946_v53  ;;  %v3284_v53 = vadd.f32 %v8270_v39, %v8381_v23 }
 0x31e   : > { %3659 = vmatprep.mubr.bf16.mxu1 %v8051_v21 }
 0x320   : > { %4746 = vmatmul.mubr.msk.bf16.gmra.mrb[244].mxu0 %vm6492_vm5, %v9006_v42 }
 0x321   : > { %3812 = vmatprep.mubr.bf16.mxu0 %v8000_v37 }
 0x325   : > { %3660 = vmatmul.mubr.bf16.gmra.mrb[220].mxu1 %v8000_v37 }
 0x326   : > { %3667 = vmatprep.mubr.bf16.mxu1 %v8087_v35 }
 0x328   : > { %4750 = vmatmul.mubr.msk.bf16.gmra.mrb[248].mxu0 %vm6492_vm5, %v7972_v12 }
 0x329   : > { %3820 = vmatprep.mubr.bf16.mxu0 %v8035_v16 }
 0x32d   : > { %3668 = vmatmul.mubr.bf16.gmra.mrb[224].mxu1 %v8035_v16 }
 0x32e   : > { %3675 = vmatprep.mubr.bf16.mxu1 %v8109_v46 }
 0x330   : > { %4754 = vmatmul.mubr.msk.bf16.gmra.mrb[252].mxu0 %vm6492_vm5, %v8009_v45 }
 0x331   : > { %3828 = vmatprep.mubr.bf16.mxu0 %v8068_v32 }
 0x335   : > { %3676 = vmatmul.mubr.bf16.gmra.mrb[228].mxu1 %v8068_v32 }
 0x336   : > { %3683 = vmatprep.mubr.bf16.mxu1 %v8140_v9 }
 0x338   : > { %4758 = vmatmul.mubr.msk.bf16.gmra.mrb[0].mxu0 %vm6492_vm5, %v8049_v19 }
 0x339   : > { %3836 = vmatprep.mubr.bf16.mxu0 %v8107_v51 }
 0x33d   : > { %3684 = vmatmul.mubr.bf16.gmra.mrb[232].mxu1 %v8107_v51 }
 0x33e   : > { %3691 = vmatprep.mubr.bf16.mxu1 %v8172_v14 }
 0x340   : > { %4762 = vmatmul.mubr.msk.bf16.gmra.mrb[4].mxu0 %vm6492_vm5, %v8077_v58  ;;  %v3287_v58 = vadd.f32 %v8272_v7, %v8381_v23 }
 0x341   : > { %3844 = vmatprep.mubr.bf16.mxu0 %v8138_v33 }
 0x343   : > { %v5390_v25 = vpop.f32.mrb[160].mxu0 }
 0x344   : > { %v5391_v19 = vpop.f32.mrb[161].mxu0 }
 0x345   : > { %v5392_v12 = vadd.f32 %v5391_v19, %v5390_v25  ;;  %v5393_v37 = vpop.f32.mrb[162].mxu0  ;;  %3692 = vmatmul.mubr.bf16.gmra.mrb[236].mxu1 %v8138_v33 }
 0x346   : > { %v5284_v45 = vpop.f32.mrb[132].mxu1  ;;  %v5394_v16 = vpop.f32.mrb[163].mxu0  ;;  %3699 = vmatprep.mubr.bf16.mxu1 %v8200_v60 }
 0x347   : > { %v5285_v32 = vpop.f32.mrb[133].mxu1  ;;  %v8388_v51 = vadd.f32 %v5392_v12, %v3284_v53  ;;  %v5395_v41 = vadd.f32 %v5394_v16, %v5393_v37 }
 0x348   : > { %v5286_v34 = vadd.f32 %v5285_v32, %v5284_v45  ;;  %v5287_v43 = vpop.f32.mrb[134].mxu1  ;;  %4766 = vmatmul.mubr.msk.bf16.gmra.mrb[8].mxu0 %vm6492_vm5, %v8113_v28 }
 0x349   : > { %v5288_v44 = vpop.f32.mrb[135].mxu1  ;;  %v8391_v63 = vadd.f32 %v5395_v41, %v3287_v58  ;;  %3852 = vmatprep.mubr.bf16.mxu0 %v8170_v15 }
 0x34a   : > { %v5289_v38 = vadd.f32 %v5288_v44, %v5287_v43  ;;  %v3292_v39 = vadd.f32 %v5286_v34, %v8381_v23 }
 0x34c   : > { %v5396_v47 = vpop.f32.mrb[164].mxu0  ;;  %v3295_v2 = vadd.f32 %v5289_v38, %v8381_v23 }
 0x34d   : > { %v5397_v54 = vpop.f32.mrb[165].mxu0  ;;  %3700 = vmatmul.mubr.bf16.gmra.mrb[240].mxu1 %v8170_v15 }
 0x34e   : > { %v5290_v4 = vpop.f32.mrb[136].mxu1  ;;  %v5398_v8 = vadd.f32 %v5397_v54, %v5396_v47  ;;  %v5399_v56 = vpop.f32.mrb[166].mxu0  ;;  %3707 = vmatprep.mubr.bf16.mxu1 %v8230_v1 }
 0x34f   : > { %v5291_v7 = vpop.f32.mrb[137].mxu1  ;;  %v5400_v33 = vpop.f32.mrb[167].mxu0 }
 0x350   : > { %v5292_v48 = vadd.f32 %v5291_v7, %v5290_v4  ;;  %v5293_v52 = vpop.f32.mrb[138].mxu1  ;;  %v8400_v20 = vadd.f32 %v5398_v8, %v3292_v39  ;;  %v5401_v28 = vadd.f32 %v5400_v33, %v5399_v56  ;;  %4770 = vmatmul.mubr.msk.bf16.gmra.mrb[12].mxu0 %vm6492_vm5, %v8144_v22 }
 0x351   : > { %v5294_v55 = vpop.f32.mrb[139].mxu1  ;;  %3860 = vmatprep.mubr.bf16.mxu0 %v8184_v0 }
 0x352   : > { %v5295_v29 = vadd.f32 %v5294_v55, %v5293_v52  ;;  %v8407_v40 = vadd.f32 %v5401_v28, %v3295_v2  ;;  %v3300_v15 = vadd.f32 %v5292_v48, %v8381_v23 }
 0x354   : > { %v3303_v12 = vadd.f32 %v5295_v29, %v8381_v23 }
 0x355   : > { %3708 = vmatmul.mubr.bf16.gmra.mrb[244].mxu1 %v8184_v0 }
 0x356   : > { %v5296_v3 = vpop.f32.mrb[140].mxu1  ;;  %v5402_v24 = vpop.f32.mrb[168].mxu0  ;;  %3715 = vmatprep.mubr.bf16.mxu1 %v8241_v57 }
 0x357   : > { %v5297_v18 = vpop.f32.mrb[141].mxu1  ;;  %v5403_v13 = vpop.f32.mrb[169].mxu0 }
 0x358   : > { %v5298_v61 = vadd.f32 %v5297_v18, %v5296_v3  ;;  %v5299_v59 = vpop.f32.mrb[142].mxu1  ;;  %v5404_v25 = vadd.f32 %v5403_v13, %v5402_v24  ;;  %v5405_v19 = vpop.f32.mrb[170].mxu0  ;;  %4774 = vmatmul.mubr.msk.bf16.gmra.mrb[16].mxu0 %vm6492_vm5, %v8168_v6  ;;  %v9007_v3 = vld [vmem:[#allocation12_spill] sm:$0xff] }
 0x359   : > { %v5300_v42 = vpop.f32.mrb[143].mxu1  ;;  %v5406_v53 = vpop.f32.mrb[171].mxu0  ;;  %3868 = vmatprep.mubr.bf16.mxu0 %v8214_v30 }
 0x35a   : > { %v5301_v22 = vadd.f32 %v5300_v42, %v5299_v59  ;;  %v8418_v37 = vadd.f32 %v5404_v25, %v3300_v15  ;;  %v5407_v45 = vadd.f32 %v5406_v53, %v5405_v19  ;;  %v3308_v43 = vadd.f32 %v5298_v61, %v8381_v23 }
 0x35c   : > { %v8420_v16 = vadd.f32 %v5407_v45, %v3303_v12 }
 0x35d   : > { %3716 = vmatmul.mubr.bf16.gmra.mrb[248].mxu1 %v8214_v30  ;;  %v3311_v30 = vadd.f32 %v5301_v22, %v8381_v23 }
 0x35e   : > { %3723 = vmatprep.mubr.bf16.mxu1 %v8260_v17 }
 0x35f   : > { %v5302_v0 = vpop.f32.mrb[144].mxu1 }
 0x360   : > { %v5408_v32 = vpop.f32.mrb[172].mxu0  ;;  %v5303_v58 = vpop.f32.mrb[145].mxu1  ;;  %4778 = vmatmul.mubr.msk.bf16.gmra.mrb[20].mxu0 %vm6492_vm5, %v8198_v49 }
 0x361   : > { %v5409_v6 = vpop.f32.mrb[173].mxu0  ;;  %v5304_v41 = vadd.f32 %v5303_v58, %v5302_v0  ;;  %v5305_v34 = vpop.f32.mrb[146].mxu1  ;;  %3876 = vmatprep.mubr.bf16.mxu0 %v8258_v62 }
 0x362   : > { %v5410_v44 = vadd.f32 %v5409_v6, %v5408_v32  ;;  %v5411_v38 = vpop.f32.mrb[174].mxu0  ;;  %v5306_v47 = vpop.f32.mrb[147].mxu1 }
 0x363   : > { %v5412_v54 = vpop.f32.mrb[175].mxu0  ;;  %v5307_v4 = vadd.f32 %v5306_v47, %v5305_v34  ;;  %v3316_v28 = vadd.f32 %v5304_v41, %v8381_v23 }
 0x364   : > { %v8430_v39 = vadd.f32 %v5410_v44, %v3308_v43  ;;  %v5413_v8 = vadd.f32 %v5412_v54, %v5411_v38 }
 0x365   : > { %3724 = vmatmul.mubr.bf16.gmra.mrb[252].mxu1 %v8258_v62  ;;  %v3319_v62 = vadd.f32 %v5307_v4, %v8381_v23 }
 0x366   : > { %v8432_v49 = vadd.f32 %v5413_v8, %v3311_v30  ;;  %5798 = vmatprep.mubr.bf16.mxu1 %v7651_v11  ;;  %v9008_v11 = vmov 0.0|0.0  }
 0x367   : > { %v5308_v56 = vpop.f32.mrb[148].mxu1 }
 0x368   : > { %v5414_v7 = vpop.f32.mrb[176].mxu0  ;;  %v5309_v33 = vpop.f32.mrb[149].mxu1  ;;  %4782 = vmatmul.mubr.msk.bf16.gmra.mrb[24].mxu0 %vm6492_vm5, %v8223_v36 }
 0x369   : > { %v5415_v48 = vpop.f32.mrb[177].mxu0  ;;  %v5310_v52 = vadd.f32 %v5309_v33, %v5308_v56  ;;  %v5311_v2 = vpop.f32.mrb[150].mxu1  ;;  %3884 = vmatprep.mubr.bf16.mxu0 %v9007_v3 }
 0x36a   : > { %v5416_v55 = vadd.f32 %v5415_v48, %v5414_v7  ;;  %v5417_v29 = vpop.f32.mrb[178].mxu0  ;;  %v5312_v18 = vpop.f32.mrb[151].mxu1 }
 0x36b   : > { %v5418_v24 = vpop.f32.mrb[179].mxu0  ;;  %v5313_v61 = vadd.f32 %v5312_v18, %v5311_v2  ;;  %v3324_v19 = vadd.f32 %v5310_v52, %v8381_v23 }
 0x36c   : > { %v8442_v59 = vadd.f32 %v5416_v55, %v3316_v28  ;;  %v5419_v50 = vadd.f32 %v5418_v24, %v5417_v29 }
 0x36d   : > { %5799 = vmatmul.mubr.bf16.vlgmr.msra.gmra.mrb[0].mxu1 %v8998_v5  ;;  %v3327_v58 = vadd.f32 %v5313_v61, %v8381_v23 }
 0x36e   : > { %v8444_v36 = vadd.f32 %v5419_v50, %v3319_v62  ;;  %5802 = vmatprep.mubr.bf16.mxu1 %v9001_v27 }
 0x36f   : > { %v5314_v42 = vpop.f32.mrb[152].mxu1 }
 0x370   : > { %3885 = vmatmul.mubr.bf16.gmra.mrb[28].mxu0 %v9008_v11  ;;  %v5420_v13 = vpop.f32.mrb[180].mxu0  ;;  %v5315_v25 = vpop.f32.mrb[153].mxu1 }
 0x371   : > { %v5421_v15 = vpop.f32.mrb[181].mxu0  ;;  %v5316_v12 = vadd.f32 %v5315_v25, %v5314_v42  ;;  %v5317_v45 = vpop.f32.mrb[154].mxu1 }
 0x372   : > { %v5422_v22 = vadd.f32 %v5421_v15, %v5420_v13  ;;  %v5423_v53 = vpop.f32.mrb[182].mxu0  ;;  %v5318_v32 = vpop.f32.mrb[155].mxu1 }
 0x373   : > { %v5424_v0 = vpop.f32.mrb[183].mxu0  ;;  %v5319_v41 = vadd.f32 %v5318_v32, %v5317_v45  ;;  %v3332_v4 = vadd.f32 %v5316_v12, %v8381_v23 }
 0x374   : > { %v8451_v6 = vadd.f32 %v5422_v22, %v3324_v19  ;;  %v5425_v5 = vadd.f32 %v5424_v0, %v5423_v53 }
 0x375   : > { %5803 = vmatmul.mubr.bf16.gmra.mrb[4].mxu1 %v7876_v31  ;;  %v3335_v48 = vadd.f32 %v5319_v41, %v8381_v23 }
 0x376   : > { %v8453_v34 = vadd.f32 %v5425_v5, %v3327_v58  ;;  %5806 = vmatprep.mubr.bf16.mxu1 %v7968_v10 }
 0x378   : > { %v5320_v27 = vpop.f32.mrb[156].mxu1 }
 0x379   : > { %v5321_v44 = vpop.f32.mrb[157].mxu1 }
 0x37a   : > { %v5322_v47 = vadd.f32 %v5321_v44, %v5320_v27  ;;  %v5323_v54 = vpop.f32.mrb[158].mxu1 }
 0x37b   : > { %v5426_v43 = vpop.f32.mrb[184].mxu0  ;;  %v5324_v56 = vpop.f32.mrb[159].mxu1 }
 0x37c   : > { %v5427_v38 = vpop.f32.mrb[185].mxu0  ;;  %v5325_v33 = vadd.f32 %v5324_v56, %v5323_v54  ;;  %v3340_v24 = vadd.f32 %v5322_v47, %v8381_v23 }
 0x37d   : > { %v5428_v30 = vadd.f32 %v5427_v38, %v5426_v43  ;;  %v5429_v8 = vpop.f32.mrb[186].mxu0  ;;  %5807 = vmatmul.mubr.bf16.gmra.mrb[8].mxu1 %v8023_v26 }
 0x37e   : > { %v5430_v7 = vpop.f32.mrb[187].mxu0  ;;  %5810 = vmatprep.mubr.bf16.mxu1 %v8051_v21  ;;  %v3343_v42 = vadd.f32 %v5325_v33, %v8381_v23 }
 0x37f   : > { %v8459_v52 = vadd.f32 %v5428_v30, %v3332_v4  ;;  %v5431_v31 = vadd.f32 %v5430_v7, %v5429_v8 }
 0x380   : > { %v5326_v2 = vpop.f32.mrb[160].mxu1 }
 0x381   : > { %v8463_v10 = vadd.f32 %v5431_v31, %v3335_v48  ;;  %v5327_v55 = vpop.f32.mrb[161].mxu1 }
 0x382   : > { %v5328_v3 = vadd.f32 %v5327_v55, %v5326_v2  ;;  %v5329_v18 = vpop.f32.mrb[162].mxu1 }
 0x383   : > { %v5432_v28 = vpop.f32.mrb[188].mxu0  ;;  %v5330_v50 = vpop.f32.mrb[163].mxu1 }
 0x384   : > { %v5433_v29 = vpop.f32.mrb[189].mxu0  ;;  %v5331_v13 = vadd.f32 %v5330_v50, %v5329_v18  ;;  %v3348_v0 = vadd.f32 %v5328_v3, %v8381_v23 }
 0x385   : > { %v5434_v61 = vadd.f32 %v5433_v29, %v5432_v28  ;;  %v5435_v62 = vpop.f32.mrb[190].mxu0  ;;  %5811 = vmatmul.mubr.bf16.gmra.mrb[12].mxu1 %v8087_v35 }
 0x386   : > { %v5436_v11 = vpop.f32.mrb[191].mxu0  ;;  %5814 = vmatprep.mubr.bf16.mxu1 %v8109_v46  ;;  %v3351_v43 = vadd.f32 %v5331_v13, %v8381_v23 }
 0x387   : > { %v8467_v26 = vadd.f32 %v5434_v61, %v3340_v24  ;;  %v5437_v21 = vadd.f32 %v5436_v11, %v5435_v62 }
 0x388   : > { %v5332_v25 = vpop.f32.mrb[164].mxu1 }
 0x389   : > { %v8471_v15 = vadd.f32 %v5437_v21, %v3343_v42  ;;  %v5333_v22 = vpop.f32.mrb[165].mxu1 }
 0x38a   : > { %v5334_v12 = vadd.f32 %v5333_v22, %v5332_v25  ;;  %v5335_v45 = vpop.f32.mrb[166].mxu1 }
 0x38b   : > { %v5438_v19 = vpop.f32.mrb[192].mxu0  ;;  %v5336_v5 = vpop.f32.mrb[167].mxu1 }
 0x38c   : > { %v5439_v53 = vpop.f32.mrb[193].mxu0  ;;  %v5337_v27 = vadd.f32 %v5336_v5, %v5335_v45  ;;  %v3356_v56 = vadd.f32 %v5334_v12, %v8381_v23 }
 0x38d   : > { %v5440_v32 = vadd.f32 %v5439_v53, %v5438_v19  ;;  %v5441_v58 = vpop.f32.mrb[194].mxu0  ;;  %5815 = vmatmul.mubr.bf16.gmra.mrb[16].mxu1 %v8140_v9 }
 0x38e   : > { %v5442_v41 = vpop.f32.mrb[195].mxu0  ;;  %5818 = vmatprep.mubr.bf16.mxu1 %v8172_v14  ;;  %v3359_v28 = vadd.f32 %v5337_v27, %v8381_v23 }
 0x38f   : > { %v8475_v35 = vadd.f32 %v5440_v32, %v3348_v0  ;;  %v5443_v46 = vadd.f32 %v5442_v41, %v5441_v58 }
 0x390   : > { %v5338_v38 = vpop.f32.mrb[168].mxu1 }
 0x391   : > { %v8479_v44 = vadd.f32 %v5443_v46, %v3351_v43  ;;  %v5339_v54 = vpop.f32.mrb[169].mxu1 }
 0x392   : > { %v5340_v30 = vadd.f32 %v5339_v54, %v5338_v38  ;;  %v5341_v8 = vpop.f32.mrb[170].mxu1  ;;  %v9009_v54 = vld [vmem:[#allocation13_spill] sm:$0xff] }
 0x393   : > { %v5444_v47 = vpop.f32.mrb[196].mxu0  ;;  %v5342_v48 = vpop.f32.mrb[171].mxu1 }
 0x394   : > { %v5445_v4 = vpop.f32.mrb[197].mxu0  ;;  %v5343_v2 = vadd.f32 %v5342_v48, %v5341_v8  ;;  %v3364_v50 = vadd.f32 %v5340_v30, %v8381_v23 }
 0x395   : > { %v5446_v7 = vadd.f32 %v5445_v4, %v5444_v47  ;;  %v5447_v33 = vpop.f32.mrb[198].mxu0  ;;  %5819 = vmatmul.mubr.bf16.gmra.mrb[20].mxu1 %v8200_v60 }
 0x396   : > { %v5448_v31 = vpop.f32.mrb[199].mxu0  ;;  %5822 = vmatprep.mubr.bf16.mxu1 %v8230_v1  ;;  %v3367_v19 = vadd.f32 %v5343_v2, %v8381_v23 }
 0x397   : > { %v8483_v9 = vadd.f32 %v5446_v7, %v3356_v56  ;;  %v5449_v14 = vadd.f32 %v5448_v31, %v5447_v33 }
 0x398   : > { %v5344_v29 = vpop.f32.mrb[172].mxu1 }
 0x399   : > { %v8487_v55 = vadd.f32 %v5449_v14, %v3359_v28  ;;  %v5345_v18 = vpop.f32.mrb[173].mxu1 }
 0x39a   : > { %v5346_v61 = vadd.f32 %v5345_v18, %v5344_v29  ;;  %v5347_v62 = vpop.f32.mrb[174].mxu1 }
 0x39b   : > { %v5450_v3 = vpop.f32.mrb[200].mxu0  ;;  %v5348_v42 = vpop.f32.mrb[175].mxu1 }
 0x39c   : > { %v5451_v24 = vpop.f32.mrb[201].mxu0  ;;  %v5349_v25 = vadd.f32 %v5348_v42, %v5347_v62  ;;  %v3372_v5 = vadd.f32 %v5346_v61, %v8381_v23 }
 0x39d   : > { %v5452_v11 = vadd.f32 %v5451_v24, %v5450_v3  ;;  %v5453_v13 = vpop.f32.mrb[202].mxu0  ;;  %5823 = vmatmul.mubr.bf16.gmra.mrb[24].mxu1 %v8241_v57 }
 0x39e   : > { %v5454_v21 = vpop.f32.mrb[203].mxu0  ;;  %5826 = vmatprep.mubr.bf16.mxu1 %v8260_v17  ;;  %v3375_v47 = vadd.f32 %v5349_v25, %v8381_v23 }
 0x39f   : > { %v8491_v60 = vadd.f32 %v5452_v11, %v3364_v50  ;;  %v5455_v1 = vadd.f32 %v5454_v21, %v5453_v13 }
 0x3a0   : > { %v5350_v53 = vpop.f32.mrb[176].mxu1 }
 0x3a1   : > { %v8495_v22 = vadd.f32 %v5455_v1, %v3367_v19  ;;  %v5351_v45 = vpop.f32.mrb[177].mxu1 }
 0x3a2   : > { %v5352_v32 = vadd.f32 %v5351_v45, %v5350_v53  ;;  %v5353_v58 = vpop.f32.mrb[178].mxu1 }
 0x3a3   : > { %v5456_v12 = vpop.f32.mrb[204].mxu0  ;;  %v5354_v43 = vpop.f32.mrb[179].mxu1 }
 0x3a4   : > { %v5457_v0 = vpop.f32.mrb[205].mxu0  ;;  %v5355_v38 = vadd.f32 %v5354_v43, %v5353_v58  ;;  %v3380_v31 = vadd.f32 %v5352_v32, %v8381_v23 }
 0x3a5   : > { %v5458_v41 = vadd.f32 %v5457_v0, %v5456_v12  ;;  %v5459_v27 = vpop.f32.mrb[206].mxu0  ;;  %5827 = vmatmul.mubr.bf16.gmra.mrb[28].mxu1 %v9009_v54 }
 0x3a6   : > { %v5460_v46 = vpop.f32.mrb[207].mxu0  ;;  %v3383_v18 = vadd.f32 %v5355_v38, %v8381_v23 }
 0x3a7   : > { %v8499_v57 = vadd.f32 %v5458_v41, %v3372_v5  ;;  %v5461_v17 = vadd.f32 %v5460_v46, %v5459_v27 }
 0x3a8   : > { %v5356_v30 = vpop.f32.mrb[180].mxu1 }
 0x3a9   : > { %v8502_v4 = vadd.f32 %v5461_v17, %v3375_v47  ;;  %v5357_v56 = vpop.f32.mrb[181].mxu1 }
 0x3aa   : > { %v5358_v33 = vadd.f32 %v5357_v56, %v5356_v30  ;;  %v5359_v48 = vpop.f32.mrb[182].mxu1 }
 0x3ab   : > { %v5462_v8 = vpop.f32.mrb[208].mxu0  ;;  %v5360_v14 = vpop.f32.mrb[183].mxu1 }
 0x3ac   : > { %v5463_v7 = vpop.f32.mrb[209].mxu0  ;;  %v5361_v3 = vadd.f32 %v5360_v14, %v5359_v48  ;;  %v3388_v19 = vadd.f32 %v5358_v33, %v8381_v23 }
 0x3ad   : > { %v5464_v2 = vadd.f32 %v5463_v7, %v5462_v8  ;;  %v5465_v28 = vpop.f32.mrb[210].mxu0 }
 0x3ae   : > { %v5466_v29 = vpop.f32.mrb[211].mxu0  ;;  %v3391_v32 = vadd.f32 %v5361_v3, %v8381_v23 }
 0x3af   : > { %v8506_v24 = vadd.f32 %v5464_v2, %v3380_v31  ;;  %v5467_v61 = vadd.f32 %v5466_v29, %v5465_v28 }
 0x3b0   : > { %v5362_v50 = vpop.f32.mrb[184].mxu1 }
 0x3b1   : > { %v8508_v62 = vadd.f32 %v5467_v61, %v3383_v18  ;;  %v5363_v13 = vpop.f32.mrb[185].mxu1 }
 0x3b2   : > { %v5364_v21 = vadd.f32 %v5363_v13, %v5362_v50  ;;  %v5365_v25 = vpop.f32.mrb[186].mxu1 }
 0x3b3   : > { %v5468_v11 = vpop.f32.mrb[212].mxu0  ;;  %v5366_v12 = vpop.f32.mrb[187].mxu1 }
 0x3b4   : > { %v5469_v42 = vpop.f32.mrb[213].mxu0  ;;  %v5367_v0 = vadd.f32 %v5366_v12, %v5365_v25  ;;  %v3396_v54 = vadd.f32 %v5364_v21, %v8381_v23 }
 0x3b5   : > { %v5470_v1 = vadd.f32 %v5469_v42, %v5468_v11  ;;  %v5471_v53 = vpop.f32.mrb[214].mxu0 }
 0x3b6   : > { %v5472_v45 = vpop.f32.mrb[215].mxu0  ;;  %v3399_v48 = vadd.f32 %v5367_v0, %v8381_v23 }
 0x3b7   : > { %v8512_v58 = vadd.f32 %v5470_v1, %v3388_v19  ;;  %v5473_v5 = vadd.f32 %v5472_v45, %v5471_v53 }
 0x3b8   : > { %v5368_v27 = vpop.f32.mrb[188].mxu1 }
 0x3b9   : > { %v8514_v41 = vadd.f32 %v5473_v5, %v3391_v32  ;;  %v5369_v46 = vpop.f32.mrb[189].mxu1 }
 0x3ba   : > { %v5370_v47 = vadd.f32 %v5369_v46, %v5368_v27  ;;  %v5371_v17 = vpop.f32.mrb[190].mxu1 }
 0x3bb   : > { %v5474_v43 = vpop.f32.mrb[216].mxu0  ;;  %v5372_v56 = vpop.f32.mrb[191].mxu1 }
 0x3bc   : > { %v5475_v38 = vpop.f32.mrb[217].mxu0  ;;  %v5373_v33 = vadd.f32 %v5372_v56, %v5371_v17  ;;  %v3404_v11 = vadd.f32 %v5370_v47, %v8381_v23 }
 0x3bd   : > { %v5476_v30 = vadd.f32 %v5475_v38, %v5474_v43  ;;  %v5477_v8 = vpop.f32.mrb[218].mxu0 }
 0x3be   : > { %v5478_v7 = vpop.f32.mrb[219].mxu0  ;;  %v3407_v53 = vadd.f32 %v5373_v33, %v8381_v23 }
 0x3bf   : > { %v8518_v31 = vadd.f32 %v5476_v30, %v3396_v54  ;;  %v5479_v2 = vadd.f32 %v5478_v7, %v5477_v8 }
 0x3c0   : > { %v5502_v14 = vpop.f32.mrb[192].mxu1 }
 0x3c1   : > { %v8520_v28 = vadd.f32 %v5479_v2, %v3399_v48  ;;  %v5503_v3 = vpop.f32.mrb[193].mxu1 }
 0x3c2   : > { %v5504_v61 = vadd.f32 %v5503_v3, %v5502_v14  ;;  %v5505_v50 = vpop.f32.mrb[194].mxu1 }
 0x3c3   : > { %v5480_v29 = vpop.f32.mrb[220].mxu0  ;;  %v5506_v21 = vpop.f32.mrb[195].mxu1 }
 0x3c4   : > { %v5481_v18 = vpop.f32.mrb[221].mxu0  ;;  %v3606_v19 = vadd.f32 %v5504_v61, %v8388_v51  ;;  %v5507_v1 = vadd.f32 %v5506_v21, %v5505_v50 }
 0x3c5   : > { %v5482_v13 = vadd.f32 %v5481_v18, %v5480_v29  ;;  %v5483_v42 = vpop.f32.mrb[222].mxu0 }
 0x3c6   : > { %v5484_v25 = vpop.f32.mrb[223].mxu0  ;;  %v3609_v0 = vadd.f32 %v5507_v1, %v8391_v63 }
 0x3c7   : > { %v8525_v12 = vadd.f32 %v5482_v13, %v3404_v11  ;;  %v5485_v45 = vadd.f32 %v5484_v25, %v5483_v42 }
 0x3c8   : > { %v5508_v5 = vpop.f32.mrb[196].mxu1 }
 0x3c9   : > { %v8528_v32 = vadd.f32 %v5485_v45, %v3407_v53  ;;  %v5509_v43 = vpop.f32.mrb[197].mxu1 }
 0x3ca   : > { %v5510_v38 = vadd.f32 %v5509_v43, %v5508_v5  ;;  %v5511_v47 = vpop.f32.mrb[198].mxu1 }
 0x3cb   : > { %v5614_v27 = vpop.f32.mrb[224].mxu0  ;;  %v5512_v30 = vpop.f32.mrb[199].mxu1 }
 0x3cc   : > { %v5615_v46 = vpop.f32.mrb[225].mxu0  ;;  %v3614_v8 = vadd.f32 %v5510_v38, %v8400_v20  ;;  %v5513_v23 = vadd.f32 %v5512_v30, %v5511_v47 }
 0x3cd   : > { %v5616_v17 = vadd.f32 %v5615_v46, %v5614_v27  ;;  %v5617_v54 = vpop.f32.mrb[226].mxu0 }
 0x3ce   : > { %v5618_v51 = vpop.f32.mrb[227].mxu0  ;;  %v3617_v63 = vadd.f32 %v5513_v23, %v8407_v40 }
 0x3cf   : > { %v5619_v56 = vadd.f32 %v5618_v51, %v5617_v54  ;;  %v8531_v7 = vadd.f32 %v5616_v17, %v3606_v19 }
 0x3d0   : > { %v5514_v48 = vpop.f32.mrb[200].mxu1 }
 0x3d1   : > { %v8534_v33 = vadd.f32 %v5619_v56, %v3609_v0  ;;  %v5515_v14 = vpop.f32.mrb[201].mxu1 }
 0x3d2   : > { %v5516_v3 = vadd.f32 %v5515_v14, %v5514_v48  ;;  %v5517_v18 = vpop.f32.mrb[202].mxu1 }
 0x3d3   : > { %v5620_v2 = vpop.f32.mrb[228].mxu0  ;;  %v5518_v11 = vpop.f32.mrb[203].mxu1 }
 0x3d4   : > { %v5621_v29 = vpop.f32.mrb[229].mxu0  ;;  %v3622_v20 = vadd.f32 %v5516_v3, %v8418_v37  ;;  %v5519_v42 = vadd.f32 %v5518_v11, %v5517_v18 }
 0x3d5   : > { %v5622_v61 = vadd.f32 %v5621_v29, %v5620_v2  ;;  %v5623_v50 = vpop.f32.mrb[230].mxu0 }
 0x3d6   : > { %v5624_v13 = vpop.f32.mrb[231].mxu0  ;;  %v3625_v40 = vadd.f32 %v5519_v42, %v8420_v16 }
 0x3d7   : > { %v5625_v21 = vadd.f32 %v5624_v13, %v5623_v50  ;;  %v8537_v25 = vadd.f32 %v5622_v61, %v3614_v8 }
 0x3d8   : > { %v5520_v1 = vpop.f32.mrb[204].mxu1 }
 0x3d9   : > { %v8540_v19 = vadd.f32 %v5625_v21, %v3617_v63  ;;  %v5521_v45 = vpop.f32.mrb[205].mxu1 }
 0x3da   : > { %v5522_v5 = vadd.f32 %v5521_v45, %v5520_v1  ;;  %v5523_v27 = vpop.f32.mrb[206].mxu1 }
 0x3db   : > { %v5626_v53 = vpop.f32.mrb[232].mxu0  ;;  %v5524_v38 = vpop.f32.mrb[207].mxu1 }
 0x3dc   : > { %v5627_v0 = vpop.f32.mrb[233].mxu0  ;;  %v3630_v37 = vadd.f32 %v5522_v5, %v8430_v39  ;;  %v5525_v17 = vadd.f32 %v5524_v38, %v5523_v27 }
 0x3dd   : > { %v5628_v43 = vadd.f32 %v5627_v0, %v5626_v53  ;;  %v5629_v46 = vpop.f32.mrb[234].mxu0 }
 0x3de   : > { %v5630_v47 = vpop.f32.mrb[235].mxu0  ;;  %v3633_v16 = vadd.f32 %v5525_v17, %v8432_v49 }
 0x3df   : > { %v5631_v54 = vadd.f32 %v5630_v47, %v5629_v46  ;;  %v8543_v30 = vadd.f32 %v5628_v43, %v3622_v20 }
 0x3e0   : > { %v5526_v8 = vpop.f32.mrb[208].mxu1 }
 0x3e1   : > { %v8546_v51 = vadd.f32 %v5631_v54, %v3625_v40  ;;  %v5527_v56 = vpop.f32.mrb[209].mxu1 }
 0x3e2   : > { %v5528_v48 = vadd.f32 %v5527_v56, %v5526_v8  ;;  %v5529_v2 = vpop.f32.mrb[210].mxu1 }
 0x3e3   : > { %v5632_v23 = vpop.f32.mrb[236].mxu0  ;;  %v5530_v3 = vpop.f32.mrb[211].mxu1 }
 0x3e4   : > { %v5633_v63 = vpop.f32.mrb[237].mxu0  ;;  %v3638_v39 = vadd.f32 %v5528_v48, %v8442_v59  ;;  %v5531_v61 = vadd.f32 %v5530_v3, %v5529_v2 }
 0x3e5   : > { %v5634_v14 = vadd.f32 %v5633_v63, %v5632_v23  ;;  %v5635_v29 = vpop.f32.mrb[238].mxu0 }
 0x3e6   : > { %v5636_v18 = vpop.f32.mrb[239].mxu0  ;;  %v3641_v49 = vadd.f32 %v5531_v61, %v8444_v36 }
 0x3e7   : > { %v5637_v50 = vadd.f32 %v5636_v18, %v5635_v29  ;;  %v8549_v11 = vadd.f32 %v5634_v14, %v3630_v37 }
 0x3e8   : > { %v5532_v20 = vpop.f32.mrb[212].mxu1 }
 0x3e9   : > { %v8552_v13 = vadd.f32 %v5637_v50, %v3633_v16  ;;  %v5533_v21 = vpop.f32.mrb[213].mxu1 }
 0x3ea   : > { %v5534_v1 = vadd.f32 %v5533_v21, %v5532_v20  ;;  %v5535_v53 = vpop.f32.mrb[214].mxu1 }
 0x3eb   : > { %v5638_v42 = vpop.f32.mrb[240].mxu0  ;;  %v5536_v5 = vpop.f32.mrb[215].mxu1 }
 0x3ec   : > { %v5639_v40 = vpop.f32.mrb[241].mxu0  ;;  %v3646_v59 = vadd.f32 %v5534_v1, %v8451_v6  ;;  %v5537_v43 = vadd.f32 %v5536_v5, %v5535_v53 }
 0x3ed   : > { %v5640_v45 = vadd.f32 %v5639_v40, %v5638_v42  ;;  %v5641_v0 = vpop.f32.mrb[242].mxu0 }
 0x3ee   : > { %v5642_v27 = vpop.f32.mrb[243].mxu0  ;;  %v3649_v36 = vadd.f32 %v5537_v43, %v8453_v34 }
 0x3ef   : > { %v5643_v46 = vadd.f32 %v5642_v27, %v5641_v0  ;;  %v8555_v38 = vadd.f32 %v5640_v45, %v3638_v39 }
 0x3f0   : > { %v5538_v37 = vpop.f32.mrb[216].mxu1 }
 0x3f1   : > { %v8558_v47 = vadd.f32 %v5643_v46, %v3641_v49  ;;  %v5539_v54 = vpop.f32.mrb[217].mxu1 }
 0x3f2   : > { %v5540_v8 = vadd.f32 %v5539_v54, %v5538_v37  ;;  %v5541_v23 = vpop.f32.mrb[218].mxu1 }
 0x3f3   : > { %v5644_v17 = vpop.f32.mrb[244].mxu0  ;;  %v5542_v48 = vpop.f32.mrb[219].mxu1 }
 0x3f4   : > { %v5645_v16 = vpop.f32.mrb[245].mxu0  ;;  %v3654_v6 = vadd.f32 %v5540_v8, %v8459_v52  ;;  %v5543_v14 = vadd.f32 %v5542_v48, %v5541_v23 }
 0x3f5   : > { %v5646_v56 = vadd.f32 %v5645_v16, %v5644_v17  ;;  %v5647_v63 = vpop.f32.mrb[246].mxu0 }
 0x3f6   : > { %v5648_v2 = vpop.f32.mrb[247].mxu0  ;;  %v3657_v34 = vadd.f32 %v5543_v14, %v8463_v10 }
 0x3f7   : > { %v5649_v29 = vadd.f32 %v5648_v2, %v5647_v63  ;;  %v8561_v3 = vadd.f32 %v5646_v56, %v3646_v59 }
 0x3f8   : > { %v5544_v39 = vpop.f32.mrb[220].mxu1 }
 0x3f9   : > { %v8564_v18 = vadd.f32 %v5649_v29, %v3649_v36  ;;  %v5545_v50 = vpop.f32.mrb[221].mxu1 }
 0x3fa   : > { %v5546_v20 = vadd.f32 %v5545_v50, %v5544_v39  ;;  %v5547_v42 = vpop.f32.mrb[222].mxu1 }
 0x3fb   : > { %v5650_v61 = vpop.f32.mrb[248].mxu0  ;;  %v5548_v1 = vpop.f32.mrb[223].mxu1 }
 0x3fc   : > { %v5651_v49 = vpop.f32.mrb[249].mxu0  ;;  %v3662_v52 = vadd.f32 %v5546_v20, %v8467_v26  ;;  %v5549_v45 = vadd.f32 %v5548_v1, %v5547_v42 }
 0x3fd   : > { %v5652_v21 = vadd.f32 %v5651_v49, %v5650_v61  ;;  %v5653_v40 = vpop.f32.mrb[250].mxu0 }
 0x3fe   : > { %v5654_v53 = vpop.f32.mrb[251].mxu0  ;;  %v3665_v10 = vadd.f32 %v5549_v45, %v8471_v15 }
 0x3ff   : > { %v5655_v0 = vadd.f32 %v5654_v53, %v5653_v40  ;;  %v8567_v5 = vadd.f32 %v5652_v21, %v3654_v6 }
 0x400   : > { %v5550_v59 = vpop.f32.mrb[224].mxu1 }
 0x401   : > { %v8570_v27 = vadd.f32 %v5655_v0, %v3657_v34  ;;  %v5551_v46 = vpop.f32.mrb[225].mxu1 }
 0x402   : > { %v5552_v37 = vadd.f32 %v5551_v46, %v5550_v59  ;;  %v5553_v17 = vpop.f32.mrb[226].mxu1 }
 0x403   : > { %v5656_v43 = vpop.f32.mrb[252].mxu0  ;;  %v5554_v8 = vpop.f32.mrb[227].mxu1 }
 0x404   : > { %v5657_v36 = vpop.f32.mrb[253].mxu0  ;;  %v3670_v26 = vadd.f32 %v5552_v37, %v8475_v35  ;;  %v5555_v56 = vadd.f32 %v5554_v8, %v5553_v17 }
 0x405   : > { %v5658_v54 = vadd.f32 %v5657_v36, %v5656_v43  ;;  %v5659_v16 = vpop.f32.mrb[254].mxu0 }
 0x406   : > { %v5660_v23 = vpop.f32.mrb[255].mxu0  ;;  %v3673_v15 = vadd.f32 %v5555_v56, %v8479_v44 }
 0x407   : > { %v5661_v63 = vadd.f32 %v5660_v23, %v5659_v16  ;;  %v8573_v48 = vadd.f32 %v5658_v54, %v3662_v52 }
 0x408   : > { %v5556_v6 = vpop.f32.mrb[228].mxu1 }
 0x409   : > { %v8576_v2 = vadd.f32 %v5661_v63, %v3665_v10  ;;  %v5557_v29 = vpop.f32.mrb[229].mxu1 }
 0x40a   : > { %v5558_v39 = vadd.f32 %v5557_v29, %v5556_v6  ;;  %v5559_v61 = vpop.f32.mrb[230].mxu1 }
 0x40b   : > { %v5662_v14 = vpop.f32.mrb[0].mxu0  ;;  %v5560_v20 = vpop.f32.mrb[231].mxu1 }
 0x40c   : > { %v5663_v34 = vpop.f32.mrb[1].mxu0  ;;  %v3678_v35 = vadd.f32 %v5558_v39, %v8483_v9  ;;  %v5561_v21 = vadd.f32 %v5560_v20, %v5559_v61 }
 0x40d   : > { %v5664_v50 = vadd.f32 %v5663_v34, %v5662_v14  ;;  %v5665_v49 = vpop.f32.mrb[2].mxu0 }
 0x40e   : > { %v5666_v42 = vpop.f32.mrb[3].mxu0  ;;  %v3681_v44 = vadd.f32 %v5561_v21, %v8487_v55 }
 0x40f   : > { %v5667_v40 = vadd.f32 %v5666_v42, %v5665_v49  ;;  %v8579_v1 = vadd.f32 %v5664_v50, %v3670_v26 }
 0x410   : > { %v5562_v52 = vpop.f32.mrb[232].mxu1 }
 0x411   : > { %v8582_v53 = vadd.f32 %v5667_v40, %v3673_v15  ;;  %v5563_v0 = vpop.f32.mrb[233].mxu1 }
 0x412   : > { %v5564_v59 = vadd.f32 %v5563_v0, %v5562_v52  ;;  %v5565_v43 = vpop.f32.mrb[234].mxu1 }
 0x413   : > { %v5668_v45 = vpop.f32.mrb[4].mxu0  ;;  %v5566_v37 = vpop.f32.mrb[235].mxu1 }
 0x414   : > { %v5669_v10 = vpop.f32.mrb[5].mxu0  ;;  %v3686_v9 = vadd.f32 %v5564_v59, %v8491_v60  ;;  %v5567_v54 = vadd.f32 %v5566_v37, %v5565_v43 }
 0x415   : > { %v5670_v46 = vadd.f32 %v5669_v10, %v5668_v45  ;;  %v5671_v36 = vpop.f32.mrb[6].mxu0 }
 0x416   : > { %v5672_v17 = vpop.f32.mrb[7].mxu0  ;;  %v3689_v55 = vadd.f32 %v5567_v54, %v8495_v22 }
 0x417   : > { %v5673_v16 = vadd.f32 %v5672_v17, %v5671_v36  ;;  %v8585_v8 = vadd.f32 %v5670_v46, %v3678_v35 }
 0x418   : > { %v5568_v26 = vpop.f32.mrb[236].mxu1 }
 0x419   : > { %v8588_v23 = vadd.f32 %v5673_v16, %v3681_v44  ;;  %v5569_v63 = vpop.f32.mrb[237].mxu1 }
 0x41a   : > { %v5570_v6 = vadd.f32 %v5569_v63, %v5568_v26  ;;  %v5571_v14 = vpop.f32.mrb[238].mxu1 }
 0x41b   : > { %v5674_v56 = vpop.f32.mrb[8].mxu0  ;;  %v5572_v39 = vpop.f32.mrb[239].mxu1 }
 0x41c   : > { %v5675_v15 = vpop.f32.mrb[9].mxu0  ;;  %v3694_v60 = vadd.f32 %v5570_v6, %v8499_v57  ;;  %v5573_v50 = vadd.f32 %v5572_v39, %v5571_v14 }
 0x41d   : > { %v5676_v29 = vadd.f32 %v5675_v15, %v5674_v56  ;;  %v5677_v34 = vpop.f32.mrb[10].mxu0 }
 0x41e   : > { %v5678_v61 = vpop.f32.mrb[11].mxu0  ;;  %v3697_v22 = vadd.f32 %v5573_v50, %v8502_v4 }
 0x41f   : > { %v5679_v49 = vadd.f32 %v5678_v61, %v5677_v34  ;;  %v8591_v20 = vadd.f32 %v5676_v29, %v3686_v9 }
 0x420   : > { %v5574_v35 = vpop.f32.mrb[240].mxu1 }
 0x421   : > { %v8594_v42 = vadd.f32 %v5679_v49, %v3689_v55  ;;  %v5575_v40 = vpop.f32.mrb[241].mxu1 }
 0x422   : > { %v5576_v52 = vadd.f32 %v5575_v40, %v5574_v35  ;;  %v5577_v45 = vpop.f32.mrb[242].mxu1 }
 0x423   : > { %v5680_v21 = vpop.f32.mrb[12].mxu0  ;;  %v5578_v59 = vpop.f32.mrb[243].mxu1 }
 0x424   : > { %v5681_v44 = vpop.f32.mrb[13].mxu0  ;;  %v3702_v57 = vadd.f32 %v5576_v52, %v8506_v24  ;;  %v5579_v46 = vadd.f32 %v5578_v59, %v5577_v45 }
 0x425   : > { %v5682_v0 = vadd.f32 %v5681_v44, %v5680_v21  ;;  %v5683_v10 = vpop.f32.mrb[14].mxu0 }
 0x426   : > { %v5684_v43 = vpop.f32.mrb[15].mxu0  ;;  %v3705_v4 = vadd.f32 %v5579_v46, %v8508_v62 }
 0x427   : > { %v5685_v36 = vadd.f32 %v5684_v43, %v5683_v10  ;;  %v8597_v37 = vadd.f32 %v5682_v0, %v3694_v60 }
 0x428   : > { %v5580_v9 = vpop.f32.mrb[244].mxu1 }
 0x429   : > { %v8600_v17 = vadd.f32 %v5685_v36, %v3697_v22  ;;  %v5581_v16 = vpop.f32.mrb[245].mxu1 }
 0x42a   : > { %v5582_v26 = vadd.f32 %v5581_v16, %v5580_v9  ;;  %v5583_v56 = vpop.f32.mrb[246].mxu1 }
 0x42b   : > { %v5686_v54 = vpop.f32.mrb[16].mxu0  ;;  %v5584_v6 = vpop.f32.mrb[247].mxu1 }
 0x42c   : > { %v5687_v55 = vpop.f32.mrb[17].mxu0  ;;  %v3710_v24 = vadd.f32 %v5582_v26, %v8512_v58  ;;  %v5585_v29 = vadd.f32 %v5584_v6, %v5583_v56 }
 0x42d   : > { %v5688_v63 = vadd.f32 %v5687_v55, %v5686_v54  ;;  %v5689_v15 = vpop.f32.mrb[18].mxu0 }
 0x42e   : > { %v5690_v14 = vpop.f32.mrb[19].mxu0  ;;  %v3713_v62 = vadd.f32 %v5585_v29, %v8514_v41 }
 0x42f   : > { %v5691_v34 = vadd.f32 %v5690_v14, %v5689_v15  ;;  %v8603_v39 = vadd.f32 %v5688_v63, %v3702_v57 }
 0x430   : > { %v5586_v60 = vpop.f32.mrb[248].mxu1 }
 0x431   : > { %v8606_v61 = vadd.f32 %v5691_v34, %v3705_v4  ;;  %v5587_v49 = vpop.f32.mrb[249].mxu1 }
 0x432   : > { %v5588_v35 = vadd.f32 %v5587_v49, %v5586_v60  ;;  %v5589_v21 = vpop.f32.mrb[250].mxu1 }
 0x433   : > { %v5692_v50 = vpop.f32.mrb[20].mxu0  ;;  %v5590_v52 = vpop.f32.mrb[251].mxu1 }
 0x434   : > { %v5693_v22 = vpop.f32.mrb[21].mxu0  ;;  %v3718_v58 = vadd.f32 %v5588_v35, %v8518_v31  ;;  %v5591_v0 = vadd.f32 %v5590_v52, %v5589_v21  ;;  %v6050_v35 = vld [vmem:[%s6461_s6 + $0x10] sm:$0xff]  ;;  %v6051_v52 = vld [vmem:[%s6461_s6] sm:$0xff] }
 0x435   : > { %v5694_v40 = vadd.f32 %v5693_v22, %v5692_v50  ;;  %v5695_v44 = vpop.f32.mrb[22].mxu0 }
 0x436   : > { %v5696_v45 = vpop.f32.mrb[23].mxu0  ;;  %v3721_v41 = vadd.f32 %v5591_v0, %v8520_v28 }
 0x437   : > { %v5697_v10 = vadd.f32 %v5696_v45, %v5695_v44  ;;  %v8609_v59 = vadd.f32 %v5694_v40, %v3710_v24 }
 0x438   : > { %v5592_v57 = vpop.f32.mrb[252].mxu1 }
 0x439   : > { %v8612_v43 = vadd.f32 %v5697_v10, %v3713_v62  ;;  %v5593_v36 = vpop.f32.mrb[253].mxu1  ;;  %v6052_v10 = vld [vmem:[%s6461_s6 + $0x18] sm:$0xff] }
 0x43a   : > { %v5594_v9 = vadd.f32 %v5593_v36, %v5592_v57  ;;  %v5595_v54 = vpop.f32.mrb[254].mxu1 }
 0x43b   : > { %v5698_v46 = vpop.f32.mrb[24].mxu0  ;;  %v5596_v26 = vpop.f32.mrb[255].mxu1 }
 0x43c   : > { %v5699_v4 = vpop.f32.mrb[25].mxu0  ;;  %v3726_v31 = vadd.f32 %v5594_v9, %v8525_v12  ;;  %v5597_v63 = vadd.f32 %v5596_v26, %v5595_v54 }
 0x43d   : > { %v5700_v16 = vadd.f32 %v5699_v4, %v5698_v46  ;;  %v5701_v55 = vpop.f32.mrb[26].mxu0  ;;  %v6053_v46 = vld [vmem:[%s6461_s6 + $0x8] sm:$0xff] }
 0x43e   : > { %v5702_v56 = vpop.f32.mrb[27].mxu0  ;;  %v3729_v28 = vadd.f32 %v5597_v63, %v8528_v32 }
 0x43f   : > { %v5703_v15 = vadd.f32 %v5702_v56, %v5701_v55  ;;  %v8615_v6 = vadd.f32 %v5700_v16, %v3718_v58  ;;  %v6054_v56 = vld [vmem:[%s6461_s6 + $0x30] sm:$0xff] }
 0x440   : > { %v5800_v24 = vpop.f32.mrb[0].mxu1 }
 0x441   : > { %v8618_v14 = vadd.f32 %v5703_v15, %v3721_v41  ;;  %v3936_v34 = vadd.f32 %v5800_v24, %v8537_v25  ;;  %v3927_v62 = vpop.f32.mrb[1].mxu1 }
 0x442   : > { %v3928_v50 = vadd.f32 %v3927_v62, %v8531_v7  ;;  %v5801_v49 = vpop.f32.mrb[2].mxu1 }
 0x443   : > { %v5704_v29 = vpop.f32.mrb[28].mxu0  ;;  %v4056_v21 = vadd.f32 %v6050_v35, %v3936_v34  ;;  %v3939_v32 = vadd.f32 %v5801_v49, %v8540_v19  ;;  %v3930_v40 = vpop.f32.mrb[3].mxu1  ;;  %v6056_v34 = vld [vmem:[%s6461_s6 + $0x38] sm:$0xff] }
 0x444   : > { %v5705_v60 = vpop.f32.mrb[29].mxu0  ;;  %v4054_v45 = vadd.f32 %v6051_v52, %v3928_v50  ;;  %v3931_v25 = vadd.f32 %v3930_v40, %v8534_v33  ;;  %v6057_v50 = vld [vmem:[%s6461_s6 + $0x28] sm:$0xff] }
 0x445   : > { %v5706_v12 = vadd.f32 %v5705_v60, %v5704_v29  ;;  %v5707_v22 = vpop.f32.mrb[30].mxu0  ;;  %v4088_v0 = vmax.f32 %v4056_v21, 0.0  ;;  %v4057_v41 = vadd.f32 %v6052_v10, %v3939_v32  ;;  %v6058_v32 = vld [vmem:[%s6461_s6 + $0x50] sm:$0xff] }
 0x446   : > { %v5708_v44 = vpop.f32.mrb[31].mxu0  ;;  %v4086_v57 = vmax.f32 %v4054_v45, 0.0  ;;  %v4055_v36 = vadd.f32 %v6053_v46, %v3931_v25  ;;  %v6059_v45 = vld [vmem:[%s6461_s6 + $0x40] sm:$0xff] }
 0x447   : > { %v5709_v58 = vadd.f32 %v5708_v44, %v5707_v22  ;;  %v8627_v7 = vadd.f32 %v5706_v12, %v3726_v31  ;;  %4120 = vst [vmem:[%s8632_s11 + $0x10] sm:$0xff] %v4088_v0  ;;  %v4089_v33 = vmax.f32 %v4057_v41, 0.0  ;;  %v6060_v0 = vld [vmem:[%s6461_s6 + $0x58] sm:$0xff] }
 0x448   : > { %4118 = vst [vmem:[%s8632_s11] sm:$0xff] %v4086_v57  ;;  %v4087_v4 = vmax.f32 %v4055_v36, 0.0  ;;  %v5804_v9 = vpop.f32.mrb[4].mxu1  ;;  %v6061_v57 = vld [vmem:[%s6461_s6 + $0x48] sm:$0xff] }
 0x449   : > { %v8635_v19 = vadd.f32 %v5709_v58, %v3729_v28  ;;  %4121 = vst [vmem:[%s8632_s11 + $0x18] sm:$0xff] %v4089_v33  ;;  %v3952_v54 = vadd.f32 %v5804_v9, %v8549_v11  ;;  %v3943_v16 = vpop.f32.mrb[5].mxu1  ;;  %v6055_v28 = vld [vmem:[%s6461_s6 + $0x20] sm:$0xff] }
 0x44a   : > { %4119 = vst [vmem:[%s8632_s11 + $0x8] sm:$0xff] %v4087_v4  ;;  %v3944_v55 = vadd.f32 %v3943_v16, %v8543_v30  ;;  %v5805_v26 = vpop.f32.mrb[6].mxu1 }
 0x44b   : > { %v4060_v31 = vadd.f32 %v6054_v56, %v3952_v54  ;;  %v3955_v63 = vadd.f32 %v5805_v26, %v8552_v13  ;;  %v3946_v15 = vpop.f32.mrb[7].mxu1  ;;  %v6062_v54 = vld [vmem:[%s6461_s6 + $0x70] sm:$0xff]  ;;  %v6063_v56 = vld [vmem:[%s6461_s6 + $0x60] sm:$0xff] }
 0x44c   : > { %v4058_v24 = vadd.f32 %v6055_v28, %v3944_v55  ;;  %v3947_v29 = vadd.f32 %v3946_v15, %v8546_v51  ;;  %v6064_v15 = vld [vmem:[%s6461_s6 + $0x78] sm:$0xff] }
 0x44d   : > { %v4092_v11 = vmax.f32 %v4060_v31, 0.0  ;;  %v4061_v62 = vadd.f32 %v6056_v34, %v3955_v63 }
 0x44e   : > { %v4090_v60 = vmax.f32 %v4058_v24, 0.0  ;;  %v4059_v30 = vadd.f32 %v6057_v50, %v3947_v29  ;;  %v6065_v29 = vld [vmem:[%s6461_s6 + $0x68] sm:$0xff] }
 0x44f   : > { %4124 = vst [vmem:[%s8632_s11 + $0x30] sm:$0xff] %v4092_v11  ;;  %v4093_v49 = vmax.f32 %v4061_v62, 0.0 }
 0x450   : > { %4122 = vst [vmem:[%s8632_s11 + $0x20] sm:$0xff] %v4090_v60  ;;  %v4091_v12 = vmax.f32 %v4059_v30, 0.0  ;;  %v5808_v13 = vpop.f32.mrb[8].mxu1  ;;  %v6066_v30 = vld [vmem:[%s6461_s6 + $0x90] sm:$0xff] }
 0x451   : > { %4125 = vst [vmem:[%s8632_s11 + $0x38] sm:$0xff] %v4093_v49  ;;  %v3968_v22 = vadd.f32 %v5808_v13, %v8561_v3  ;;  %v3959_v35 = vpop.f32.mrb[9].mxu1 }
 0x452   : > { %4123 = vst [vmem:[%s8632_s11 + $0x28] sm:$0xff] %v4091_v12  ;;  %v3960_v51 = vadd.f32 %v3959_v35, %v8555_v38  ;;  %v5809_v21 = vpop.f32.mrb[10].mxu1 }
 0x453   : > { %v4064_v40 = vadd.f32 %v6058_v32, %v3968_v22  ;;  %v3971_v44 = vadd.f32 %v5809_v21, %v8564_v18  ;;  %v3962_v52 = vpop.f32.mrb[11].mxu1  ;;  %v6067_v22 = vld [vmem:[%s6461_s6 + $0x80] sm:$0xff]  ;;  %v6068_v21 = vld [vmem:[%s6461_s6 + $0x98] sm:$0xff] }
 0x454   : > { %v4062_v25 = vadd.f32 %v6059_v45, %v3960_v51  ;;  %v3963_v58 = vadd.f32 %v3962_v52, %v8558_v47 }
 0x455   : > { %v4096_v3 = vmax.f32 %v4064_v40, 0.0  ;;  %v4065_v10 = vadd.f32 %v6060_v0, %v3971_v44  ;;  %v6069_v44 = vld [vmem:[%s6461_s6 + $0x88] sm:$0xff]  ;;  %v6070_v0 = vld [vmem:[%s6461_s6 + $0xb0] sm:$0xff] }
 0x456   : > { %v4094_v41 = vmax.f32 %v4062_v25, 0.0  ;;  %v4063_v38 = vadd.f32 %v6061_v57, %v3963_v58 }
 0x457   : > { %4128 = vst [vmem:[%s8632_s11 + $0x50] sm:$0xff] %v4096_v3  ;;  %v4097_v46 = vmax.f32 %v4065_v10, 0.0 }
 0x458   : > { %4126 = vst [vmem:[%s8632_s11 + $0x40] sm:$0xff] %v4094_v41  ;;  %v4095_v36 = vmax.f32 %v4063_v38, 0.0  ;;  %v5812_v18 = vpop.f32.mrb[12].mxu1  ;;  %v6071_v38 = vld [vmem:[%s6461_s6 + $0xa0] sm:$0xff] }
 0x459   : > { %4129 = vst [vmem:[%s8632_s11 + $0x58] sm:$0xff] %v4097_v46  ;;  %v3984_v33 = vadd.f32 %v5812_v18, %v8573_v48  ;;  %v3975_v4 = vpop.f32.mrb[13].mxu1  ;;  %v6072_v18 = vld [vmem:[%s6461_s6 + $0xb8] sm:$0xff] }
 0x45a   : > { %4127 = vst [vmem:[%s8632_s11 + $0x48] sm:$0xff] %v4095_v36  ;;  %v3976_v47 = vadd.f32 %v3975_v4, %v8567_v5  ;;  %v5813_v9 = vpop.f32.mrb[14].mxu1 }
 0x45b   : > { %v4068_v16 = vadd.f32 %v6062_v54, %v3984_v33  ;;  %v3987_v55 = vadd.f32 %v5813_v9, %v8576_v2  ;;  %v3978_v26 = vpop.f32.mrb[15].mxu1 }
 0x45c   : > { %v4066_v31 = vadd.f32 %v6063_v56, %v3976_v47  ;;  %v3979_v63 = vadd.f32 %v3978_v26, %v8570_v27  ;;  %v6073_v47 = vld [vmem:[%s6461_s6 + $0xa8] sm:$0xff]  ;;  %v6074_v56 = vld [vmem:[%s6461_s6 + $0xd0] sm:$0xff] }
 0x45d   : > { %v4100_v48 = vmax.f32 %v4068_v16, 0.0  ;;  %v4069_v28 = vadd.f32 %v6064_v15, %v3987_v55  ;;  %v6075_v15 = vld [vmem:[%s6461_s6 + $0xc0] sm:$0xff] }
 0x45e   : > { %v4098_v24 = vmax.f32 %v4066_v31, 0.0  ;;  %v4067_v5 = vadd.f32 %v6065_v29, %v3979_v63  ;;  %v6076_v29 = vld [vmem:[%s6461_s6 + $0xd8] sm:$0xff] }
 0x45f   : > { %4132 = vst [vmem:[%s8632_s11 + $0x70] sm:$0xff] %v4100_v48  ;;  %v4101_v11 = vmax.f32 %v4069_v28, 0.0 }
 0x460   : > { %4130 = vst [vmem:[%s8632_s11 + $0x60] sm:$0xff] %v4098_v24  ;;  %v4099_v34 = vmax.f32 %v4067_v5, 0.0  ;;  %v5816_v2 = vpop.f32.mrb[16].mxu1 }
 0x461   : > { %4133 = vst [vmem:[%s8632_s11 + $0x78] sm:$0xff] %v4101_v11  ;;  %v4000_v62 = vadd.f32 %v5816_v2, %v8585_v8  ;;  %v3991_v60 = vpop.f32.mrb[17].mxu1 }
 0x462   : > { %4131 = vst [vmem:[%s8632_s11 + $0x68] sm:$0xff] %v4099_v34  ;;  %v3992_v27 = vadd.f32 %v3991_v60, %v8579_v1  ;;  %v5817_v50 = vpop.f32.mrb[18].mxu1  ;;  %v6077_v34 = vld [vmem:[%s6461_s6 + $0xc8] sm:$0xff] }
 0x463   : > { %v4072_v49 = vadd.f32 %v6066_v30, %v4000_v62  ;;  %v4003_v12 = vadd.f32 %v5817_v50, %v8588_v23  ;;  %v3994_v13 = vpop.f32.mrb[19].mxu1  ;;  %v6078_v30 = vld [vmem:[%s6461_s6 + $0xf0] sm:$0xff] }
 0x464   : > { %v4070_v35 = vadd.f32 %v6067_v22, %v3992_v27  ;;  %v3995_v51 = vadd.f32 %v3994_v13, %v8582_v53  ;;  %v6079_v22 = vld [vmem:[%s6461_s6 + $0xe0] sm:$0xff] }
 0x465   : > { %v4104_v8 = vmax.f32 %v4072_v49, 0.0  ;;  %v4073_v32 = vadd.f32 %v6068_v21, %v4003_v12 }
 0x466   : > { %v4102_v40 = vmax.f32 %v4070_v35, 0.0  ;;  %v4071_v1 = vadd.f32 %v6069_v44, %v3995_v51 }
 0x467   : > { %4136 = vst [vmem:[%s8632_s11 + $0x90] sm:$0xff] %v4104_v8  ;;  %v4105_v52 = vmax.f32 %v4073_v32, 0.0  ;;  %v6080_v8 = vld [vmem:[%s6461_s6 + $0xf8] sm:$0xff]  ;;  %v6081_v32 = vld [vmem:[%s6461_s6 + $0xe8] sm:$0xff] }
 0x468   : > { %4134 = vst [vmem:[%s8632_s11 + $0x80] sm:$0xff] %v4102_v40  ;;  %v4103_v45 = vmax.f32 %v4071_v1, 0.0  ;;  %v5820_v23 = vpop.f32.mrb[20].mxu1 }
 0x469   : > { %4137 = vst [vmem:[%s8632_s11 + $0x98] sm:$0xff] %v4105_v52  ;;  %v4016_v25 = vadd.f32 %v5820_v23, %v8597_v37  ;;  %v4007_v58 = vpop.f32.mrb[21].mxu1 }
 0x46a   : > { %4135 = vst [vmem:[%s8632_s11 + $0x88] sm:$0xff] %v4103_v45  ;;  %v4008_v53 = vadd.f32 %v4007_v58, %v8591_v20  ;;  %v5821_v3 = vpop.f32.mrb[22].mxu1 }
 0x46b   : > { %v4076_v10 = vadd.f32 %v6070_v0, %v4016_v25  ;;  %v4019_v41 = vadd.f32 %v5821_v3, %v8600_v17  ;;  %v4010_v57 = vpop.f32.mrb[23].mxu1 }
 0x46c   : > { %v4074_v46 = vadd.f32 %v6071_v38, %v4008_v53  ;;  %v4011_v36 = vadd.f32 %v4010_v57, %v8594_v42 }
 0x46d   : > { %v4108_v37 = vmax.f32 %v4076_v10, 0.0  ;;  %v4077_v33 = vadd.f32 %v6072_v18, %v4019_v41 }
 0x46e   : > { %v4106_v4 = vmax.f32 %v4074_v46, 0.0  ;;  %v4075_v20 = vadd.f32 %v6073_v47, %v4011_v36 }
 0x46f   : > { %4140 = vst [vmem:[%s8632_s11 + $0xb0] sm:$0xff] %v4108_v37  ;;  %v4109_v9 = vmax.f32 %v4077_v33, 0.0 }
 0x470   : > { %4138 = vst [vmem:[%s8632_s11 + $0xa0] sm:$0xff] %v4106_v4  ;;  %v4107_v54 = vmax.f32 %v4075_v20, 0.0  ;;  %v5824_v17 = vpop.f32.mrb[24].mxu1 }
 0x471   : > { %4141 = vst [vmem:[%s8632_s11 + $0xb8] sm:$0xff] %v4109_v9  ;;  %v4032_v16 = vadd.f32 %v5824_v17, %v8609_v59  ;;  %v4023_v55 = vpop.f32.mrb[25].mxu1 }
 0x472   : > { %4139 = vst [vmem:[%s8632_s11 + $0xa8] sm:$0xff] %v4107_v54  ;;  %v4024_v42 = vadd.f32 %v4023_v55, %v8603_v39  ;;  %v5825_v26 = vpop.f32.mrb[26].mxu1 }
 0x473   : > { %v4080_v31 = vadd.f32 %v6074_v56, %v4032_v16  ;;  %v4035_v63 = vadd.f32 %v5825_v26, %v8612_v43  ;;  %v4026_v48 = vpop.f32.mrb[27].mxu1 }
 0x474   : > { %v4078_v28 = vadd.f32 %v6075_v15, %v4024_v42  ;;  %v4027_v24 = vadd.f32 %v4026_v48, %v8606_v61 }
 0x475   : > { %v4112_v59 = vmax.f32 %v4080_v31, 0.0  ;;  %v4081_v5 = vadd.f32 %v6076_v29, %v4035_v63 }
 0x476   : > { %v4110_v11 = vmax.f32 %v4078_v28, 0.0  ;;  %v4079_v39 = vadd.f32 %v6077_v34, %v4027_v24 }
 0x477   : > { %4144 = vst [vmem:[%s8632_s11 + $0xd0] sm:$0xff] %v4112_v59  ;;  %v4113_v2 = vmax.f32 %v4081_v5, 0.0 }
 0x478   : > { %4142 = vst [vmem:[%s8632_s11 + $0xc0] sm:$0xff] %v4110_v11  ;;  %v4111_v43 = vmax.f32 %v4079_v39, 0.0  ;;  %v5828_v62 = vpop.f32.mrb[28].mxu1 }
 0x479   : > { %4145 = vst [vmem:[%s8632_s11 + $0xd8] sm:$0xff] %v4113_v2  ;;  %v4048_v60 = vadd.f32 %v5828_v62, %v8627_v7  ;;  %v4039_v61 = vpop.f32.mrb[29].mxu1 }
 0x47a   : > { %4143 = vst [vmem:[%s8632_s11 + $0xc8] sm:$0xff] %v4111_v43  ;;  %v4040_v27 = vadd.f32 %v4039_v61, %v8615_v6  ;;  %v5829_v50 = vpop.f32.mrb[30].mxu1 }
 0x47b   : > { %v4084_v49 = vadd.f32 %v6078_v30, %v4048_v60  ;;  %v4051_v12 = vadd.f32 %v5829_v50, %v8635_v19  ;;  %v4042_v13 = vpop.f32.mrb[31].mxu1 }
 0x47c   : > { %v4082_v35 = vadd.f32 %v6079_v22, %v4040_v27  ;;  %v4043_v51 = vadd.f32 %v4042_v13, %v8618_v14 }
 0x47d   : > { %v4116_v7 = vmax.f32 %v4084_v49, 0.0  ;;  %v4085_v6 = vadd.f32 %v6080_v8, %v4051_v12 }
 0x47e   : > { %v4114_v21 = vmax.f32 %v4082_v35, 0.0  ;;  %v4083_v40 = vadd.f32 %v6081_v32, %v4043_v51 }
 0x47f   : > { %4148 = vst [vmem:[%s8632_s11 + $0xf0] sm:$0xff] %v4116_v7  ;;  %v4117_v19 = vmax.f32 %v4085_v6, 0.0 }
 0x480   : > { %4146 = vst [vmem:[%s8632_s11 + $0xe0] sm:$0xff] %v4114_v21  ;;  %v4115_v14 = vmax.f32 %v4083_v40, 0.0 }
 0x481   : > { %4149 = vst [vmem:[%s8632_s11 + $0xf8] sm:$0xff] %v4117_v19 }
 0x482   : > { %4147 = vst [vmem:[%s8632_s11 + $0xe8] sm:$0xff] %v4115_v14 }
 0x483   : > { %6181 = shalt.err (!%p6178_p2)
}
 0x484   : > { %s6182_s6 = scalar_lea.hbm %s8726_s9, 4096  ;;  %s6186_s8 = scalar_lea.hbm %s8780_s5, 8192 }
 0x485   : > { %p6183_p13 = scmp.ne.s32.totalorder %s8726_s9, %s6182_s6  ;;  %p6187_p4 = scmp.lt.u32.totalorder %s8726_s9, %s8780_s5 }
 0x486   : > { %p6188_p5 = scmp.lt.u32.totalorder %s6186_s8, %s6182_s6  ;;  %p6190_p11 = scmp.lt.u32.totalorder %s6182_s6, %s8726_s9 }
 0x487   : > { %p6184_p6 = pnand %p6183_p13, %p9010_p0 }
 0x488   : > { %p6189_p8 = por %p6188_p5, %p6187_p4 }
 0x489   : > { %p6185_p10 = pneg %p6184_p6 }
 0x48a   : > { %p6191_p1 = por %p6190_p11, %p6189_p8 }
 0x48c   : > { %p6192_p3 = pnand %p6191_p1, %p6185_p10 }
 0x48e   : > { %6195 = shalt.err (!%p6192_p3)
}
 0x48f   : > { %s6251_s28 = smov 128   ;;  %s6252_s15 = smov 8  }
 0x490   : > { %5840 = dma.vmem_to_hbm [thread:$0]  (%p9010_p0), %s8728_s30, 4096, %s8726_s9, %s4151_s22, %s6251_s28, %s6251_s28, %s6252_s15  }
 0x491 PF: > { %s4179_s16 = sand.u32 1, %s6226_s18   ;;  %p9011_p7 = scmp.ne.s32.totalorder %s8816_s25, 0 }
 0x492   : > { %p9012_p9 = scmp.ge.s32.totalorder %s6238_s21, 2  ;;  %s4180_s12 = scalar_lea.sflag [#allocation4], %s4179_s16 }
 0x494   : > { %p5854_p12 = pnand %p9012_p9, %p9011_p7 }
 0x496   : > { %6221 = dma.done.wait (!%p5854_p12), %s4180_s12, 4096  }
 0x497   : > { %6223 = vsyncadd (!%p5854_p12), %s4180_s12, 4294963200  ;;  %p19_p2 = scmp.ge.s32.totalorder %s6393_s14, 4   ;;  %s9013_s18 = smov %s6230_s19 }
 0x498   : > { %s9014_s19 = smov %s6234_s20  ;;  %s9015_s20 = smov %s6409_s27 }
 0x499   : > { %s9016_s21 = smov %s6393_s14  ;;  %21 = sbr.rel (!%p19_p2) target bundleno = 6 (0x6), region = 93 }
 0x4a0   :  { %4185 = vsyncpa [#allocation3], 1 }
 0x4a1   :  { %4187 = vsyncpa [#allocation3 + $0x1], 1 }
 0x4a2   :  { %4188 = vsyncpa [#allocation6], 1 }
 0x4a3   :  { %4189 = vsyncpa [#allocation4], 1 }
 0x4a4   :  { %4191 = vsyncpa [#allocation4 + $0x1], 1 }

</bundles_post_ra>
